<compile_context>
chip_gen: v5e
topology: v5e:2x2
jax: 0.10.0
libtpu: 0.0.40
codegen_flags: <defaults>
</compile_context>

<pallas_src>
import functools

import numpy as np

import jax
import jax.numpy as jnp
from jax.experimental import pallas as pl
from jax.experimental.pallas import tpu as pltpu


def _rup(x, m):
    return (x + m - 1) // m * m


# --------------------------------------------------------------------------- #
# Static geometry.
# A tensor is described by (step, vh, vw): valid sample (i, j), i<vh, j<vw,
# lives at flat frame position step*(i*Wf + j).  Convs/pools never compact the
# data, they only grow `step`, so every spatial access is a pure lane shift.
# --------------------------------------------------------------------------- #
def _static_geometry(H, W):
    Hf, Wf = H + 2, W + 2                       # conv1 has padding=1
    L = _rup(Hf * Wf, 128)                      # lane-padded flat frame length
    pools = ((2, 1), (2, 2), (2, 3))            # (kernel, stride) of pool1..3
    step, vh, vw = 1, Hf, Wf
    stages = []
    for pk, ps in pools:
        assert vh >= 3 and vw >= 3, "spatial input too small for this net"
        conv_shifts = tuple((ky * Wf + kx) * step
                            for ky in range(3) for kx in range(3))
        conv_ext = _rup(max(conv_shifts), 128)  # per-stage zero-extension
        vh, vw = vh - 2, vw - 2                 # 3x3 valid conv
        assert vh >= pk and vw >= pk, "spatial input too small for this net"
        pool_shifts = tuple((dy * Wf + dx) * step
                            for dy in range(pk) for dx in range(pk))
        pool_ext = _rup(max(pool_shifts), 128)
        vh, vw = (vh - pk) // ps + 1, (vw - pk) // ps + 1
        step *= ps
        stages.append((conv_shifts, conv_ext, pool_shifts, pool_ext))
    return Wf, L, tuple(stages), (step, vh, vw)


# --------------------------------------------------------------------------- #
# Fused kernel: one batch element per grid step.  Activations are (C_pad, L).
# --------------------------------------------------------------------------- #
def _net_kernel(x_ref, w1_ref, b1_ref, w2_ref, b2_ref, w3_ref, b3_ref,
                sel_ref, bint_ref, o_ref, *, L, stages):

    def extend(a, ext):
        # Zero-extend the lane dim so a "shift left by s" is the static slice
        # ext_a[:, s:s+L] (the garbage tail is never read by a valid output).
        z = jnp.zeros((a.shape[0], ext), jnp.float32)
        return jnp.concatenate([a, z], axis=1)

    def conv_relu_pool(act, w, b, conv_shifts, conv_ext, pool_shifts, pool_ext):
        # im2col: 9 lane-shifted copies stacked along sublanes -> one MXU matmul
        acte = extend(act, conv_ext)
        patches = jnp.concatenate([acte[:, s:s + L] for s in conv_shifts],
                                  axis=0)                       # (9*Cin_p, L)
        y = jnp.dot(w, patches, preferred_element_type=jnp.float32)
        y = jnp.maximum(y + b, 0.0)                             # bias + ReLU
        # max pool = elementwise max of shifted copies (no compaction; the
        # sample stride of the next stage absorbs the pool stride).
        ye = extend(y, pool_ext)
        pooled = y                                              # shift 0
        for s in pool_shifts[1:]:
            pooled = jnp.maximum(pooled, ye[:, s:s + L])
        return pooled

    act = x_ref[0]                                              # (C0_p, L)
    act = conv_relu_pool(act, w1_ref[...], b1_ref[...], *stages[0])
    act = conv_relu_pool(act, w2_ref[...], b2_ref[...], *stages[1])
    act = conv_relu_pool(act, w3_ref[...], b3_ref[...], *stages[2])

    # Bilinear resize (align_corners=True): selection matmul gathers the valid
    # ph*pw samples, kron(A_h, A_w)^T expands to the dense, lane-dense (C, H*W).
    xs = jnp.dot(act, sel_ref[...], preferred_element_type=jnp.float32)
    o_ref[0] = jnp.dot(xs, bint_ref[...], preferred_element_type=jnp.float32)


# --------------------------------------------------------------------------- #
# Wrapper-side (XLA) parameter / constant preparation.
# --------------------------------------------------------------------------- #
def _conv_weight_matrix(w, cin_p, cout_p):
    # PyTorch layout (Cout, Cin, 3, 3) -> (Cout_p, 9*Cin_p); K ordered as
    # (ky, kx, ci) to match the im2col patches built in the kernel.
    cout, cin, kh, kw = w.shape
    wt = jnp.transpose(w.astype(jnp.float32), (0, 2, 3, 1))     # (Cout,3,3,Cin)
    wt = jnp.pad(wt, ((0, cout_p - cout), (0, 0), (0, 0), (0, cin_p - cin)))
    return wt.reshape(cout_p, kh * kw * cin_p)


def _bias_column(b, cout_p):
    return jnp.pad(b.astype(jnp.float32),
                   (0, cout_p - b.shape[0])).reshape(cout_p, 1)


def _interp_matrix(out_size, in_size):
    # Bilinear weights, align_corners=True (matches F.interpolate).
    if in_size == 1:
        return np.ones((out_size, 1), np.float32)
    o = np.arange(out_size, dtype=np.float64)
    src = o * (in_size - 1) / (out_size - 1) if out_size > 1 else np.zeros(1)
    i0 = np.clip(np.floor(src).astype(np.int64), 0, in_size - 2)
    frac = src - i0
    A = np.zeros((out_size, in_size), np.float64)
    A[np.arange(out_size), i0] += 1.0 - frac
    A[np.arange(out_size), i0 + 1] += frac
    return A.astype(np.float32)


def _final_matrices(H, W, Wf, L, step, ph, pw):
    # Selection matrix: pick the ph*pw valid samples out of the flat frame.
    pos = np.array([(step * i) * Wf + step * j
                    for i in range(ph) for j in range(pw)])
    sel = np.zeros((L, ph * pw), np.float32)
    sel[pos, np.arange(ph * pw)] = 1.0
    A_h = _interp_matrix(H, ph)
    A_w = _interp_matrix(W, pw)
    bint = np.kron(A_h, A_w).T.astype(np.float32)               # (ph*pw, H*W)
    return jnp.asarray(sel), jnp.asarray(bint)


def net_forward(x, params):
    N, C, H, W = x.shape
    nclasses = params["w3"].shape[0]
    Hf = H + 2
    Wf, L, stages, (fstep, ph, pw) = _static_geometry(H, W)

    cp0 = _rup(C, 8)
    cp1 = _rup(params["w1"].shape[0], 8)
    cp2 = _rup(params["w2"].shape[0], 8)
    cp3 = _rup(nclasses, 8)

    # input: NCHW -> zero pad (channels to cp0, spatial +1 for conv1) -> flat
    xp = jnp.pad(x.astype(jnp.float32),
                 ((0, 0), (0, cp0 - C), (1, 1), (1, 1)))
    xf = xp.reshape(N, cp0, Hf * Wf)
    xf = jnp.pad(xf, ((0, 0), (0, 0), (0, L - Hf * Wf)))

    w1m = _conv_weight_matrix(params["w1"], cp0, cp1)
    w2m = _conv_weight_matrix(params["w2"], cp1, cp2)
    w3m = _conv_weight_matrix(params["w3"], cp2, cp3)
    b1m = _bias_column(params["b1"], cp1)
    b2m = _bias_column(params["b2"], cp2)
    b3m = _bias_column(params["b3"], cp3)
    sel, bint = _final_matrices(H, W, Wf, L, fstep, ph, pw)

    kernel = functools.partial(_net_kernel, L=L, stages=stages)
    out_flat = pl.pallas_call(
        kernel,
        out_shape=jax.ShapeDtypeStruct((N, cp3, H * W), jnp.float32),
        grid=(N,),
        in_specs=[
            pl.BlockSpec((1, cp0, L), lambda n: (n, 0, 0)),
            pl.BlockSpec(w1m.shape, lambda n: (0, 0)),
            pl.BlockSpec(b1m.shape, lambda n: (0, 0)),
            pl.BlockSpec(w2m.shape, lambda n: (0, 0)),
            pl.BlockSpec(b2m.shape, lambda n: (0, 0)),
            pl.BlockSpec(w3m.shape, lambda n: (0, 0)),
            pl.BlockSpec(b3m.shape, lambda n: (0, 0)),
            pl.BlockSpec(sel.shape, lambda n: (0, 0)),
            pl.BlockSpec(bint.shape, lambda n: (0, 0)),
        ],
        out_specs=pl.BlockSpec((1, cp3, H * W), lambda n: (n, 0, 0)),
        compiler_params=pltpu.CompilerParams(
            dimension_semantics=("parallel",)),
    )(xf, w1m, b1m, w2m, b2m, w3m, b3m, sel, bint)

    return out_flat[:, :nclasses, :].reshape(N, nclasses, H, W)


# --------------------------------------------------------------------------- #
# Pure-JAX reference (for a correctness self-check) and parameter init.
# --------------------------------------------------------------------------- #
def net_reference(x, params):
    x = x.astype(jnp.float32)
    H, W = x.shape[-2:]

    def conv(y, w, b, pad):
        out = jax.lax.conv_general_dilated(
            y, w.astype(jnp.float32), window_strides=(1, 1),
            padding=((pad, pad), (pad, pad)),
            dimension_numbers=("NCHW", "OIHW", "NCHW"),
            precision=jax.lax.Precision.HIGHEST)
        return out + b.astype(jnp.float32)[None, :, None, None]

    def pool(y, k, s):
        return jax.lax.reduce_window(y, -jnp.inf, jax.lax.max,
                                     (1, 1, k, k), (1, 1, s, s), "VALID")

    y = pool(jax.nn.relu(conv(x, params["w1"], params["b1"], 1)), 2, 1)
    y = pool(jax.nn.relu(conv(y, params["w2"], params["b2"], 0)), 2, 2)
    y = pool(jax.nn.relu(conv(y, params["w3"], params["b3"], 0)), 2, 3)
    h3, w3 = y.shape[-2:]
    A_h = jnp.asarray(_interp_matrix(H, h3))
    A_w = jnp.asarray(_interp_matrix(W, w3))
    return jnp.einsum("oi,ncij,pj->ncop", A_h, y, A_w,
                      precision=jax.lax.Precision.HIGHEST)


def init_params(key, nclasses=2):
    ks = jax.random.split(key, 6)

    def conv_init(kw_key, kb_key, cin, cout, k=3):
        # PyTorch Conv2d default init and (Cout, Cin, KH, KW) weight layout.
        bound = 1.0 / (cin * k * k) ** 0.5
        w = jax.random.uniform(kw_key, (cout, cin, k, k), jnp.float32,
                               -bound, bound)
        b = jax.random.uniform(kb_key, (cout,), jnp.float32, -bound, bound)
        return w, b

    w1, b1 = conv_init(ks[0], ks[1], 3, 6)
    w2, b2 = conv_init(ks[2], ks[3], 6, 12)
    w3, b3 = conv_init(ks[4], ks[5], 12, nclasses)
    return dict(w1=w1, b1=b1, w2=w2, b2=b2, w3=w3, b3=b3)


if __name__ == "__main__":
    key = jax.random.PRNGKey(0)
    k_x, k_p = jax.random.split(key)

    # Small shapes consistent with the module: NCHW, 3 input channels.
    N, C, H, W = 2, 3, 32, 32
    x = jax.random.normal(k_x, (N, C, H, W), jnp.float32)
    params = init_params(k_p, nclasses=2)

    out = jax.block_until_ready(jax.jit(net_forward)(x, params))
    assert out.shape == (N, 2, H, W), out.shape
    assert bool(jnp.all(jnp.isfinite(out)))

    ref = jax.block_until_ready(jax.jit(net_reference)(x, params))
    max_err = float(jnp.max(jnp.abs(out - ref)))
    assert max_err < 5e-2, f"mismatch vs reference: max abs err = {max_err}"

    print("KERNEL_OK")
</pallas_src>

<mosaic_0001>
module attributes {stable_mosaic.version = 11 : i64} {
  func.func @_net_kernel(%arg0: i32, %arg1: memref<1x8x1280xf32, #tpu.memory_space<vmem>>, %arg2: memref<8x72xf32, #tpu.memory_space<vmem>>, %arg3: memref<8x1xf32, #tpu.memory_space<vmem>>, %arg4: memref<16x72xf32, #tpu.memory_space<vmem>>, %arg5: memref<16x1xf32, #tpu.memory_space<vmem>>, %arg6: memref<8x144xf32, #tpu.memory_space<vmem>>, %arg7: memref<8x1xf32, #tpu.memory_space<vmem>>, %arg8: memref<1280x16xf32, #tpu.memory_space<vmem>>, %arg9: memref<16x1024xf32, #tpu.memory_space<vmem>>, %arg10: memref<1x8x1024xf32, #tpu.memory_space<vmem>>) attributes {dimension_semantics = [#tpu.dimension_semantics<parallel>], iteration_bounds = array<i64: 2>, scalar_prefetch = 0 : i64, scratch_operands = 0 : i64, tpu.core_type = #tpu.core_type<tc>, window_params = [{transform_indices = @transform_0, window_bounds = array<i64: 1, 8, 1280>}, {pipeline_mode = #tpu.pipeline_mode<synchronous>, transform_indices = @transform_1, window_bounds = array<i64: 8, 72>}, {pipeline_mode = #tpu.pipeline_mode<synchronous>, transform_indices = @transform_2, window_bounds = array<i64: 8, 1>}, {pipeline_mode = #tpu.pipeline_mode<synchronous>, transform_indices = @transform_3, window_bounds = array<i64: 16, 72>}, {pipeline_mode = #tpu.pipeline_mode<synchronous>, transform_indices = @transform_4, window_bounds = array<i64: 16, 1>}, {pipeline_mode = #tpu.pipeline_mode<synchronous>, transform_indices = @transform_5, window_bounds = array<i64: 8, 144>}, {pipeline_mode = #tpu.pipeline_mode<synchronous>, transform_indices = @transform_6, window_bounds = array<i64: 8, 1>}, {pipeline_mode = #tpu.pipeline_mode<synchronous>, transform_indices = @transform_7, window_bounds = array<i64: 1280, 16>}, {pipeline_mode = #tpu.pipeline_mode<synchronous>, transform_indices = @transform_8, window_bounds = array<i64: 16, 1024>}, {transform_indices = @transform_9, window_bounds = array<i64: 1, 8, 1024>}]} {
    %c0 = arith.constant 0 : index
    %c0_0 = arith.constant 0 : index
    %c0_1 = arith.constant 0 : index
    %0 = vector.load %arg1[%c0, %c0_0, %c0_1] : memref<1x8x1280xf32, #tpu.memory_space<vmem>>, vector<1x8x1280xf32>
    %1 = vector.shape_cast %0 : vector<1x8x1280xf32> to vector<8x1280xf32>
    %c0_2 = arith.constant 0 : index
    %c0_3 = arith.constant 0 : index
    %2 = vector.load %arg2[%c0_2, %c0_3] : memref<8x72xf32, #tpu.memory_space<vmem>>, vector<8x72xf32>
    %c0_4 = arith.constant 0 : index
    %c0_5 = arith.constant 0 : index
    %3 = vector.load %arg3[%c0_4, %c0_5] : memref<8x1xf32, #tpu.memory_space<vmem>>, vector<8x1xf32>
    %cst = arith.constant 0.000000e+00 : f32
    %4 = vector.broadcast %cst : f32 to vector<8x128xf32>
    %5 = tpu.concatenate %1, %4 in 1 : vector<8x1280xf32>, vector<8x128xf32> -> vector<8x1408xf32>
    %6 = vector.extract_strided_slice %5 {offsets = [0, 0], sizes = [8, 1280], strides = [1, 1]} : vector<8x1408xf32> to vector<8x1280xf32>
    %7 = vector.extract_strided_slice %5 {offsets = [0, 1], sizes = [8, 1280], strides = [1, 1]} : vector<8x1408xf32> to vector<8x1280xf32>
    %8 = vector.extract_strided_slice %5 {offsets = [0, 2], sizes = [8, 1280], strides = [1, 1]} : vector<8x1408xf32> to vector<8x1280xf32>
    %9 = vector.extract_strided_slice %5 {offsets = [0, 34], sizes = [8, 1280], strides = [1, 1]} : vector<8x1408xf32> to vector<8x1280xf32>
    %10 = vector.extract_strided_slice %5 {offsets = [0, 35], sizes = [8, 1280], strides = [1, 1]} : vector<8x1408xf32> to vector<8x1280xf32>
    %11 = vector.extract_strided_slice %5 {offsets = [0, 36], sizes = [8, 1280], strides = [1, 1]} : vector<8x1408xf32> to vector<8x1280xf32>
    %12 = vector.extract_strided_slice %5 {offsets = [0, 68], sizes = [8, 1280], strides = [1, 1]} : vector<8x1408xf32> to vector<8x1280xf32>
    %13 = vector.extract_strided_slice %5 {offsets = [0, 69], sizes = [8, 1280], strides = [1, 1]} : vector<8x1408xf32> to vector<8x1280xf32>
    %14 = vector.extract_strided_slice %5 {offsets = [0, 70], sizes = [8, 1280], strides = [1, 1]} : vector<8x1408xf32> to vector<8x1280xf32>
    %15 = tpu.concatenate %6, %7, %8, %9, %10, %11, %12, %13, %14 in 0 : vector<8x1280xf32>, vector<8x1280xf32>, vector<8x1280xf32>, vector<8x1280xf32>, vector<8x1280xf32>, vector<8x1280xf32>, vector<8x1280xf32>, vector<8x1280xf32>, vector<8x1280xf32> -> vector<72x1280xf32>
    %cst_6 = arith.constant dense<0.000000e+00> : vector<8x1280xf32>
    %16 = tpu.matmul %2, %15, %cst_6 {dimension_numbers = #tpu.dot_dimension_numbers<[1], [0], [0], [1], [0, 0, 1, 1], [], []>} : vector<8x72xf32>, vector<72x1280xf32>, vector<8x1280xf32> -> vector<8x1280xf32>
    %17 = vector.broadcast %3 : vector<8x1xf32> to vector<8x1280xf32>
    %18 = arith.addf %16, %17 : vector<8x1280xf32>
    %cst_7 = arith.constant 0.000000e+00 : f32
    %19 = vector.broadcast %cst_7 : f32 to vector<8x1280xf32>
    %20 = arith.maximumf %18, %19 : vector<8x1280xf32>
    %cst_8 = arith.constant 0.000000e+00 : f32
    %21 = vector.broadcast %cst_8 : f32 to vector<8x128xf32>
    %22 = tpu.concatenate %20, %21 in 1 : vector<8x1280xf32>, vector<8x128xf32> -> vector<8x1408xf32>
    %23 = vector.extract_strided_slice %22 {offsets = [0, 1], sizes = [8, 1280], strides = [1, 1]} : vector<8x1408xf32> to vector<8x1280xf32>
    %24 = arith.maximumf %20, %23 : vector<8x1280xf32>
    %25 = vector.extract_strided_slice %22 {offsets = [0, 34], sizes = [8, 1280], strides = [1, 1]} : vector<8x1408xf32> to vector<8x1280xf32>
    %26 = arith.maximumf %24, %25 : vector<8x1280xf32>
    %27 = vector.extract_strided_slice %22 {offsets = [0, 35], sizes = [8, 1280], strides = [1, 1]} : vector<8x1408xf32> to vector<8x1280xf32>
    %28 = arith.maximumf %26, %27 : vector<8x1280xf32>
    %c0_9 = arith.constant 0 : index
    %c0_10 = arith.constant 0 : index
    %29 = vector.load %arg4[%c0_9, %c0_10] : memref<16x72xf32, #tpu.memory_space<vmem>>, vector<16x72xf32>
    %c0_11 = arith.constant 0 : index
    %c0_12 = arith.constant 0 : index
    %30 = vector.load %arg5[%c0_11, %c0_12] : memref<16x1xf32, #tpu.memory_space<vmem>>, vector<16x1xf32>
    %cst_13 = arith.constant 0.000000e+00 : f32
    %31 = vector.broadcast %cst_13 : f32 to vector<8x128xf32>
    %32 = tpu.concatenate %28, %31 in 1 : vector<8x1280xf32>, vector<8x128xf32> -> vector<8x1408xf32>
    %33 = vector.extract_strided_slice %32 {offsets = [0, 0], sizes = [8, 1280], strides = [1, 1]} : vector<8x1408xf32> to vector<8x1280xf32>
    %34 = vector.extract_strided_slice %32 {offsets = [0, 1], sizes = [8, 1280], strides = [1, 1]} : vector<8x1408xf32> to vector<8x1280xf32>
    %35 = vector.extract_strided_slice %32 {offsets = [0, 2], sizes = [8, 1280], strides = [1, 1]} : vector<8x1408xf32> to vector<8x1280xf32>
    %36 = vector.extract_strided_slice %32 {offsets = [0, 34], sizes = [8, 1280], strides = [1, 1]} : vector<8x1408xf32> to vector<8x1280xf32>
    %37 = vector.extract_strided_slice %32 {offsets = [0, 35], sizes = [8, 1280], strides = [1, 1]} : vector<8x1408xf32> to vector<8x1280xf32>
    %38 = vector.extract_strided_slice %32 {offsets = [0, 36], sizes = [8, 1280], strides = [1, 1]} : vector<8x1408xf32> to vector<8x1280xf32>
    %39 = vector.extract_strided_slice %32 {offsets = [0, 68], sizes = [8, 1280], strides = [1, 1]} : vector<8x1408xf32> to vector<8x1280xf32>
    %40 = vector.extract_strided_slice %32 {offsets = [0, 69], sizes = [8, 1280], strides = [1, 1]} : vector<8x1408xf32> to vector<8x1280xf32>
    %41 = vector.extract_strided_slice %32 {offsets = [0, 70], sizes = [8, 1280], strides = [1, 1]} : vector<8x1408xf32> to vector<8x1280xf32>
    %42 = tpu.concatenate %33, %34, %35, %36, %37, %38, %39, %40, %41 in 0 : vector<8x1280xf32>, vector<8x1280xf32>, vector<8x1280xf32>, vector<8x1280xf32>, vector<8x1280xf32>, vector<8x1280xf32>, vector<8x1280xf32>, vector<8x1280xf32>, vector<8x1280xf32> -> vector<72x1280xf32>
    %cst_14 = arith.constant dense<0.000000e+00> : vector<16x1280xf32>
    %43 = tpu.matmul %29, %42, %cst_14 {dimension_numbers = #tpu.dot_dimension_numbers<[1], [0], [0], [1], [0, 0, 1, 1], [], []>} : vector<16x72xf32>, vector<72x1280xf32>, vector<16x1280xf32> -> vector<16x1280xf32>
    %44 = vector.broadcast %30 : vector<16x1xf32> to vector<16x1280xf32>
    %45 = arith.addf %43, %44 : vector<16x1280xf32>
    %cst_15 = arith.constant 0.000000e+00 : f32
    %46 = vector.broadcast %cst_15 : f32 to vector<16x1280xf32>
    %47 = arith.maximumf %45, %46 : vector<16x1280xf32>
    %cst_16 = arith.constant 0.000000e+00 : f32
    %48 = vector.broadcast %cst_16 : f32 to vector<16x128xf32>
    %49 = tpu.concatenate %47, %48 in 1 : vector<16x1280xf32>, vector<16x128xf32> -> vector<16x1408xf32>
    %50 = vector.extract_strided_slice %49 {offsets = [0, 1], sizes = [16, 1280], strides = [1, 1]} : vector<16x1408xf32> to vector<16x1280xf32>
    %51 = arith.maximumf %47, %50 : vector<16x1280xf32>
    %52 = vector.extract_strided_slice %49 {offsets = [0, 34], sizes = [16, 1280], strides = [1, 1]} : vector<16x1408xf32> to vector<16x1280xf32>
    %53 = arith.maximumf %51, %52 : vector<16x1280xf32>
    %54 = vector.extract_strided_slice %49 {offsets = [0, 35], sizes = [16, 1280], strides = [1, 1]} : vector<16x1408xf32> to vector<16x1280xf32>
    %55 = arith.maximumf %53, %54 : vector<16x1280xf32>
    %c0_17 = arith.constant 0 : index
    %c0_18 = arith.constant 0 : index
    %56 = vector.load %arg6[%c0_17, %c0_18] : memref<8x144xf32, #tpu.memory_space<vmem>>, vector<8x144xf32>
    %c0_19 = arith.constant 0 : index
    %c0_20 = arith.constant 0 : index
    %57 = vector.load %arg7[%c0_19, %c0_20] : memref<8x1xf32, #tpu.memory_space<vmem>>, vector<8x1xf32>
    %cst_21 = arith.constant 0.000000e+00 : f32
    %58 = vector.broadcast %cst_21 : f32 to vector<16x256xf32>
    %59 = tpu.concatenate %55, %58 in 1 : vector<16x1280xf32>, vector<16x256xf32> -> vector<16x1536xf32>
    %60 = vector.extract_strided_slice %59 {offsets = [0, 0], sizes = [16, 1280], strides = [1, 1]} : vector<16x1536xf32> to vector<16x1280xf32>
    %61 = vector.extract_strided_slice %59 {offsets = [0, 2], sizes = [16, 1280], strides = [1, 1]} : vector<16x1536xf32> to vector<16x1280xf32>
    %62 = vector.extract_strided_slice %59 {offsets = [0, 4], sizes = [16, 1280], strides = [1, 1]} : vector<16x1536xf32> to vector<16x1280xf32>
    %63 = vector.extract_strided_slice %59 {offsets = [0, 68], sizes = [16, 1280], strides = [1, 1]} : vector<16x1536xf32> to vector<16x1280xf32>
    %64 = vector.extract_strided_slice %59 {offsets = [0, 70], sizes = [16, 1280], strides = [1, 1]} : vector<16x1536xf32> to vector<16x1280xf32>
    %65 = vector.extract_strided_slice %59 {offsets = [0, 72], sizes = [16, 1280], strides = [1, 1]} : vector<16x1536xf32> to vector<16x1280xf32>
    %66 = vector.extract_strided_slice %59 {offsets = [0, 136], sizes = [16, 1280], strides = [1, 1]} : vector<16x1536xf32> to vector<16x1280xf32>
    %67 = vector.extract_strided_slice %59 {offsets = [0, 138], sizes = [16, 1280], strides = [1, 1]} : vector<16x1536xf32> to vector<16x1280xf32>
    %68 = vector.extract_strided_slice %59 {offsets = [0, 140], sizes = [16, 1280], strides = [1, 1]} : vector<16x1536xf32> to vector<16x1280xf32>
    %69 = tpu.concatenate %60, %61, %62, %63, %64, %65, %66, %67, %68 in 0 : vector<16x1280xf32>, vector<16x1280xf32>, vector<16x1280xf32>, vector<16x1280xf32>, vector<16x1280xf32>, vector<16x1280xf32>, vector<16x1280xf32>, vector<16x1280xf32>, vector<16x1280xf32> -> vector<144x1280xf32>
    %cst_22 = arith.constant dense<0.000000e+00> : vector<8x1280xf32>
    %70 = tpu.matmul %56, %69, %cst_22 {dimension_numbers = #tpu.dot_dimension_numbers<[1], [0], [0], [1], [0, 0, 1, 1], [], []>} : vector<8x144xf32>, vector<144x1280xf32>, vector<8x1280xf32> -> vector<8x1280xf32>
    %71 = vector.broadcast %57 : vector<8x1xf32> to vector<8x1280xf32>
    %72 = arith.addf %70, %71 : vector<8x1280xf32>
    %cst_23 = arith.constant 0.000000e+00 : f32
    %73 = vector.broadcast %cst_23 : f32 to vector<8x1280xf32>
    %74 = arith.maximumf %72, %73 : vector<8x1280xf32>
    %cst_24 = arith.constant 0.000000e+00 : f32
    %75 = vector.broadcast %cst_24 : f32 to vector<8x128xf32>
    %76 = tpu.concatenate %74, %75 in 1 : vector<8x1280xf32>, vector<8x128xf32> -> vector<8x1408xf32>
    %77 = vector.extract_strided_slice %76 {offsets = [0, 2], sizes = [8, 1280], strides = [1, 1]} : vector<8x1408xf32> to vector<8x1280xf32>
    %78 = arith.maximumf %74, %77 : vector<8x1280xf32>
    %79 = vector.extract_strided_slice %76 {offsets = [0, 68], sizes = [8, 1280], strides = [1, 1]} : vector<8x1408xf32> to vector<8x1280xf32>
    %80 = arith.maximumf %78, %79 : vector<8x1280xf32>
    %81 = vector.extract_strided_slice %76 {offsets = [0, 70], sizes = [8, 1280], strides = [1, 1]} : vector<8x1408xf32> to vector<8x1280xf32>
    %82 = arith.maximumf %80, %81 : vector<8x1280xf32>
    %c0_25 = arith.constant 0 : index
    %c0_26 = arith.constant 0 : index
    %83 = vector.load %arg8[%c0_25, %c0_26] : memref<1280x16xf32, #tpu.memory_space<vmem>>, vector<1280x16xf32>
    %cst_27 = arith.constant dense<0.000000e+00> : vector<8x16xf32>
    %84 = tpu.matmul %82, %83, %cst_27 {dimension_numbers = #tpu.dot_dimension_numbers<[1], [0], [0], [1], [0, 0, 1, 1], [], []>} : vector<8x1280xf32>, vector<1280x16xf32>, vector<8x16xf32> -> vector<8x16xf32>
    %c0_28 = arith.constant 0 : index
    %c0_29 = arith.constant 0 : index
    %85 = vector.load %arg9[%c0_28, %c0_29] : memref<16x1024xf32, #tpu.memory_space<vmem>>, vector<16x1024xf32>
    %cst_30 = arith.constant dense<0.000000e+00> : vector<8x1024xf32>
    %86 = tpu.matmul %84, %85, %cst_30 {dimension_numbers = #tpu.dot_dimension_numbers<[1], [0], [0], [1], [0, 0, 1, 1], [], []>} : vector<8x16xf32>, vector<16x1024xf32>, vector<8x1024xf32> -> vector<8x1024xf32>
    %c0_31 = arith.constant 0 : index
    %c0_32 = arith.constant 0 : index
    %c0_33 = arith.constant 0 : index
    %87 = vector.load %arg10[%c0_31, %c0_32, %c0_33] : memref<1x8x1024xf32, #tpu.memory_space<vmem>>, vector<1x8x1024xf32>
    %88 = vector.shape_cast %87 : vector<1x8x1024xf32> to vector<8x1024xf32>
    %89 = vector.shape_cast %86 : vector<8x1024xf32> to vector<1x8x1024xf32>
    tpu.vector_store %arg10[%c0_31, %c0_32, %c0_33], %89 {strides = array<i32>} : memref<1x8x1024xf32, #tpu.memory_space<vmem>>, vector<1x8x1024xf32>,
    return
  }
  func.func @transform_0(%arg0: i32) -> (i32, i32, i32) {
    %c0_i32 = arith.constant 0 : i32
    %c0_i32_0 = arith.constant 0 : i32
    %c0_i32_1 = arith.constant 0 : i32
    return %arg0, %c0_i32, %c0_i32_0 : i32, i32, i32
  }
  func.func @transform_1(%arg0: i32) -> (i32, i32) {
    %c0_i32 = arith.constant 0 : i32
    %c0_i32_0 = arith.constant 0 : i32
    %c0_i32_1 = arith.constant 0 : i32
    return %c0_i32, %c0_i32_0 : i32, i32
  }
  func.func @transform_2(%arg0: i32) -> (i32, i32) {
    %c0_i32 = arith.constant 0 : i32
    %c0_i32_0 = arith.constant 0 : i32
    %c0_i32_1 = arith.constant 0 : i32
    return %c0_i32, %c0_i32_0 : i32, i32
  }
  func.func @transform_3(%arg0: i32) -> (i32, i32) {
    %c0_i32 = arith.constant 0 : i32
    %c0_i32_0 = arith.constant 0 : i32
    %c0_i32_1 = arith.constant 0 : i32
    return %c0_i32, %c0_i32_0 : i32, i32
  }
  func.func @transform_4(%arg0: i32) -> (i32, i32) {
    %c0_i32 = arith.constant 0 : i32
    %c0_i32_0 = arith.constant 0 : i32
    %c0_i32_1 = arith.constant 0 : i32
    return %c0_i32, %c0_i32_0 : i32, i32
  }
  func.func @transform_5(%arg0: i32) -> (i32, i32) {
    %c0_i32 = arith.constant 0 : i32
    %c0_i32_0 = arith.constant 0 : i32
    %c0_i32_1 = arith.constant 0 : i32
    return %c0_i32, %c0_i32_0 : i32, i32
  }
  func.func @transform_6(%arg0: i32) -> (i32, i32) {
    %c0_i32 = arith.constant 0 : i32
    %c0_i32_0 = arith.constant 0 : i32
    %c0_i32_1 = arith.constant 0 : i32
    return %c0_i32, %c0_i32_0 : i32, i32
  }
  func.func @transform_7(%arg0: i32) -> (i32, i32) {
    %c0_i32 = arith.constant 0 : i32
    %c0_i32_0 = arith.constant 0 : i32
    %c0_i32_1 = arith.constant 0 : i32
    return %c0_i32, %c0_i32_0 : i32, i32
  }
  func.func @transform_8(%arg0: i32) -> (i32, i32) {
    %c0_i32 = arith.constant 0 : i32
    %c0_i32_0 = arith.constant 0 : i32
    %c0_i32_1 = arith.constant 0 : i32
    return %c0_i32, %c0_i32_0 : i32, i32
  }
  func.func @transform_9(%arg0: i32) -> (i32, i32, i32) {
    %c0_i32 = arith.constant 0 : i32
    %c0_i32_0 = arith.constant 0 : i32
    %c0_i32_1 = arith.constant 0 : i32
    return %arg0, %c0_i32, %c0_i32_0 : i32, i32, i32
  }
}

</mosaic_0001>

<bundles_post_ra>
// kernel: net_forward.1
= control target key start
LH: loop header
LB: loop body
LE: loop exit
PB: predicated region body
PF: predicated region fallthrough
CT: control target
= control target key end

     0   :  { %s5081_s30 = smov 0   ;;  %s8282_s0 = inlined_call_operand.vmem [shape: f32[2,8,1280], index: 0, kind: input, shape index: {}]   ;;  %s8283_s1 = inlined_call_operand.vmem [shape: f32[8,72], index: 1, kind: input, shape index: {}]   ;;  %s8284_s2 = inlined_call_operand.vmem [shape: f32[8,1], index: 2, kind: input, shape index: {}]   ;;  %s8285_s3 = inlined_call_operand.vmem [shape: f32[16,72], index: 3, kind: input, shape index: {}]   ;;  %s8286_s4 = inlined_call_operand.vmem [shape: f32[16,1], index: 4, kind: input, shape index: {}]   ;;  %s8287_s5 = inlined_call_operand.vmem [shape: f32[8,144], index: 5, kind: input, shape index: {}]   ;;  %s8288_s6 = inlined_call_operand.vmem [shape: f32[8,1], index: 6, kind: input, shape index: {}]   ;;  %s8289_s7 = inlined_call_operand.vmem [shape: f32[1280,16], index: 7, kind: input, shape index: {}]   ;;  %s8290_s8 = inlined_call_operand.vmem [shape: f32[16,1024], index: 8, kind: input, shape index: {}]   ;;  %s8291_s9 = inlined_call_operand.vmem [shape: f32[2,8,1024], index: 9, kind: output, shape index: {}]  }
   0x1 LB: > { %s3837_s10 = sadd.s32 4294967295, %s5014_s30   ;;  %p3841_p0 = scmp.ge.s32.totalorder %s5014_s30, 1  ;;  %s5014_s30 = sphi %s5081_s30, %s19_s30  }
   0x2   : > { %p287_p1 = scmp.lt.s32.totalorder %s5014_s30, 3 }
   0x4   : > { %p288_p2 = pnand %p3841_p0, %p287_p1 }
   0x6   : > { %291 = sbr.rel (%p288_p2) target bundleno = 1919 (0x77f), region = 56 }
   0xb   : > { %p323_p3 = scmp.lt.s32.totalorder %s3837_s10, 1  ;;  %v8292_v0 = vmov 0.0   ;;  %s5017_s11 = smov 127   ;;  %vm550_vm0 = vcmask 752640   ;;  %vm593_vm1 = vcmask 490496   ;;  %vm679_vm2 = vcmask 474112  }
   0xc   : > { %376 = vrot.lane.b32.xlu2 %v8292_v0, %s5017_s11  ;;  %s5018_s16 = smov 126   ;;  %s5019_s17 = smov 94   ;;  %vm636_vm3 = vcmask 482304   ;;  %vm507_vm4 = vcmask 760832   ;;  %vm464_vm5 = vcmask 769024   ;;  %v5025_v63 = vmov 0  }
   0xd   : > { %s8500_s10 = smov (!%p323_p3, %s3837_s10), 1  ;;  %s5020_s18 = smov 93   ;;  %4120 = vset.pattern.permute.xlu0 %v5025_v63  ;;  %4391 = vset.pattern.permute.xlu1 %v5025_v63  ;;  %vm421_vm6 = vcmask 1031168   ;;  %vm378_vm7 = vcmask 1039360   ;;  %vm705_vm8 = vcmask 588800   ;;  %vm2542_vm9 = vcmask 965632  }
   0xe   : > { %s3896_s12 = smul.u32 80, %s8500_s10  ;;  %s5021_s19 = smov 92   ;;  %vm2618_vm10 = vcmask 949248   ;;  %vm2466_vm11 = vcmask 982016   ;;  %vm2387_vm12 = vcmask 457728   ;;  %vm2144_vm13 = vcmask 1014784  }
   0xf   : > { %s5022_s20 = smov 60   ;;  %s5023_s21 = smov 59   ;;  %vm2661_vm14 = vcmask 130048  }
  0x10   : > { %s327_s15 = scalar_lea.vmem %s8282_s0, %s3896_s12  ;;  %s5024_s22 = smov 58  }
  0x11   : > { %v5097_v1 = vld [vmem:[%s327_s15 + $0x20] sm:$0xff]  ;;  %v5099_v2 = vld [vmem:[%s327_s15 + $0x28] sm:$0xff]  ;;  %v5118_v9 = vld [vmem:[%s327_s15 + $0x30] sm:$0xff]  ;;  %s5027_s23 = smov 120   ;;  %s3895_s14 = sshll.u32 %s8500_s10, 6 }
  0x12   : > { %v5101_v3 = vld [vmem:[%s327_s15] sm:$0xff]  ;;  %v3930_v4 = vpack.i.bf16 %v5099_v2, %v5097_v1  ;;  %v5105_v5 = vld [vmem:[%s327_s15 + $0x8] sm:$0xff]  ;;  %v5120_v10 = vld [vmem:[%s327_s15 + $0x38] sm:$0xff] }
  0x13   : > { %v5109_v6 = vpack.i.bf16 %v5105_v5, %v5101_v3  ;;  %v5112_v7 = vld [vmem:[%s327_s15 + $0x40] sm:$0xff]  ;;  %v5114_v8 = vld [vmem:[%s327_s15 + $0x48] sm:$0xff]  ;;  %v5124_v12 = vld [vmem:[%s327_s15 + $0x10] sm:$0xff]  ;;  %v3935_v14 = vpack.i.bf16 %v5120_v10, %v5118_v9 }
  0x14   : > { %3931 = vrot.lane.b32.xlu1 %v3930_v4, %s5017_s11  ;;  %8372 = vst [vmem:[#allocation2_spill] sm:$0xff] %v5112_v7  ;;  %v3940_v11 = vpack.i.bf16 %v5114_v8, %v5112_v7  ;;  %v5126_v13 = vld [vmem:[%s327_s15 + $0x18] sm:$0xff] }
  0x15   : > { %8373 = vst [vmem:[#allocation3_spill] sm:$0xff] %v5114_v8  ;;  %3921 = vrot.lane.b32.xlu0 %v5109_v6, %s5017_s11  ;;  %v3925_v15 = vpack.i.bf16 %v5126_v13, %v5124_v12 }
  0x16   : > { %3941 = vrot.lane.b32.xlu2 %v3940_v11, %s5017_s11 }
  0x1c   : > { %3936 = vrot.lane.b32.xlu1 %v3935_v14, %s5017_s11 }
  0x1d   : > { %3926 = vrot.lane.b32.xlu0 %v3925_v15, %s5017_s11 }
  0x1e   : > { %3956 = vrot.lane.b32.xlu2 %v3930_v4, %s5018_s16 }
  0x24   : > { %3951 = vrot.lane.b32.xlu1 %v3925_v15, %s5018_s16 }
  0x25   : > { %3946 = vrot.lane.b32.xlu0 %v5109_v6, %s5018_s16 }
  0x26   : > { %419 = vrot.lane.b32.xlu2 %v8292_v0, %s5018_s16 }
  0x2c   : > { %3966 = vrot.lane.b32.xlu1 %v3940_v11, %s5018_s16 }
  0x2d   : > { %3961 = vrot.lane.b32.xlu0 %v3935_v14, %s5018_s16 }
  0x2e   : > { %3981 = vrot.lane.b32.xlu2 %v3930_v4, %s5019_s17 }
  0x34   : > { %3976 = vrot.lane.b32.xlu1 %v3925_v15, %s5019_s17 }
  0x35   : > { %3971 = vrot.lane.b32.xlu0 %v5109_v6, %s5019_s17 }
  0x36   : > { %462 = vrot.lane.b32.xlu2 %v8292_v0, %s5019_s17 }
  0x3c   : > { %3991 = vrot.lane.b32.xlu1 %v3940_v11, %s5019_s17 }
  0x3d   : > { %3986 = vrot.lane.b32.xlu0 %v3935_v14, %s5019_s17 }
  0x3e   : > { %4006 = vrot.lane.b32.xlu2 %v3930_v4, %s5020_s18 }
  0x44   : > { %4001 = vrot.lane.b32.xlu1 %v3925_v15, %s5020_s18 }
  0x45   : > { %3996 = vrot.lane.b32.xlu0 %v5109_v6, %s5020_s18 }
  0x46   : > { %505 = vrot.lane.b32.xlu2 %v8292_v0, %s5020_s18 }
  0x4c   : > { %4016 = vrot.lane.b32.xlu1 %v3940_v11, %s5020_s18 }
  0x4d   : > { %4011 = vrot.lane.b32.xlu0 %v3935_v14, %s5020_s18 }
  0x4e   : > { %4031 = vrot.lane.b32.xlu2 %v3930_v4, %s5021_s19 }
  0x54   : > { %4026 = vrot.lane.b32.xlu1 %v3925_v15, %s5021_s19 }
  0x55   : > { %4021 = vrot.lane.b32.xlu0 %v5109_v6, %s5021_s19 }
  0x56   : > { %548 = vrot.lane.b32.xlu2 %v8292_v0, %s5021_s19 }
  0x5c   : > { %4041 = vrot.lane.b32.xlu1 %v3940_v11, %s5021_s19 }
  0x5d   : > { %4036 = vrot.lane.b32.xlu0 %v3935_v14, %s5021_s19 }
  0x5e   : > { %4056 = vrot.lane.b32.xlu2 %v3930_v4, %s5022_s20 }
  0x64   : > { %4051 = vrot.lane.b32.xlu1 %v3925_v15, %s5022_s20 }
  0x65   : > { %4046 = vrot.lane.b32.xlu0 %v5109_v6, %s5022_s20 }
  0x66   : > { %591 = vrot.lane.b32.xlu2 %v8292_v0, %s5022_s20  ;;  %v5173_v16 = vpop.permute.xlu2 %376 }
  0x67   : > { %8374 = vst [vmem:[#allocation4_spill] sm:$0xff] %v5173_v16 }
  0x6c   : > { %4066 = vrot.lane.b32.xlu1 %v3940_v11, %s5022_s20 }
  0x6d   : > { %4061 = vrot.lane.b32.xlu0 %v3935_v14, %s5022_s20 }
  0x6e   : > { %4081 = vrot.lane.b32.xlu2 %v3930_v4, %s5023_s21 }
  0x70   : > { %v5178_v17 = vpop.permute.xlu2 %3941 }
  0x74   : > { %4076 = vrot.lane.b32.xlu1 %v3925_v15, %s5023_s21 }
  0x75   : > { %4071 = vrot.lane.b32.xlu0 %v5109_v6, %s5023_s21 }
  0x76   : > { %634 = vrot.lane.b32.xlu2 %v8292_v0, %s5023_s21 }
  0x78   : > { %v5185_v18 = vpop.permute.xlu2 %3956 }
  0x7c   : > { %4091 = vrot.lane.b32.xlu1 %v3940_v11, %s5023_s21 }
  0x7d   : > { %4086 = vrot.lane.b32.xlu0 %v3935_v14, %s5023_s21 }
  0x7e   : > { %4106 = vrot.lane.b32.xlu2 %v3930_v4, %s5024_s22 }
  0x80   : > { %v5191_v19 = vpop.permute.xlu2 %419 }
  0x81   : > { %8375 = vst [vmem:[#allocation5_spill] sm:$0xff] %v5191_v19 }
  0x84   : > { %4101 = vrot.lane.b32.xlu1 %v3925_v15, %s5024_s22 }
  0x85   : > { %4096 = vrot.lane.b32.xlu0 %v5109_v6, %s5024_s22 }
  0x86   : > { %v5195_v20 = vpop.permute.xlu1 %3931  ;;  %677 = vrot.lane.b32.xlu2 %v8292_v0, %s5024_s22 }
  0x87   : > { %v5197_v21 = vpop.permute.xlu0 %3921 }
  0x88   : > { %v5205_v23 = vpop.permute.xlu2 %3981 }
  0x8c   : > { %4116 = vrot.lane.b32.xlu1 %v3940_v11, %s5024_s22 }
  0x8d   : > { %4111 = vrot.lane.b32.xlu0 %v3935_v14, %s5024_s22 }
  0x8e   : > { %v5203_v22 = vpop.permute.xlu1 %3936 }
  0x8f   : > { %v5207_v24 = vpop.permute.xlu0 %3926 }
  0x90   : > { %v5213_v27 = vpop.permute.xlu2 %462 }
  0x91   : > { %8376 = vst [vmem:[#allocation6_spill] sm:$0xff] %v5213_v27 }
  0x96   : > { %v5209_v25 = vpop.permute.xlu1 %3951 }
  0x97   : > { %v5211_v26 = vpop.permute.xlu0 %3946 }
  0x98   : > { %v5219_v30 = vpop.permute.xlu2 %4006 }
  0x9e   : > { %v5215_v28 = vpop.permute.xlu1 %3966 }
  0x9f   : > { %v5217_v29 = vpop.permute.xlu0 %3961 }
  0xa0   : > { %v5225_v33 = vpop.permute.xlu2 %505 }
  0xa1   : > { %8377 = vst [vmem:[#allocation7_spill] sm:$0xff] %v5225_v33 }
  0xa6   : > { %v5221_v31 = vpop.permute.xlu1 %3976 }
  0xa7   : > { %v5223_v32 = vpop.permute.xlu0 %3971 }
  0xa8   : > { %v5233_v37 = vpop.permute.xlu2 %4031 }
  0xae   : > { %v5227_v34 = vpop.permute.xlu1 %3991 }
  0xaf   : > { %v5229_v35 = vpop.permute.xlu0 %3986 }
  0xb0   : > { %v5241_v41 = vpop.permute.xlu2 %548 }
  0xb6   : > { %v5231_v36 = vpop.permute.xlu1 %4001 }
  0xb7   : > { %v5235_v38 = vpop.permute.xlu0 %3996 }
  0xb8   : > { %v5247_v44 = vpop.permute.xlu2 %4056 }
  0xbe   : > { %v5237_v39 = vpop.permute.xlu1 %4016 }
  0xbf   : > { %v5239_v40 = vpop.permute.xlu0 %4011 }
  0xc0   : > { %v5253_v47 = vpop.permute.xlu2 %591 }
  0xc1   : > { %8378 = vst [vmem:[#allocation8_spill] sm:$0xff] %v5253_v47 }
  0xc6   : > { %v5243_v42 = vpop.permute.xlu1 %4026 }
  0xc7   : > { %v5245_v43 = vpop.permute.xlu0 %4021  ;;  %v4029_v63 = vunpack.i.h.bf16 %v5243_v42 }
  0xc8   : > { %v5261_v51 = vpop.permute.xlu2 %4081 }
  0xce   : > { %v5249_v45 = vpop.permute.xlu1 %4041 }
  0xcf   : > { %v5251_v46 = vpop.permute.xlu0 %4036 }
  0xd0   : > { %v5265_v55 = vpop.permute.xlu2 %634 }
  0xd6   : > { %v5255_v48 = vpop.permute.xlu1 %4051 }
  0xd7   : > { %v5257_v49 = vpop.permute.xlu0 %4046  ;;  %v4054_v4 = vunpack.i.h.bf16 %v5255_v48  ;;  %v4053_v6 = vunpack.i.l.bf16 %v5255_v48  ;;  %v4028_v48 = vunpack.i.l.bf16 %v5243_v42  ;;  %v4004_v42 = vunpack.i.h.bf16 %v5231_v36 }
  0xd8   : > { %v5271_v58 = vpop.permute.xlu2 %4106 }
  0xd9   : > { %v8379_v19 = vunpack.i.l.bf16 %v5271_v58 }
  0xde   : > { %v5259_v50 = vpop.permute.xlu1 %4066 }
  0xdf   : > { %v5263_v52 = vpop.permute.xlu0 %4061 }
  0xe6   : > { %v4077_v53 = vpop.permute.xlu1 %4076 }
  0xe7   : > { %v4072_v54 = vpop.permute.xlu0 %4071  ;;  %v4079_v11 = vunpack.i.h.bf16 %v4077_v53  ;;  %v4078_v15 = vunpack.i.l.bf16 %v4077_v53 }
  0xe8   : > { %v4074_v61 = vunpack.i.h.bf16 %v4072_v54  ;;  %v4073_v8 = vunpack.i.l.bf16 %v4072_v54  ;;  %v4048_v54 = vunpack.i.l.bf16 %v5257_v49 }
  0xe9   : > { %v639_v33 = vsel %vm636_vm3, %v4078_v15, %v4079_v11 }
  0xee   : > { %v5267_v56 = vpop.permute.xlu1 %4091 }
  0xef   : > { %v5269_v57 = vpop.permute.xlu0 %4086 }
  0xf6   : > { %v4102_v14 = vpop.permute.xlu1 %4101 }
  0xf7   : > { %v4104_v0 = vunpack.i.h.bf16 %v4102_v14  ;;  %v4103_v59 = vunpack.i.l.bf16 %v4102_v14  ;;  %v4097_v60 = vpop.permute.xlu0 %4096  ;;  %v4049_v14 = vunpack.i.h.bf16 %v5257_v49  ;;  %v4024_v49 = vunpack.i.h.bf16 %v5245_v43 }
  0xf8   : > { %v4099_v7 = vunpack.i.h.bf16 %v4097_v60  ;;  %v4098_v62 = vunpack.i.l.bf16 %v4097_v60 }
  0xf9   : > { %v682_v16 = vsel %vm679_vm2, %v4103_v59, %v4104_v0  ;;  %v683_v53 = vsel %vm679_vm2, %v4104_v0, %v8379_v19  ;;  %v8380_v0 = vunpack.i.l.bf16 %v5261_v51 }
  0xfa   : > { %v680_v60 = vsel %vm679_vm2, %v4098_v62, %v4099_v7  ;;  %v681_v27 = vsel %vm679_vm2, %v4099_v7, %v4103_v59  ;;  %756 = vmatpush.msra.mxu2 %v682_v16  ;;  %776 = vmatpush.msra.mxu3 %v683_v53  ;;  %v4023_v62 = vunpack.i.l.bf16 %v5245_v43  ;;  %v637_v7 = vsel %vm636_vm3, %v4073_v8, %v4074_v61 }
  0xfb   : > { %716 = vmatpush.msra.mxu0 %v680_v60  ;;  %736 = vmatpush.msra.mxu1 %v681_v27  ;;  %v640_v19 = vsel %vm636_vm3, %v4079_v11, %v8380_v0  ;;  %v638_v16 = vsel %vm636_vm3, %v4074_v61, %v4078_v15  ;;  %v4003_v27 = vunpack.i.l.bf16 %v5231_v36  ;;  %v596_v59 = vsel %vm593_vm1, %v4053_v6, %v4054_v4 }
  0xfc   : > { %757 = vmatpush.msra.mxu2 %v639_v33  ;;  %777 = vmatpush.msra.mxu3 %v640_v19  ;;  %v8381_v11 = vunpack.i.l.bf16 %v5247_v44  ;;  %v3999_v43 = vunpack.i.h.bf16 %v5235_v38  ;;  %v3998_v8 = vunpack.i.l.bf16 %v5235_v38  ;;  %v594_v61 = vsel %vm593_vm1, %v4048_v54, %v4049_v14 }
  0xfd   : > { %717 = vmatpush.msra.mxu0 %v637_v7  ;;  %737 = vmatpush.msra.mxu1 %v638_v16  ;;  %v595_v33 = vsel %vm593_vm1, %v4049_v14, %v4053_v6  ;;  %v3979_v36 = vunpack.i.h.bf16 %v5221_v31  ;;  %v3978_v15 = vunpack.i.l.bf16 %v5221_v31  ;;  %v553_v60 = vsel %vm550_vm0, %v4028_v48, %v4029_v63 }
  0xfe   : > { %v597_v53 = vsel %vm593_vm1, %v4054_v4, %v8381_v11  ;;  %758 = vmatpush.msra.mxu2 %v596_v59  ;;  %v8382_v4 = vunpack.i.l.bf16 %v5233_v37  ;;  %v3974_v38 = vunpack.i.h.bf16 %v5223_v32  ;;  %v3973_v54 = vunpack.i.l.bf16 %v5223_v32 }
  0xff   : > { %778 = vmatpush.msra.mxu3 %v597_v53  ;;  %718 = vmatpush.msra.mxu0 %v594_v61  ;;  %v551_v6 = vsel %vm550_vm0, %v4023_v62, %v4024_v49  ;;  %v552_v14 = vsel %vm550_vm0, %v4024_v49, %v4028_v48  ;;  %v3954_v31 = vunpack.i.h.bf16 %v5209_v25  ;;  %v3953_v19 = vunpack.i.l.bf16 %v5209_v25 }
 0x100   : > { %738 = vmatpush.msra.mxu1 %v595_v33  ;;  %v554_v0 = vsel %vm550_vm0, %v4029_v63, %v8382_v4  ;;  %759 = vmatpush.msra.mxu2 %v553_v60  ;;  %v510_v7 = vsel %vm507_vm4, %v4003_v27, %v4004_v42  ;;  %v8383_v63 = vunpack.i.l.bf16 %v5219_v30  ;;  %v3949_v32 = vunpack.i.h.bf16 %v5211_v26  ;;  %v5345_v60 = vpop.permute.xlu1 %4116 }
 0x101   : > { %779 = vmatpush.msra.mxu3 %v554_v0  ;;  %719 = vmatpush.msra.mxu0 %v551_v6  ;;  %v3948_v59 = vunpack.i.l.bf16 %v5211_v26  ;;  %v508_v62 = vsel %vm507_vm4, %v3998_v8, %v3999_v43  ;;  %v509_v48 = vsel %vm507_vm4, %v3999_v43, %v4003_v27  ;;  %v3929_v25 = vunpack.i.h.bf16 %v5207_v24 }
 0x102   : > { %739 = vmatpush.msra.mxu1 %v552_v14  ;;  %v511_v16 = vsel %vm507_vm4, %v4004_v42, %v8383_v63  ;;  %760 = vmatpush.msra.mxu2 %v510_v7  ;;  %v3928_v49 = vunpack.i.l.bf16 %v5207_v24  ;;  %v467_v11 = vsel %vm464_vm5, %v3978_v15, %v3979_v36  ;;  %v8384_v42 = vunpack.i.l.bf16 %v5205_v23  ;;  %v5360_v63 = vld [vmem:[%s8283_s1] sm:$0xff] }
 0x103   : > { %780 = vmatpush.msra.mxu3 %v511_v16  ;;  %720 = vmatpush.msra.mxu0 %v508_v62  ;;  %v3924_v26 = vunpack.i.h.bf16 %v5197_v21  ;;  %v3923_v8 = vunpack.i.l.bf16 %v5197_v21  ;;  %v465_v27 = vsel %vm464_vm5, %v3973_v54, %v3974_v38  ;;  %v466_v43 = vsel %vm464_vm5, %v3974_v38, %v3978_v15  ;;  %v4112_v21 = vpop.permute.xlu0 %4111 }
 0x104   : > { %740 = vmatpush.msra.mxu1 %v509_v48  ;;  %v468_v53 = vsel %vm464_vm5, %v3979_v36, %v8384_v42  ;;  %761 = vmatpush.msra.mxu2 %v467_v11  ;;  %v3933_v24 = vunpack.i.l.bf16 %v5195_v20  ;;  %v424_v61 = vsel %vm421_vm6, %v3953_v19, %v3954_v31  ;;  %v8385_v33 = vunpack.i.l.bf16 %v5185_v18 }
 0x105   : > { %781 = vmatpush.msra.mxu3 %v468_v53  ;;  %721 = vmatpush.msra.mxu0 %v465_v27  ;;  %v422_v4 = vsel %vm421_vm6, %v3948_v59, %v3949_v32  ;;  %v423_v15 = vsel %vm421_vm6, %v3949_v32, %v3953_v19  ;;  %v381_v0 = vsel %vm378_vm7, %v3928_v49, %v3929_v25  ;;  %v4114_v54 = vunpack.i.h.bf16 %v4112_v21 }
 0x106   : > { %741 = vmatpush.msra.mxu1 %v466_v43  ;;  %v425_v36 = vsel %vm421_vm6, %v3954_v31, %v8385_v33  ;;  %762 = vmatpush.msra.mxu2 %v424_v61  ;;  %v382_v38 = vsel %vm378_vm7, %v3929_v25, %v3933_v24  ;;  %v4118_v6 = vunpack.i.l.bf16 %v5345_v60  ;;  %v379_v14 = vsel %vm378_vm7, %v3923_v8, %v3924_v26 }
 0x107   : > { %782 = vmatpush.msra.mxu3 %v425_v36  ;;  %722 = vmatpush.msra.mxu0 %v422_v4  ;;  %v380_v31 = vsel %vm378_vm7, %v3924_v26, %v3928_v49  ;;  %v4109_v19 = vunpack.i.h.bf16 %v5271_v58  ;;  %v4113_v7 = vunpack.i.l.bf16 %v4112_v21  ;;  %v4084_v16 = vunpack.i.h.bf16 %v5261_v51 }
 0x108   : > { %742 = vmatpush.msra.mxu1 %v423_v15  ;;  %763 = vmatpush.msra.mxu2 %v381_v0  ;;  %v4088_v32 = vunpack.i.l.bf16 %v5269_v57  ;;  %v4093_v59 = vunpack.i.l.bf16 %v5267_v56  ;;  %v4089_v62 = vunpack.i.h.bf16 %v5269_v57  ;;  %v8386_v57 = vunpack.i.l.bf16 %v5271_v58 }
 0x109   : > { %783 = vmatpush.msra.mxu3 %v382_v38  ;;  %723 = vmatpush.msra.mxu0 %v379_v14  ;;  %v685_v25 = vsel %vm679_vm2, %v4109_v19, %v4113_v7  ;;  %v4068_v49 = vunpack.i.l.bf16 %v5259_v50  ;;  %v4064_v11 = vunpack.i.h.bf16 %v5263_v52  ;;  %v4034_v42 = vunpack.i.h.bf16 %v5233_v37 }
 0x10a   : > { %743 = vmatpush.msra.mxu1 %v380_v31  ;;  %764 = vmatpush.msra.mxu2 %v5124_v12  ;;  %v686_v12 = vsel %vm679_vm2, %v4113_v7, %v4114_v54  ;;  %v684_v48 = vsel %vm679_vm2, %v8386_v57, %v4109_v19  ;;  %v4038_v53 = vunpack.i.l.bf16 %v5251_v46  ;;  %v8387_v26 = vunpack.i.l.bf16 %v5261_v51 }
 0x10b   : > { %784 = vmatpush.msra.mxu3 %v5126_v13  ;;  %724 = vmatpush.msra.mxu0 %v5101_v3  ;;  %v687_v13 = vsel %vm679_vm2, %v4114_v54, %v4118_v6  ;;  %v4059_v3 = vunpack.i.h.bf16 %v5247_v44  ;;  %v642_v8 = vsel %vm636_vm3, %v4084_v16, %v4088_v32  ;;  %v4043_v27 = vunpack.i.l.bf16 %v5249_v45 }
 0x10c   : > { %744 = vmatpush.msra.mxu1 %v5105_v5  ;;  %3845 = vmatmul.msk.f32.vlgmr.msra.gmra.mxu0 %vm705_vm8, %v5360_v63  ;;  %v4063_v5 = vunpack.i.l.bf16 %v5263_v52  ;;  %v641_v58 = vsel %vm636_vm3, %v8387_v26, %v4084_v16  ;;  %v4039_v43 = vunpack.i.h.bf16 %v5251_v46  ;;  %v643_v52 = vsel %vm636_vm3, %v4088_v32, %v4089_v62 }
 0x10d   : > { %3846 = vmatmul.msk.f32.vlgmr.msra.gmra.mxu1 %vm705_vm8, %v5360_v63  ;;  %3847 = vmatmul.msk.f32.vlgmr.msra.gmra.mxu2 %vm705_vm8, %v5360_v63  ;;  %v644_v61 = vsel %vm636_vm3, %v4089_v62, %v4093_v59  ;;  %v4009_v33 = vunpack.i.h.bf16 %v5219_v30  ;;  %v4013_v51 = vunpack.i.l.bf16 %v5239_v40  ;;  %v8388_v36 = vunpack.i.l.bf16 %v5247_v44 }
 0x10e   : > { %3848 = vmatmul.msk.f32.vlgmr.msra.gmra.mxu3 %vm705_vm8, %v5360_v63  ;;  %796 = vmatpush.msrb.mxu0 %v684_v48  ;;  %v599_v46 = vsel %vm593_vm1, %v4059_v3, %v4063_v5  ;;  %v4018_v4 = vunpack.i.l.bf16 %v5237_v39  ;;  %v4014_v15 = vunpack.i.h.bf16 %v5239_v40  ;;  %v600_v0 = vsel %vm593_vm1, %v4063_v5, %v4064_v11 }
 0x10f   : > { %816 = vmatpush.msrb.mxu1 %v685_v25  ;;  %836 = vmatpush.msrb.mxu2 %v686_v12  ;;  %v598_v21 = vsel %vm593_vm1, %v8388_v36, %v4059_v3  ;;  %v601_v38 = vsel %vm593_vm1, %v4064_v11, %v4068_v49  ;;  %v3984_v54 = vunpack.i.h.bf16 %v5205_v23  ;;  %v3988_v44 = vunpack.i.l.bf16 %v5229_v35 }
 0x110   : > { %856 = vmatpush.msrb.mxu3 %v687_v13  ;;  %797 = vmatpush.msrb.mxu0 %v641_v58  ;;  %v8389_v14 = vunpack.i.l.bf16 %v5233_v37  ;;  %v556_v40 = vsel %vm550_vm0, %v4034_v42, %v4038_v53  ;;  %v3993_v19 = vunpack.i.l.bf16 %v5227_v34  ;;  %v3989_v7 = vunpack.i.h.bf16 %v5229_v35 }
 0x111   : > { %817 = vmatpush.msrb.mxu1 %v642_v8  ;;  %837 = vmatpush.msrb.mxu2 %v643_v52  ;;  %v557_v16 = vsel %vm550_vm0, %v4038_v53, %v4039_v43  ;;  %v558_v32 = vsel %vm550_vm0, %v4039_v43, %v4043_v27  ;;  %v3959_v62 = vunpack.i.h.bf16 %v5185_v18  ;;  %v8390_v37 = vunpack.i.l.bf16 %v5219_v30 }
 0x112   : > { %857 = vmatpush.msrb.mxu3 %v644_v61  ;;  %798 = vmatpush.msrb.mxu0 %v598_v21  ;;  %v555_v31 = vsel %vm550_vm0, %v8389_v14, %v4034_v42  ;;  %v513_v13 = vsel %vm507_vm4, %v4009_v33, %v4013_v51  ;;  %v3964_v35 = vunpack.i.h.bf16 %v5217_v29  ;;  %v3963_v3 = vunpack.i.l.bf16 %v5217_v29  ;;  %v344_v42 = vld [vmem:[%s8284_s2] sm:$0xff] }
 0x113   : > { %818 = vmatpush.msrb.mxu1 %v599_v46  ;;  %838 = vmatpush.msrb.mxu2 %v600_v0  ;;  %v512_v12 = vsel %vm507_vm4, %v8390_v37, %v4009_v33  ;;  %v514_v5 = vsel %vm507_vm4, %v4013_v51, %v4014_v15  ;;  %v515_v57 = vsel %vm507_vm4, %v4014_v15, %v4018_v4  ;;  %v3934_v48 = vunpack.i.h.bf16 %v5195_v20  ;;  %v5470_v15 = vpop.permute.xlu2 %677 }
 0x114   : > { %858 = vmatpush.msrb.mxu3 %v601_v38  ;;  %799 = vmatpush.msrb.mxu0 %v555_v31  ;;  %v3968_v30 = vunpack.i.l.bf16 %v5215_v28  ;;  %v8391_v25 = vunpack.i.l.bf16 %v5205_v23  ;;  %v470_v29 = vsel %vm464_vm5, %v3984_v54, %v3988_v44  ;;  %v3939_v53 = vunpack.i.h.bf16 %v5203_v22  ;;  %8393 = vst [vmem:[#allocation9_spill] sm:$0xff] %v5470_v15  ;;  %v8395_v31 = vld [vmem:[#allocation6_spill] sm:$0xff] }
 0x115   : > { %819 = vmatpush.msrb.mxu1 %v556_v40  ;;  %839 = vmatpush.msrb.mxu2 %v557_v16  ;;  %v3938_v26 = vunpack.i.l.bf16 %v5203_v22  ;;  %v471_v58 = vsel %vm464_vm5, %v3988_v44, %v3989_v7  ;;  %v472_v23 = vsel %vm464_vm5, %v3989_v7, %v3993_v19  ;;  %v3943_v8 = vunpack.i.l.bf16 %v5178_v17 }
 0x116   : > { %859 = vmatpush.msrb.mxu3 %v558_v32  ;;  %800 = vmatpush.msrb.mxu0 %v512_v12  ;;  %v469_v11 = vsel %vm464_vm5, %v8391_v25, %v3984_v54  ;;  %v8392_v43 = vunpack.i.l.bf16 %v5185_v18  ;;  %v427_v22 = vsel %vm421_vm6, %v3959_v62, %v3963_v3  ;;  %v428_v61 = vsel %vm421_vm6, %v3963_v3, %v3964_v35  ;;  %v8398_v32 = vld [vmem:[#allocation2_spill] sm:$0xff] }
 0x117   : > { %820 = vmatpush.msrb.mxu1 %v513_v13  ;;  %840 = vmatpush.msrb.mxu2 %v514_v5  ;;  %v4119_v33 = vunpack.i.h.bf16 %v5345_v60  ;;  %v429_v51 = vsel %vm421_vm6, %v3964_v35, %v3968_v30  ;;  %v383_v18 = vsel %vm378_vm7, %v3933_v24, %v3934_v48  ;;  %v384_v36 = vsel %vm378_vm7, %v3934_v48, %v3938_v26 }
 0x118   : > { %860 = vmatpush.msrb.mxu3 %v515_v57  ;;  %801 = vmatpush.msrb.mxu0 %v469_v11  ;;  %v426_v52 = vsel %vm421_vm6, %v8392_v43, %v3959_v62  ;;  %v385_v21 = vsel %vm378_vm7, %v3938_v26, %v3939_v53  ;;  %v386_v46 = vsel %vm378_vm7, %v3939_v53, %v3943_v8  ;;  %v4094_v20 = vunpack.i.h.bf16 %v5267_v56  ;;  %v8399_v62 = vld [vmem:[#allocation3_spill] sm:$0xff] }
 0x119   : > { %821 = vmatpush.msrb.mxu1 %v470_v29  ;;  %841 = vmatpush.msrb.mxu2 %v471_v58  ;;  %v688_v24 = vsel %vm679_vm2, %v4118_v6, %v4119_v33  ;;  %v689_v0 = vsel %vm679_vm2, %v4119_v33, %v5470_v15  ;;  %v4019_v60 = vunpack.i.h.bf16 %v5237_v39  ;;  %v3994_v54 = vunpack.i.h.bf16 %v5227_v34 }
 0x11a   : > { %861 = vmatpush.msrb.mxu3 %v472_v23  ;;  %702 = vperm.xlu0 %4120, %v344_v42   ;;  %v3969_v44 = vunpack.i.h.bf16 %v5215_v28 }
 0x11b   : > { %802 = vmatpush.msrb.mxu0 %v426_v52  ;;  %822 = vmatpush.msrb.mxu1 %v427_v22  ;;  %v474_v40 = vsel %vm464_vm5, %v3994_v54, %v8395_v31 }
 0x11c   : > { %842 = vmatpush.msrb.mxu2 %v428_v61  ;;  %862 = vmatpush.msrb.mxu3 %v429_v51  ;;  %v430_v39 = vsel %vm421_vm6, %v3968_v30, %v3969_v44 }
 0x11d   : > { %803 = vmatpush.msrb.mxu0 %v383_v18  ;;  %823 = vmatpush.msrb.mxu1 %v384_v36 }
 0x11e   : > { %843 = vmatpush.msrb.mxu2 %v385_v21  ;;  %863 = vmatpush.msrb.mxu3 %v386_v46 }
 0x11f   : > { %804 = vmatpush.msrb.mxu0 %v5097_v1  ;;  %824 = vmatpush.msrb.mxu1 %v5099_v2  ;;  %v4069_v1 = vunpack.i.h.bf16 %v5259_v50  ;;  %v4044_v2 = vunpack.i.h.bf16 %v5249_v45  ;;  %v516_v50 = vsel %vm507_vm4, %v4018_v4, %v4019_v60  ;;  %v473_v45 = vsel %vm464_vm5, %v3993_v19, %v3994_v54  ;;  %v8396_v4 = vld [vmem:[#allocation5_spill] sm:$0xff]  ;;  %v8397_v19 = vld [vmem:[#allocation4_spill] sm:$0xff] }
 0x120   : > { %844 = vmatpush.msrb.mxu2 %v5118_v9  ;;  %864 = vmatpush.msrb.mxu3 %v5120_v10  ;;  %v645_v9 = vsel %vm636_vm3, %v4093_v59, %v4094_v20  ;;  %v646_v10 = vsel %vm636_vm3, %v4094_v20, %v5265_v55  ;;  %v431_v7 = vsel %vm421_vm6, %v3969_v44, %v8396_v4 }
 0x121   : > { %3849 = vmatmul.msk.f32.vlgmr.msrb.gmra.mxu0 %vm705_vm8, %v5360_v63  ;;  %3850 = vmatmul.msk.f32.vlgmr.msrb.gmra.mxu1 %vm705_vm8, %v5360_v63  ;;  %v602_v6 = vsel %vm593_vm1, %v4068_v49, %v4069_v1  ;;  %v603_v38 = vsel %vm593_vm1, %v4069_v1, %v5253_v47  ;;  %v559_v56 = vsel %vm550_vm0, %v4043_v27, %v4044_v2  ;;  %v8394_v49 = vld [vmem:[#allocation7_spill] sm:$0xff]  ;;  %v3944_v27 = vunpack.i.h.bf16 %v5178_v17 }
 0x122   : > { %3851 = vmatmul.msk.f32.vlgmr.msrb.gmra.mxu2 %vm705_vm8, %v5360_v63  ;;  %3852 = vmatmul.msk.f32.vlgmr.msrb.gmra.mxu3 %vm705_vm8, %v5360_v63  ;;  %v560_v59 = vsel %vm550_vm0, %v4044_v2, %v5241_v41  ;;  %v517_v14 = vsel %vm507_vm4, %v4019_v60, %v8394_v49 }
 0x123   : > { %876 = vmatpush.msra.mxu0 %v688_v24  ;;  %896 = vmatpush.msra.mxu1 %v689_v0  ;;  %v387_v34 = vsel %vm378_vm7, %v3943_v8, %v3944_v27  ;;  %v388_v16 = vsel %vm378_vm7, %v3944_v27, %v8397_v19 }
 0x125   : > { %877 = vmatpush.msra.mxu0 %v645_v9  ;;  %897 = vmatpush.msra.mxu1 %v646_v10 }
 0x127   : > { %878 = vmatpush.msra.mxu0 %v602_v6  ;;  %898 = vmatpush.msra.mxu1 %v603_v38 }
 0x129   : > { %879 = vmatpush.msra.mxu0 %v559_v56  ;;  %899 = vmatpush.msra.mxu1 %v560_v59 }
 0x12b   : > { %880 = vmatpush.msra.mxu0 %v516_v50  ;;  %900 = vmatpush.msra.mxu1 %v517_v14 }
 0x12d   : > { %881 = vmatpush.msra.mxu0 %v473_v45  ;;  %901 = vmatpush.msra.mxu1 %v474_v40 }
 0x12f   : > { %882 = vmatpush.msra.mxu0 %v430_v39  ;;  %902 = vmatpush.msra.mxu1 %v431_v7 }
 0x131   : > { %883 = vmatpush.msra.mxu0 %v387_v34  ;;  %903 = vmatpush.msra.mxu1 %v388_v16 }
 0x133   : > { %884 = vmatpush.msra.mxu0 %v8398_v32  ;;  %904 = vmatpush.msra.mxu1 %v8399_v62 }
 0x134   : > { %3853 = vmatmul.msk.f32.vlgmr.msra.gmra.mxu0 %vm705_vm8, %v5360_v63  ;;  %3854 = vmatmul.msk.f32.vlgmr.msra.gmra.mxu1 %vm705_vm8, %v5360_v63 }
 0x189   : > { %v726_v28 = vpop.f32.mrf.mxu0 }
 0x18a   : > { %v746_v37 = vpop.f32.mrf.mxu1 }
 0x18c   : > { %v703_v17 = vpop.permute.xlu0 %702 }
 0x18d   : > { %v5537_v12 = vadd.f32 %v726_v28, %v703_v17  ;;  %v5539_v13 = vadd.f32 %v746_v37, %v703_v17 }
 0x18f   : > { %v909_v35 = vmax.f32 %v5537_v12, 0.0  ;;  %v910_v3 = vmax.f32 %v5539_v13, 0.0 }
 0x190   : > { %v766_v5 = vpop.f32.mrf.mxu2 }
 0x191   : > { %v786_v57 = vpop.f32.mrf.mxu3  ;;  %v5543_v48 = vadd.f32 %v766_v5, %v703_v17  ;;  %v4131_v63 = vpack.i.bf16 %v910_v3, %v909_v35 }
 0x192   : > { %v5545_v30 = vadd.f32 %v786_v57, %v703_v17 }
 0x193   : > { %v911_v25 = vmax.f32 %v5543_v48, 0.0  ;;  %4132 = vrot.lane.b32.xlu0 %v4131_v63, %s5020_s18  ;;  %4122 = vrot.lane.b32.xlu1 %v4131_v63, %s5017_s11 }
 0x194   : > { %v912_v11 = vmax.f32 %v5545_v30, 0.0 }
 0x196   : > { %v4136_v29 = vpack.i.bf16 %v912_v11, %v911_v25 }
 0x198   : > { %4137 = vrot.lane.b32.xlu2 %v4136_v29, %s5017_s11 }
 0x19b   : > { %4127 = vrot.lane.b32.xlu1 %v4131_v63, %s5019_s17 }
 0x19e   : > { %v806_v42 = vpop.f32.mrf.mxu0  ;;  %v826_v26 = vpop.f32.mrf.mxu1 }
 0x19f   : > { %v5559_v53 = vadd.f32 %v806_v42, %v703_v17  ;;  %v5561_v58 = vadd.f32 %v826_v26, %v703_v17 }
 0x1a0   : > { %4142 = vrot.lane.b32.xlu2 %v4136_v29, %s5019_s17 }
 0x1a1   : > { %v913_v23 = vmax.f32 %v5559_v53, 0.0  ;;  %v914_v8 = vmax.f32 %v5561_v58, 0.0 }
 0x1a3   : > { %4147 = vrot.lane.b32.xlu1 %v4136_v29, %s5020_s18  ;;  %v4156_v43 = vpack.i.bf16 %v914_v8, %v913_v23 }
 0x1a5   : > { %v846_v52 = vpop.f32.mrf.mxu2  ;;  %v866_v61 = vpop.f32.mrf.mxu3  ;;  %4157 = vrot.lane.b32.xlu0 %v4156_v43, %s5019_s17 }
 0x1a6   : > { %v5571_v22 = vadd.f32 %v846_v52, %v703_v17  ;;  %v5574_v33 = vadd.f32 %v866_v61, %v703_v17 }
 0x1a8   : > { %v915_v51 = vmax.f32 %v5571_v22, 0.0  ;;  %4162 = vrot.lane.b32.xlu2 %v4156_v43, %s5020_s18  ;;  %v916_v18 = vmax.f32 %v5574_v33, 0.0 }
 0x1aa   : > { %v4176_v36 = vpack.i.bf16 %v916_v18, %v915_v51 }
 0x1ab   : > { %4152 = vrot.lane.b32.xlu1 %v4156_v43, %s5017_s11 }
 0x1ad   : > { %4177 = vrot.lane.b32.xlu0 %v4176_v36, %s5020_s18 }
 0x1b0   : > { %4167 = vrot.lane.b32.xlu2 %v4176_v36, %s5017_s11 }
 0x1b1   : > { %v886_v21 = vpop.f32.mrf.mxu0  ;;  %v906_v20 = vpop.f32.mrf.mxu1 }
 0x1b2   : > { %v5586_v46 = vadd.f32 %v886_v21, %v703_v17  ;;  %v5588_v24 = vadd.f32 %v906_v20, %v703_v17 }
 0x1b3   : > { %4172 = vrot.lane.b32.xlu1 %v4176_v36, %s5019_s17 }
 0x1b4   : > { %v917_v0 = vmax.f32 %v5586_v46, 0.0  ;;  %v918_v1 = vmax.f32 %v5588_v24, 0.0 }
 0x1b6   : > { %v4181_v2 = vpack.i.bf16 %v918_v1, %v917_v0 }
 0x1b8   : > { %4182 = vrot.lane.b32.xlu0 %v4181_v2, %s5017_s11  ;;  %4187 = vrot.lane.b32.xlu2 %v4181_v2, %s5019_s17 }
 0x1bb   : > { %4192 = vrot.lane.b32.xlu1 %v4181_v2, %s5020_s18 }
 0x1f2   : > { %v4138_v9 = vpop.permute.xlu2 %4137 }
 0x1f3   : > { %v4139_v44 = vunpack.i.l.bf16 %v4138_v9  ;;  %v4140_v7 = vunpack.i.h.bf16 %v4138_v9 }
 0x1f5   : > { %v951_v57 = vsel %vm378_vm7, %v4139_v44, %v4140_v7 }
 0x1f6   : > { %v971_v13 = vmax.f32 %v911_v25, %v951_v57 }
 0x1fa   : > { %v4143_v59 = vpop.permute.xlu2 %4142 }
 0x1fb   : > { %v4144_v45 = vunpack.i.l.bf16 %v4143_v59  ;;  %v4145_v17 = vunpack.i.h.bf16 %v4143_v59 }
 0x1fd   : > { %v1001_v43 = vsel %vm464_vm5, %v4144_v45, %v4145_v17 }
 0x1fe   : > { %v1021_v36 = vmax.f32 %v971_v13, %v1001_v43 }
 0x202   : > { %v4163_v25 = vpop.permute.xlu2 %4162 }
 0x205   : > { %v4123_v10 = vpop.permute.xlu1 %4122  ;;  %v4133_v14 = vpop.permute.xlu0 %4132 }
 0x206   : > { %v4125_v60 = vunpack.i.h.bf16 %v4123_v10  ;;  %v4124_v6 = vunpack.i.l.bf16 %v4123_v10  ;;  %v4135_v34 = vunpack.i.h.bf16 %v4133_v14  ;;  %v4134_v16 = vunpack.i.l.bf16 %v4133_v14 }
 0x208   : > { %v949_v50 = vsel %vm378_vm7, %v4124_v6, %v4125_v60  ;;  %v950_v27 = vsel %vm378_vm7, %v4125_v60, %v4139_v44  ;;  %v1049_v63 = vsel %vm507_vm4, %v4134_v16, %v4135_v34 }
 0x209   : > { %v969_v39 = vmax.f32 %v909_v35, %v949_v50  ;;  %v970_v62 = vmax.f32 %v910_v3, %v950_v27 }
 0x20d   : > { %v4128_v38 = vpop.permute.xlu1 %4127 }
 0x20e   : > { %v4130_v54 = vunpack.i.h.bf16 %v4128_v38  ;;  %v4129_v56 = vunpack.i.l.bf16 %v4128_v38 }
 0x210   : > { %v999_v40 = vsel %vm464_vm5, %v4129_v56, %v4130_v54  ;;  %v1000_v32 = vsel %vm464_vm5, %v4130_v54, %v4144_v45  ;;  %v4164_v54 = vunpack.i.l.bf16 %v4163_v25  ;;  %v4168_v45 = vpop.permute.xlu2 %4167 }
 0x211   : > { %v1019_v28 = vmax.f32 %v969_v39, %v999_v40  ;;  %v1020_v5 = vmax.f32 %v970_v62, %v1000_v32  ;;  %v4165_v40 = vunpack.i.h.bf16 %v4163_v25 }
 0x213   : > { %v5609_v42 = vmax.f32 %v1019_v28, %v1049_v63  ;;  %v1053_v32 = vsel %vm507_vm4, %v4164_v54, %v4165_v40 }
 0x215   : > { %v4148_v37 = vpop.permute.xlu1 %4147 }
 0x216   : > { %v4149_v12 = vunpack.i.l.bf16 %v4148_v37  ;;  %v4150_v29 = vunpack.i.h.bf16 %v4148_v37 }
 0x217   : > { %v4158_v3 = vpop.permute.xlu0 %4157 }
 0x218   : > { %v1050_v35 = vsel %vm507_vm4, %v4135_v34, %v4149_v12  ;;  %v1051_v61 = vsel %vm507_vm4, %v4149_v12, %v4150_v29  ;;  %v4159_v20 = vunpack.i.l.bf16 %v4158_v3  ;;  %v1052_v56 = vsel %vm507_vm4, %v4150_v29, %v4164_v54 }
 0x219   : > { %v5611_v26 = vmax.f32 %v1020_v5, %v1050_v35  ;;  %v5622_v9 = vmax.f32 %v1021_v36, %v1051_v61  ;;  %v4160_v50 = vunpack.i.h.bf16 %v4158_v3  ;;  %v4169_v34 = vunpack.i.l.bf16 %v4168_v45  ;;  %v4188_v35 = vpop.permute.xlu2 %4187 }
 0x21a   : > { %v1002_v60 = vsel %vm464_vm5, %v4145_v17, %v4159_v20  ;;  %v4190_v61 = vunpack.i.h.bf16 %v4188_v35 }
 0x21b   : > { %v4206_v52 = vpack.i.bf16 %v5611_v26, %v5609_v42  ;;  %v4221_v38 = vpack.i.bf16 %v5622_v9, %v5611_v26  ;;  %v1003_v39 = vsel %vm464_vm5, %v4159_v20, %v4160_v50 }
 0x21d   : > { %v4153_v21 = vpop.permute.xlu1 %4152  ;;  %4207 = vrot.lane.b32.xlu0 %v4206_v52, %s5019_s17  ;;  %4202 = vrot.lane.b32.xlu1 %v4206_v52, %s5018_s16 }
 0x21e   : > { %v4154_v2 = vunpack.i.l.bf16 %v4153_v21  ;;  %4197 = vrot.lane.b32.xlu2 %v4206_v52, %s5017_s11  ;;  %v4155_v44 = vunpack.i.h.bf16 %v4153_v21  ;;  %v4189_v21 = vunpack.i.l.bf16 %v4188_v35 }
 0x220   : > { %v952_v48 = vsel %vm378_vm7, %v4140_v7, %v4154_v2  ;;  %v954_v62 = vsel %vm378_vm7, %v4155_v44, %v4169_v34 }
 0x221   : > { %v972_v10 = vmax.f32 %v912_v11, %v952_v48  ;;  %v953_v11 = vsel %vm378_vm7, %v4154_v2, %v4155_v44  ;;  %v974_v37 = vmax.f32 %v914_v8, %v954_v62  ;;  %v4170_v8 = vunpack.i.h.bf16 %v4168_v45  ;;  %v1081_v62 = vld [vmem:[%s8286_s4] sm:$0xff] }
 0x222   : > { %v973_v14 = vmax.f32 %v913_v23, %v953_v11  ;;  %v4178_v23 = vpop.permute.xlu0 %4177  ;;  %v1008_v44 = vsel %vm464_vm5, %v4190_v61, %v8395_v31 }
 0x223   : > { %v1022_v6 = vmax.f32 %v972_v10, %v1002_v60  ;;  %v4179_v17 = vunpack.i.l.bf16 %v4178_v23  ;;  %v4180_v11 = vunpack.i.h.bf16 %v4178_v23 }
 0x224   : > { %v1023_v7 = vmax.f32 %v973_v14, %v1003_v39 }
 0x225   : > { %4222 = vrot.lane.b32.xlu0 %v4221_v38, %s5024_s22  ;;  %4217 = vrot.lane.b32.xlu1 %v4206_v52, %s5021_s19  ;;  %v5634_v59 = vmax.f32 %v1022_v6, %v1052_v56  ;;  %v4173_v27 = vpop.permute.xlu1 %4172  ;;  %v1054_v57 = vsel %vm507_vm4, %v4165_v40, %v4179_v17  ;;  %v1055_v40 = vsel %vm507_vm4, %v4179_v17, %v4180_v11 }
 0x226   : > { %4212 = vrot.lane.b32.xlu2 %v4206_v52, %s5020_s18  ;;  %v4174_v16 = vunpack.i.l.bf16 %v4173_v27  ;;  %v5650_v53 = vmax.f32 %v1023_v7, %v1053_v32  ;;  %v4175_v3 = vunpack.i.h.bf16 %v4173_v27  ;;  %v955_v52 = vsel %vm378_vm7, %v4169_v34, %v4170_v8 }
 0x227   : > { %v4236_v30 = vpack.i.bf16 %v5634_v59, %v5622_v9  ;;  %v975_v6 = vmax.f32 %v915_v51, %v955_v52 }
 0x228   : > { %v1004_v28 = vsel %vm464_vm5, %v4160_v50, %v4174_v16  ;;  %v4261_v5 = vpack.i.bf16 %v5650_v53, %v5634_v59  ;;  %v1005_v25 = vsel %vm464_vm5, %v4174_v16, %v4175_v3  ;;  %v1006_v50 = vsel %vm464_vm5, %v4175_v3, %v4189_v21 }
 0x229   : > { %v1024_v12 = vmax.f32 %v974_v37, %v1004_v28  ;;  %v1025_v14 = vmax.f32 %v975_v6, %v1005_v25 }
 0x22a   : > { %v4183_v58 = vpop.permute.xlu0 %4182 }
 0x22b   : > { %v5661_v63 = vmax.f32 %v1024_v12, %v1054_v57  ;;  %v4185_v43 = vunpack.i.h.bf16 %v4183_v58  ;;  %v4184_v13 = vunpack.i.l.bf16 %v4183_v58  ;;  %v5705_v39 = vmax.f32 %v1025_v14, %v1055_v40 }
 0x22d   : > { %4237 = vrot.lane.b32.xlu0 %v4236_v30, %s5017_s11  ;;  %4227 = vrot.lane.b32.xlu1 %v4221_v38, %s5023_s21  ;;  %v4281_v29 = vpack.i.bf16 %v5661_v63, %v5650_v53  ;;  %v4193_v36 = vpop.permute.xlu1 %4192  ;;  %v958_v20 = vsel %vm378_vm7, %v4185_v43, %v8397_v19  ;;  %v956_v2 = vsel %vm378_vm7, %v4170_v8, %v4184_v13 }
 0x22e   : > { %4232 = vrot.lane.b32.xlu2 %v4221_v38, %s5022_s20  ;;  %v957_v48 = vsel %vm378_vm7, %v4184_v13, %v4185_v43  ;;  %v4195_v10 = vunpack.i.h.bf16 %v4193_v36  ;;  %v4194_v60 = vunpack.i.l.bf16 %v4193_v36  ;;  %v978_v38 = vmax.f32 %v918_v1, %v958_v20 }
 0x22f   : > { %v976_v54 = vmax.f32 %v916_v18, %v956_v2  ;;  %v977_v56 = vmax.f32 %v917_v0, %v957_v48  ;;  %v4306_v22 = vpack.i.bf16 %v5661_v63, %v5609_v42 }
 0x230   : > { %v1058_v51 = vsel %vm507_vm4, %v4195_v10, %v8394_v49  ;;  %v1056_v33 = vsel %vm507_vm4, %v4180_v11, %v4194_v60  ;;  %v1057_v18 = vsel %vm507_vm4, %v4194_v60, %v4195_v10  ;;  %v1028_v24 = vmax.f32 %v978_v38, %v1008_v44 }
 0x231   : > { %v1026_v0 = vmax.f32 %v976_v54, %v1006_v50 }
 0x232   : > { %v5698_v1 = vmax.f32 %v1028_v24, %v1058_v51 }
 0x233   : > { %v5700_v45 = vmax.f32 %v1026_v0, %v1056_v33 }
 0x235   : > { %4252 = vrot.lane.b32.xlu0 %v4236_v30, %s5020_s18  ;;  %4247 = vrot.lane.b32.xlu1 %v4236_v30, %s5019_s17  ;;  %v4326_v34 = vpack.i.bf16 %v5700_v45, %v5705_v39 }
 0x236   : > { %4242 = vrot.lane.b32.xlu2 %v4236_v30, %s5018_s16 }
 0x23d   : > { %4262 = vrot.lane.b32.xlu0 %v4261_v5, %s5024_s22  ;;  %4272 = vrot.lane.b32.xlu1 %v4261_v5, %s5022_s20 }
 0x23e   : > { %4257 = vrot.lane.b32.xlu2 %v4236_v30, %s5021_s19  ;;  %v1007_v30 = vsel %vm464_vm5, %v4189_v21, %v4190_v61 }
 0x23f   : > { %v1027_v46 = vmax.f32 %v977_v56, %v1007_v30 }
 0x241   : > { %v5702_v27 = vmax.f32 %v1027_v46, %v1057_v18 }
 0x243   : > { %v4321_v7 = vpack.i.bf16 %v5698_v1, %v5702_v27 }
 0x245   : > { %4282 = vrot.lane.b32.xlu0 %v4281_v29, %s5018_s16  ;;  %4277 = vrot.lane.b32.xlu1 %v4281_v29, %s5017_s11 }
 0x246   : > { %4267 = vrot.lane.b32.xlu2 %v4261_v5, %s5023_s21 }
 0x24d   : > { %4297 = vrot.lane.b32.xlu0 %v4281_v29, %s5021_s19  ;;  %4292 = vrot.lane.b32.xlu1 %v4281_v29, %s5020_s18 }
 0x24e   : > { %4287 = vrot.lane.b32.xlu2 %v4281_v29, %s5019_s17 }
 0x255   : > { %4307 = vrot.lane.b32.xlu0 %v4306_v22, %s5023_s21  ;;  %4302 = vrot.lane.b32.xlu1 %v4306_v22, %s5024_s22 }
 0x256   : > { %4312 = vrot.lane.b32.xlu2 %v4306_v22, %s5022_s20 }
 0x25d   : > { %4322 = vrot.lane.b32.xlu0 %v4321_v7, %s5017_s11  ;;  %4327 = vrot.lane.b32.xlu1 %v4326_v34, %s5018_s16 }
 0x25e   : > { %4317 = vrot.lane.b32.xlu2 %v4326_v34, %s5017_s11 }
 0x265   : > { %4337 = vrot.lane.b32.xlu0 %v4326_v34, %s5019_s17  ;;  %4342 = vrot.lane.b32.xlu1 %v4321_v7, %s5019_s17 }
 0x266   : > { %4332 = vrot.lane.b32.xlu2 %v4321_v7, %s5018_s16 }
 0x26d   : > { %4352 = vrot.lane.b32.xlu0 %v4321_v7, %s5020_s18  ;;  %4357 = vrot.lane.b32.xlu1 %v4326_v34, %s5021_s19 }
 0x26e   : > { %4347 = vrot.lane.b32.xlu2 %v4326_v34, %s5020_s18 }
 0x275   : > { %4367 = vrot.lane.b32.xlu0 %v4326_v34, %s5024_s22  ;;  %4372 = vrot.lane.b32.xlu1 %v4326_v34, %s5023_s21 }
 0x276   : > { %4362 = vrot.lane.b32.xlu2 %v4321_v7, %s5021_s19 }
 0x278   : > { %v5723_v16 = vpop.permute.xlu2 %4197 }
 0x279   : > { %v4200_v51 = vunpack.i.h.bf16 %v5723_v16 }
 0x27d   : > { %4382 = vrot.lane.b32.xlu0 %v4321_v7, %s5024_s22  ;;  %4387 = vrot.lane.b32.xlu1 %v4321_v7, %s5023_s21  ;;  %s5026_s21 = smov 118  }
 0x27e   : > { %4377 = vrot.lane.b32.xlu2 %v4326_v34, %s5022_s20 }
 0x280   : > { %v5728_v32 = vpop.permute.xlu2 %4212 }
 0x281   : > { %v4215_v6 = vunpack.i.h.bf16 %v5728_v32 }
 0x285   : > { %1415 = vperm.xlu0 %4120, %v1081_v62   ;;  %v5811_v62 = vld [vmem:[%s8285_s3] sm:$0xff] }
 0x286   : > { %4393 = vrot.lane.b32.xlu2 %v4321_v7, %s5022_s20 }
 0x288   : > { %v5734_v23 = vpop.permute.xlu2 %4232 }
 0x289   : > { %v4235_v13 = vunpack.i.h.bf16 %v5734_v23  ;;  %v4234_v3 = vunpack.i.l.bf16 %v5734_v23 }
 0x28b   : > { %v1314_v48 = vsel %vm593_vm1, %v4234_v3, %v4235_v13 }
 0x28f   : > { %v5736_v28 = vpop.permute.xlu0 %4207  ;;  %v5738_v37 = vpop.permute.xlu1 %4202 }
 0x290   : > { %v5740_v17 = vpop.permute.xlu2 %4242  ;;  %v4210_v56 = vunpack.i.h.bf16 %v5736_v28  ;;  %v4205_v44 = vunpack.i.h.bf16 %v5738_v37 }
 0x291   : > { %v4244_v30 = vunpack.i.l.bf16 %v5740_v17 }
 0x293   : > { %v1154_v33 = vsel %vm421_vm6, %v4205_v44, %v4244_v30 }
 0x297   : > { %v5742_v12 = vpop.permute.xlu0 %4222  ;;  %v5744_v5 = vpop.permute.xlu1 %4217 }
 0x298   : > { %v4225_v57 = vunpack.i.h.bf16 %v5742_v12  ;;  %v4224_v29 = vunpack.i.l.bf16 %v5742_v12  ;;  %v5748_v58 = vpop.permute.xlu2 %4257  ;;  %v4220_v21 = vunpack.i.h.bf16 %v5744_v5  ;;  %v4214_v12 = vunpack.i.l.bf16 %v5728_v32 }
 0x299   : > { %v4259_v20 = vunpack.i.l.bf16 %v5748_v58 }
 0x29a   : > { %v1394_v8 = vsel %vm679_vm2, %v4224_v29, %v4225_v57  ;;  %v1233_v23 = vsel %vm507_vm4, %v4214_v12, %v4215_v6 }
 0x29b   : > { %1459 = vmatpush.msra.mxu3 %v1394_v8  ;;  %v1274_v25 = vsel %vm550_vm0, %v4220_v21, %v4259_v20 }
 0x29f   : > { %v5753_v35 = vpop.permute.xlu0 %4237  ;;  %v5755_v43 = vpop.permute.xlu1 %4227 }
 0x2a0   : > { %v4230_v52 = vunpack.i.h.bf16 %v5755_v43  ;;  %v4229_v61 = vunpack.i.l.bf16 %v5755_v43  ;;  %v5761_v36 = vpop.permute.xlu2 %4267  ;;  %v4239_v14 = vunpack.i.l.bf16 %v5753_v35 }
 0x2a1   : > { %v4269_v24 = vunpack.i.l.bf16 %v5761_v36  ;;  %v4270_v34 = vunpack.i.h.bf16 %v5761_v36 }
 0x2a2   : > { %v1354_v2 = vsel %vm636_vm3, %v4229_v61, %v4230_v52  ;;  %v1114_v7 = vsel %vm378_vm7, %v4200_v51, %v4239_v14 }
 0x2a3   : > { %1460 = vmatpush.msra.mxu3 %v1354_v2 }
 0x2a5   : > { %1461 = vmatpush.msra.mxu3 %v1314_v48 }
 0x2a7   : > { %v5774_v10 = vpop.permute.xlu0 %4252  ;;  %v5776_v60 = vpop.permute.xlu1 %4247  ;;  %1462 = vmatpush.msra.mxu3 %v1274_v25 }
 0x2a8   : > { %v4254_v38 = vunpack.i.l.bf16 %v5774_v10  ;;  %v4249_v54 = vunpack.i.l.bf16 %v5776_v60  ;;  %v5784_v11 = vpop.permute.xlu2 %4287 }
 0x2aa   : > { %v1234_v50 = vsel %vm507_vm4, %v4215_v6, %v4254_v38  ;;  %v1194_v22 = vsel %vm464_vm5, %v4210_v56, %v4249_v54 }
 0x2ab   : > { %1463 = vmatpush.msra.mxu3 %v1234_v50  ;;  %v4260_v50 = vunpack.i.h.bf16 %v5748_v58 }
 0x2ad   : > { %1464 = vmatpush.msra.mxu3 %v1194_v22 }
 0x2af   : > { %v5797_v18 = vpop.permute.xlu0 %4262  ;;  %v5799_v46 = vpop.permute.xlu1 %4272  ;;  %1465 = vmatpush.msra.mxu3 %v1154_v33  ;;  %v1355_v33 = vsel %vm636_vm3, %v4230_v52, %v4269_v24  ;;  %v4250_v52 = vunpack.i.h.bf16 %v5776_v60 }
 0x2b0   : > { %v4265_v0 = vunpack.i.h.bf16 %v5797_v18  ;;  %v4264_v40 = vunpack.i.l.bf16 %v5797_v18  ;;  %v4274_v8 = vunpack.i.l.bf16 %v5799_v46  ;;  %v4275_v25 = vunpack.i.h.bf16 %v5799_v46  ;;  %v5821_v22 = vpop.permute.xlu2 %4312 }
 0x2b1   : > { %1466 = vmatpush.msra.mxu3 %v1114_v7 }
 0x2b2   : > { %v1395_v2 = vsel %vm679_vm2, %v4225_v57, %v4264_v40  ;;  %v1396_v48 = vsel %vm679_vm2, %v4264_v40, %v4265_v0  ;;  %v1356_v57 = vsel %vm636_vm3, %v4269_v24, %v4270_v34  ;;  %v4255_v40 = vunpack.i.h.bf16 %v5774_v10 }
 0x2b3   : > { %1467 = vmatpush.msra.mxu3 %v5611_v26  ;;  %1482 = vmatpush.msrb.mxu0 %v1395_v2  ;;  %v1315_v26 = vsel %vm593_vm1, %v4235_v13, %v4274_v8  ;;  %v1316_v2 = vsel %vm593_vm1, %v4274_v8, %v4275_v25  ;;  %v4245_v10 = vunpack.i.h.bf16 %v5740_v17  ;;  %v5845_v13 = vld [vmem:[%s8285_s3 + $0x8] sm:$0xff]  ;;  %v1195_v8 = vsel %vm464_vm5, %v4249_v54, %v4250_v52 }
 0x2b4   : > { %1505 = vmatpush.msrb.mxu1 %v1396_v48  ;;  %3857 = vmatmul.msk.f32.vlgmr.msra.gmra.mxu3 %vm705_vm8, %v5811_v62  ;;  %v1275_v48 = vsel %vm550_vm0, %v4259_v20, %v4260_v50  ;;  %v1235_v24 = vsel %vm507_vm4, %v4254_v38, %v4255_v40  ;;  %v1082_v54 = vld [vmem:[%s8286_s4 + $0x8] sm:$0xff] }
 0x2b5   : > { %1483 = vmatpush.msrb.mxu0 %v1355_v33  ;;  %v4240_v33 = vunpack.i.h.bf16 %v5753_v35  ;;  %v1155_v17 = vsel %vm421_vm6, %v4244_v30, %v4245_v10  ;;  %1420 = vperm.xlu1 %4391, %v1082_v54  }
 0x2b6   : > { %1506 = vmatpush.msrb.mxu1 %v1356_v57 }
 0x2b7   : > { %v5831_v7 = vpop.permute.xlu0 %4282  ;;  %v5833_v58 = vpop.permute.xlu1 %4277  ;;  %1484 = vmatpush.msrb.mxu0 %v1315_v26  ;;  %v1115_v35 = vsel %vm378_vm7, %v4239_v14, %v4240_v33 }
 0x2b8   : > { %1507 = vmatpush.msrb.mxu1 %v1316_v2  ;;  %v5851_v20 = vpop.permute.xlu2 %4317  ;;  %v8300_v2 = vunpack.i.l.bf16 %v5784_v11  ;;  %v4280_v46 = vunpack.i.h.bf16 %v5833_v58 }
 0x2b9   : > { %1485 = vmatpush.msrb.mxu0 %v1275_v48  ;;  %v4284_v48 = vunpack.i.l.bf16 %v5831_v7 }
 0x2bb   : > { %1486 = vmatpush.msrb.mxu0 %v1235_v24  ;;  %v4279_v24 = vunpack.i.l.bf16 %v5833_v58 }
 0x2bc   : > { %3858 = vmatmul.msk.f32.gmra.mxu3 %vm705_vm8, %v5845_v13 }
 0x2bd   : > { %1487 = vmatpush.msrb.mxu0 %v1195_v8 }
 0x2bf   : > { %v5854_v60 = vpop.permute.xlu0 %4297  ;;  %v5856_v38 = vpop.permute.xlu1 %4292  ;;  %1488 = vmatpush.msrb.mxu0 %v1155_v17 }
 0x2c0   : > { %v4299_v57 = vunpack.i.l.bf16 %v5854_v60  ;;  %v4294_v26 = vunpack.i.l.bf16 %v5856_v38  ;;  %v5883_v17 = vpop.permute.xlu2 %4332 }
 0x2c1   : > { %1489 = vmatpush.msrb.mxu0 %v1115_v35 }
 0x2c2   : > { %v1276_v30 = vsel %vm550_vm0, %v4260_v50, %v4299_v57  ;;  %v1236_v14 = vsel %vm507_vm4, %v4255_v40, %v4294_v26  ;;  %v1196_v50 = vsel %vm464_vm5, %v4250_v52, %v8300_v2  ;;  %v1156_v40 = vsel %vm421_vm6, %v4245_v10, %v4284_v48 }
 0x2c3   : > { %1490 = vmatpush.msrb.mxu0 %v5622_v9  ;;  %1508 = vmatpush.msrb.mxu1 %v1276_v30  ;;  %v4314_v30 = vunpack.i.l.bf16 %v5821_v22  ;;  %v4219_v2 = vunpack.i.l.bf16 %v5744_v5 }
 0x2c4   : > { %3859 = vmatmul.msk.f32.vlgmr.msrb.gmra.mxu0 %vm705_vm8, %v5811_v62 }
 0x2c5   : > { %1509 = vmatpush.msrb.mxu1 %v1236_v14  ;;  %v1116_v14 = vsel %vm378_vm7, %v4240_v33, %v4279_v24 }
 0x2c7   : > { %v5879_v8 = vpop.permute.xlu0 %4307  ;;  %v5881_v9 = vpop.permute.xlu1 %4302  ;;  %1510 = vmatpush.msrb.mxu1 %v1196_v50  ;;  %v8400_v50 = vmov 0.0  }
 0x2c8   : > { %v4309_v35 = vunpack.i.l.bf16 %v5879_v8  ;;  %v4304_v54 = vunpack.i.l.bf16 %v5881_v9  ;;  %2522 = vrot.lane.b32.xlu1 %v8400_v50, %s5026_s21 }
 0x2c9   : > { %1511 = vmatpush.msrb.mxu1 %v1156_v40 }
 0x2ca   : > { %v1393_v52 = vsel %vm679_vm2, %v4304_v54, %v4224_v29  ;;  %v1353_v10 = vsel %vm636_vm3, %v4309_v35, %v4229_v61  ;;  %v1313_v29 = vsel %vm593_vm1, %v4314_v30, %v4234_v3  ;;  %v4209_v61 = vunpack.i.l.bf16 %v5736_v28  ;;  %v5921_v54 = vpop.permute.xlu2 %4347 }
 0x2cb   : > { %1436 = vmatpush.msra.mxu2 %v1393_v52  ;;  %1512 = vmatpush.msrb.mxu1 %v1116_v14  ;;  %v4204_v35 = vunpack.i.l.bf16 %v5738_v37  ;;  %v4199_v3 = vunpack.i.l.bf16 %v5723_v16  ;;  %v4315_v37 = vunpack.i.h.bf16 %v5821_v22  ;;  %v4300_v16 = vunpack.i.h.bf16 %v5854_v60 }
 0x2cc   : > { %3860 = vmatmul.msk.f32.gmra.mxu0 %vm705_vm8, %v5845_v13  ;;  %v1193_v5 = vsel %vm464_vm5, %v4209_v61, %v4210_v56  ;;  %v4310_v56 = vunpack.i.h.bf16 %v5879_v8  ;;  %v4295_v8 = vunpack.i.h.bf16 %v5856_v38  ;;  %v8401_v60 = vunpack.i.l.bf16 %v5784_v11 }
 0x2cd   : > { %1437 = vmatpush.msra.mxu2 %v1353_v10  ;;  %1513 = vmatpush.msrb.mxu1 %v5634_v59  ;;  %v1273_v59 = vsel %vm550_vm0, %v4219_v2, %v4220_v21  ;;  %v1153_v32 = vsel %vm421_vm6, %v4204_v35, %v4205_v44  ;;  %v4305_v2 = vunpack.i.h.bf16 %v5881_v9  ;;  %v1113_v28 = vsel %vm378_vm7, %v4199_v3, %v4200_v51 }
 0x2ce   : > { %3861 = vmatmul.msk.f32.vlgmr.msrb.gmra.mxu1 %vm705_vm8, %v5811_v62  ;;  %v1357_v51 = vsel %vm636_vm3, %v4270_v34, %v4310_v56  ;;  %v1317_v18 = vsel %vm593_vm1, %v4275_v25, %v4315_v37  ;;  %v1277_v36 = vsel %vm550_vm0, %v4299_v57, %v4300_v16  ;;  %v4285_v34 = vunpack.i.h.bf16 %v5831_v7 }
 0x2cf   : > { %v5912_v33 = vpop.permute.xlu0 %4322  ;;  %v5914_v43 = vpop.permute.xlu1 %4327  ;;  %1438 = vmatpush.msra.mxu2 %v1313_v29  ;;  %v1397_v44 = vsel %vm679_vm2, %v4265_v0, %v4305_v2  ;;  %v4290_v0 = vunpack.i.h.bf16 %v5784_v11  ;;  %v1237_v9 = vsel %vm507_vm4, %v4294_v26, %v4295_v8  ;;  %v1117_v61 = vsel %vm378_vm7, %v4279_v24, %v4280_v46 }
 0x2d0   : > { %2446 = vrot.lane.b32.xlu1 %v8400_v50, %s5027_s23  ;;  %v1157_v38 = vsel %vm421_vm6, %v4284_v48, %v4285_v34 }
 0x2d1   : > { %1439 = vmatpush.msra.mxu2 %v1273_v59  ;;  %v1197_v57 = vsel %vm464_vm5, %v8401_v60, %v4290_v0 }
 0x2d2   : > { %v5948_v40 = vpop.permute.xlu2 %4362 }
 0x2d3   : > { %1440 = vmatpush.msra.mxu2 %v1233_v23 }
 0x2d5   : > { %1441 = vmatpush.msra.mxu2 %v1193_v5  ;;  %v4349_v5 = vunpack.i.l.bf16 %v5921_v54 }
 0x2d6   : > { %3862 = vmatmul.msk.f32.gmra.mxu1 %vm705_vm8, %v5845_v13 }
 0x2d7   : > { %v5937_v21 = vpop.permute.xlu0 %4337  ;;  %v5939_v6 = vpop.permute.xlu1 %4342  ;;  %1442 = vmatpush.msra.mxu2 %v1153_v32 }
 0x2d8   : > { %v4340_v60 = vunpack.i.h.bf16 %v5937_v21 }
 0x2d9   : > { %1443 = vmatpush.msra.mxu2 %v1113_v28  ;;  %v4350_v28 = vunpack.i.h.bf16 %v5921_v54  ;;  %v4325_v54 = vunpack.i.h.bf16 %v5912_v33 }
 0x2da   : > { %v5978_v25 = vpop.permute.xlu2 %4377 }
 0x2db   : > { %1444 = vmatpush.msra.mxu2 %v5609_v42  ;;  %v4379_v29 = vunpack.i.l.bf16 %v5978_v25  ;;  %v4380_v23 = vunpack.i.h.bf16 %v5978_v25 }
 0x2dc   : > { %3855 = vmatmul.msk.f32.vlgmr.msra.gmra.mxu2 %vm705_vm8, %v5811_v62 }
 0x2dd   : > { %1528 = vmatpush.msrb.mxu2 %v1397_v44  ;;  %v4339_v44 = vunpack.i.l.bf16 %v5937_v21 }
 0x2df   : > { %1529 = vmatpush.msrb.mxu2 %v1357_v51  ;;  %v5959_v42 = vpop.permute.xlu0 %4352  ;;  %v5961_v22 = vpop.permute.xlu1 %4357 }
 0x2e0   : > { %v4359_v48 = vunpack.i.l.bf16 %v5961_v22  ;;  %v4360_v32 = vunpack.i.h.bf16 %v5961_v22  ;;  %v4334_v22 = vunpack.i.l.bf16 %v5883_v17 }
 0x2e1   : > { %1530 = vmatpush.msrb.mxu2 %v1317_v18 }
 0x2e2   : > { %v6015_v18 = vpop.permute.xlu2 %4393 }
 0x2e3   : > { %1531 = vmatpush.msrb.mxu2 %v1277_v36 }
 0x2e4   : > { %3856 = vmatmul.msk.f32.gmra.mxu2 %vm705_vm8, %v5845_v13 }
 0x2e5   : > { %1532 = vmatpush.msrb.mxu2 %v1237_v9 }
 0x2e7   : > { %1533 = vmatpush.msrb.mxu2 %v1197_v57  ;;  %v4368_v30 = vpop.permute.xlu0 %4367  ;;  %v4373_v52 = vpop.permute.xlu1 %4372  ;;  %v1279_v57 = vsel %vm550_vm0, %v4359_v48, %v4360_v32 }
 0x2e8   : > { %v4370_v14 = vunpack.i.h.bf16 %v4368_v30  ;;  %v4369_v10 = vunpack.i.l.bf16 %v4368_v30  ;;  %v4374_v12 = vunpack.i.l.bf16 %v4373_v52  ;;  %v4375_v26 = vunpack.i.h.bf16 %v4373_v52 }
 0x2e9   : > { %1534 = vmatpush.msrb.mxu2 %v1157_v38  ;;  %v1238_v30 = vsel %vm507_vm4, %v4295_v8, %v4349_v5  ;;  %v4329_v52 = vunpack.i.l.bf16 %v5914_v43  ;;  %v4330_v38 = vunpack.i.h.bf16 %v5914_v43  ;;  %v1239_v8 = vsel %vm507_vm4, %v4349_v5, %v4350_v28 }
 0x2ea   : > { %v1398_v59 = vsel %vm679_vm2, %v4305_v2, %v4369_v10  ;;  %v1399_v35 = vsel %vm679_vm2, %v4369_v10, %v4370_v14  ;;  %v1358_v3 = vsel %vm636_vm3, %v4310_v56, %v4374_v12  ;;  %v1359_v24 = vsel %vm636_vm3, %v4374_v12, %v4375_v26 }
 0x2eb   : > { %1535 = vmatpush.msrb.mxu2 %v1117_v61  ;;  %1551 = vmatpush.msrb.mxu3 %v1398_v59  ;;  %v1318_v2 = vsel %vm593_vm1, %v4315_v37, %v4379_v29  ;;  %v1278_v37 = vsel %vm550_vm0, %v4300_v16, %v4359_v48  ;;  %v4319_v61 = vunpack.i.l.bf16 %v5851_v20  ;;  %v4396_v59 = vunpack.i.h.bf16 %v6015_v18 }
 0x2ec   : > { %1574 = vmatpush.msra.mxu0 %v1399_v35  ;;  %v4320_v35 = vunpack.i.h.bf16 %v5851_v20  ;;  %v1199_v48 = vsel %vm464_vm5, %v4339_v44, %v4340_v60  ;;  %v4364_v5 = vunpack.i.l.bf16 %v5948_v40  ;;  %v1158_v20 = vsel %vm421_vm6, %v4285_v34, %v4329_v52 }
 0x2ed   : > { %1536 = vmatpush.msrb.mxu2 %v5650_v53  ;;  %1552 = vmatpush.msrb.mxu3 %v1358_v3  ;;  %v1319_v53 = vsel %vm593_vm1, %v4379_v29, %v4380_v23  ;;  %v4395_v29 = vunpack.i.l.bf16 %v6015_v18  ;;  %v4365_v3 = vunpack.i.h.bf16 %v5948_v40  ;;  %v1118_v7 = vsel %vm378_vm7, %v4280_v46, %v4319_v61 }
 0x2ee   : > { %3863 = vmatmul.msk.f32.vlgmr.msrb.gmra.mxu2 %vm705_vm8, %v5811_v62  ;;  %1575 = vmatpush.msra.mxu0 %v1359_v24  ;;  %v4355_v24 = vunpack.i.h.bf16 %v5959_v42  ;;  %v1119_v34 = vsel %vm378_vm7, %v4319_v61, %v4320_v35  ;;  %v4335_v46 = vunpack.i.h.bf16 %v5883_v17  ;;  %v1322_v21 = vsel %vm593_vm1, %v4396_v59, %v5253_v47 }
 0x2ef   : > { %v6010_v56 = vpop.permute.xlu0 %4382  ;;  %v6012_v51 = vpop.permute.xlu1 %4387  ;;  %1553 = vmatpush.msrb.mxu3 %v1318_v2  ;;  %v1320_v40 = vsel %vm593_vm1, %v4380_v23, %v4395_v29  ;;  %v1321_v2 = vsel %vm593_vm1, %v4395_v29, %v4396_v59  ;;  %v4345_v23 = vunpack.i.h.bf16 %v5939_v6 }
 0x2f0   : > { %v4385_v36 = vunpack.i.h.bf16 %v6010_v56  ;;  %v4384_v9 = vunpack.i.l.bf16 %v6010_v56  ;;  %v4389_v25 = vunpack.i.l.bf16 %v6012_v51  ;;  %1576 = vmatpush.msra.mxu0 %v1319_v53  ;;  %v4390_v10 = vunpack.i.h.bf16 %v6012_v51 }
 0x2f1   : > { %1554 = vmatpush.msrb.mxu3 %v1278_v37  ;;  %v1281_v53 = vsel %vm550_vm0, %v4364_v5, %v4365_v3  ;;  %v1161_v56 = vsel %vm421_vm6, %v4334_v22, %v4335_v46  ;;  %v1122_v51 = vsel %vm378_vm7, %v4325_v54, %v8397_v19 }
 0x2f2   : > { %1577 = vmatpush.msra.mxu0 %v1279_v57  ;;  %v1400_v12 = vsel %vm679_vm2, %v4370_v14, %v4384_v9  ;;  %v1401_v16 = vsel %vm679_vm2, %v4384_v9, %v4385_v36  ;;  %v1198_v14 = vsel %vm464_vm5, %v4290_v0, %v4339_v44  ;;  %v1360_v43 = vsel %vm636_vm3, %v4375_v26, %v4389_v25 }
 0x2f3   : > { %1555 = vmatpush.msrb.mxu3 %v1238_v30  ;;  %1597 = vmatpush.msra.mxu1 %v1400_v12  ;;  %v1361_v11 = vsel %vm636_vm3, %v4389_v25, %v4390_v10  ;;  %v4354_v0 = vunpack.i.l.bf16 %v5959_v42  ;;  %v1159_v26 = vsel %vm421_vm6, %v4329_v52, %v4330_v38  ;;  %v1280_v44 = vsel %vm550_vm0, %v4360_v32, %v4364_v5 }
 0x2f4   : > { %1578 = vmatpush.msra.mxu0 %v1239_v8  ;;  %1620 = vmatpush.msra.mxu2 %v1401_v16  ;;  %v4344_v42 = vunpack.i.l.bf16 %v5939_v6  ;;  %v4324_v32 = vunpack.i.l.bf16 %v5912_v33  ;;  %v1160_v33 = vsel %vm421_vm6, %v4330_v38, %v4334_v22 }
 0x2f5   : > { %1556 = vmatpush.msrb.mxu3 %v1198_v14  ;;  %1598 = vmatpush.msra.mxu1 %v1360_v43  ;;  %v1240_v58 = vsel %vm507_vm4, %v4350_v28, %v4354_v0  ;;  %v1241_v6 = vsel %vm507_vm4, %v4354_v0, %v4355_v24  ;;  %v1362_v28 = vsel %vm636_vm3, %v4390_v10, %v5265_v55 }
 0x2f6   : > { %3864 = vmatmul.msk.f32.gmra.mxu2 %vm705_vm8, %v5845_v13  ;;  %1579 = vmatpush.msra.mxu0 %v1199_v48  ;;  %v1201_v17 = vsel %vm464_vm5, %v4344_v42, %v4345_v23  ;;  %v1120_v18 = vsel %vm378_vm7, %v4320_v35, %v4324_v32  ;;  %v1282_v55 = vsel %vm550_vm0, %v4365_v3, %v5241_v41 }
 0x2f7   : > { %1621 = vmatpush.msra.mxu2 %v1361_v11  ;;  %1557 = vmatpush.msrb.mxu3 %v1158_v20  ;;  %v1242_v41 = vsel %vm507_vm4, %v4355_v24, %v8394_v49  ;;  %v6133_v25 = vpop.permute.xlu0 %1415 }
 0x2f8   : > { %1580 = vmatpush.msra.mxu0 %v1159_v26  ;;  %1599 = vmatpush.msra.mxu1 %v1320_v40 }
 0x2f9   : > { %1622 = vmatpush.msra.mxu2 %v1321_v2  ;;  %1558 = vmatpush.msrb.mxu3 %v1118_v7 }
 0x2fa   : > { %1581 = vmatpush.msra.mxu0 %v1119_v34  ;;  %1600 = vmatpush.msra.mxu1 %v1280_v44 }
 0x2fb   : > { %1623 = vmatpush.msra.mxu2 %v1281_v53  ;;  %1559 = vmatpush.msrb.mxu3 %v5661_v63  ;;  %v1402_v63 = vsel %vm679_vm2, %v4385_v36, %v5470_v15  ;;  %v1121_v36 = vsel %vm378_vm7, %v4324_v32, %v4325_v54 }
 0x2fc   : > { %1582 = vmatpush.msra.mxu0 %v5705_v39  ;;  %1601 = vmatpush.msra.mxu1 %v1240_v58  ;;  %v1200_v39 = vsel %vm464_vm5, %v4340_v60, %v4344_v42 }
 0x2fd   : > { %1624 = vmatpush.msra.mxu2 %v1241_v6  ;;  %3865 = vmatmul.msk.f32.vlgmr.msrb.gmra.mxu3 %vm705_vm8, %v5811_v62 }
 0x2fe   : > { %3867 = vmatmul.msk.f32.vlgmr.msra.gmra.mxu0 %vm705_vm8, %v5811_v62  ;;  %1643 = vmatpush.msra.mxu3 %v1402_v63 }
 0x2ff   : > { %1602 = vmatpush.msra.mxu1 %v1200_v39  ;;  %1625 = vmatpush.msra.mxu2 %v1201_v17 }
 0x300   : > { %1644 = vmatpush.msra.mxu3 %v1362_v28 }
 0x301   : > { %1603 = vmatpush.msra.mxu1 %v1160_v33  ;;  %1626 = vmatpush.msra.mxu2 %v1161_v56 }
 0x302   : > { %1645 = vmatpush.msra.mxu3 %v1322_v21 }
 0x303   : > { %1604 = vmatpush.msra.mxu1 %v1120_v18  ;;  %1627 = vmatpush.msra.mxu2 %v1121_v36 }
 0x304   : > { %1646 = vmatpush.msra.mxu3 %v1282_v55 }
 0x305   : > { %1605 = vmatpush.msra.mxu1 %v5700_v45  ;;  %1628 = vmatpush.msra.mxu2 %v5702_v27  ;;  %v1202_v45 = vsel %vm464_vm5, %v4345_v23, %v8395_v31  ;;  %v1162_v27 = vsel %vm421_vm6, %v4335_v46, %v8396_v4 }
 0x306   : > { %3866 = vmatmul.msk.f32.gmra.mxu3 %vm705_vm8, %v5845_v13  ;;  %3868 = vmatmul.msk.f32.gmra.mxu0 %vm705_vm8, %v5845_v13 }
 0x307   : > { %3869 = vmatmul.msk.f32.vlgmr.msra.gmra.mxu1 %vm705_vm8, %v5811_v62  ;;  %3871 = vmatmul.msk.f32.vlgmr.msra.gmra.mxu2 %vm705_vm8, %v5811_v62 }
 0x308   : > { %1647 = vmatpush.msra.mxu3 %v1242_v41 }
 0x30a   : > { %1648 = vmatpush.msra.mxu3 %v1202_v45 }
 0x30c   : > { %1649 = vmatpush.msra.mxu3 %v1162_v27 }
 0x30e   : > { %1650 = vmatpush.msra.mxu3 %v1122_v51 }
 0x30f   : > { %3870 = vmatmul.msk.f32.gmra.mxu1 %vm705_vm8, %v5845_v13  ;;  %3872 = vmatmul.msk.f32.gmra.mxu2 %vm705_vm8, %v5845_v13 }
 0x310   : > { %1651 = vmatpush.msra.mxu3 %v5698_v1 }
 0x311   : > { %3873 = vmatmul.msk.f32.vlgmr.msra.gmra.mxu3 %vm705_vm8, %v5811_v62 }
 0x319   : > { %3874 = vmatmul.msk.f32.gmra.mxu3 %vm705_vm8, %v5845_v13 }
 0x327   : > { %v6151_v16 = vpop.permute.xlu1 %1420 }
 0x337   : > { %v1469_v13 = vpop.f32.mrf.mxu3 }
 0x338   : > { %v1470_v52 = vadd.f32 %v1469_v13, %v6133_v25 }
 0x33a   : > { %v6154_v61 = vmax.f32 %v1470_v52, 0.0 }
 0x33f   : > { %v1472_v8 = vpop.f32.mrf.mxu3 }
 0x340   : > { %v1473_v48 = vadd.f32 %v1472_v8, %v6151_v16 }
 0x341   : > { %v1492_v9 = vpop.f32.mrf.mxu0 }
 0x342   : > { %v6136_v37 = vadd.f32 %v1492_v9, %v6133_v25  ;;  %v6170_v0 = vmax.f32 %v1473_v48, 0.0 }
 0x344   : > { %v1661_v30 = vmax.f32 %v6136_v37, 0.0 }
 0x349   : > { %v1495_v12 = vpop.f32.mrf.mxu0 }
 0x34a   : > { %v1496_v14 = vadd.f32 %v1495_v12, %v6151_v16 }
 0x34b   : > { %v1515_v60 = vpop.f32.mrf.mxu1 }
 0x34c   : > { %v6139_v57 = vadd.f32 %v1515_v60, %v6133_v25  ;;  %v6165_v3 = vmax.f32 %v1496_v14, 0.0 }
 0x34e   : > { %v1662_v1 = vmax.f32 %v6139_v57, 0.0  ;;  %v4447_v2 = vpack.i.bf16 %v6165_v3, %v6170_v0 }
 0x350   : > { %v4402_v62 = vpack.i.bf16 %v1662_v1, %v1661_v30 }
 0x352   : > { %4403 = vrot.lane.b32.xlu1 %v4402_v62, %s5019_s17  ;;  %4398 = vrot.lane.b32.xlu0 %v4402_v62, %s5017_s11 }
 0x353   : > { %v1518_v29 = vpop.f32.mrf.mxu1 }
 0x354   : > { %v1519_v43 = vadd.f32 %v1518_v29, %v6151_v16 }
 0x356   : > { %v6167_v11 = vmax.f32 %v1519_v43, 0.0 }
 0x358   : > { %v4427_v40 = vpack.i.bf16 %v6167_v11, %v6165_v3  ;;  %v4432_v7 = vpack.i.bf16 %v6154_v61, %v6167_v11 }
 0x35a   : > { %4408 = vrot.lane.b32.xlu0 %v4402_v62, %s5020_s18 }
 0x35f   : > { %v1446_v10 = vpop.f32.mrf.mxu2 }
 0x360   : > { %v1447_v38 = vadd.f32 %v1446_v10, %v6133_v25 }
 0x362   : > { %v6156_v59 = vmax.f32 %v1447_v38, 0.0 }
 0x364   : > { %v4417_v35 = vpack.i.bf16 %v6154_v61, %v6156_v59 }
 0x366   : > { %4418 = vrot.lane.b32.xlu0 %v4417_v35, %s5019_s17  ;;  %4413 = vrot.lane.b32.xlu2 %v4417_v35, %s5017_s11 }
 0x367   : > { %v1449_v5 = vpop.f32.mrf.mxu2 }
 0x368   : > { %v1450_v20 = vadd.f32 %v1449_v5, %v6151_v16 }
 0x36a   : > { %v6172_v26 = vmax.f32 %v1450_v20, 0.0 }
 0x36c   : > { %v4437_v24 = vpack.i.bf16 %v6170_v0, %v6172_v26  ;;  %v4452_v44 = vpack.i.bf16 %v6156_v59, %v6172_v26 }
 0x36e   : > { %4438 = vrot.lane.b32.xlu1 %v4437_v24, %s5017_s11  ;;  %4428 = vrot.lane.b32.xlu0 %v4427_v40, %s5019_s17 }
 0x36f   : > { %4423 = vrot.lane.b32.xlu2 %v4427_v40, %s5017_s11 }
 0x371   : > { %v1538_v34 = vpop.f32.mrf.mxu2 }
 0x372   : > { %v1539_v42 = vadd.f32 %v1538_v34, %v6133_v25 }
 0x374   : > { %v6193_v46 = vmax.f32 %v1539_v42, 0.0 }
 0x376   : > { %4448 = vrot.lane.b32.xlu1 %v4447_v2, %s5020_s18 }
 0x377   : > { %4433 = vrot.lane.b32.xlu2 %v4432_v7, %s5020_s18 }
 0x379   : > { %v1541_v55 = vpop.f32.mrf.mxu2 }
 0x37a   : > { %v1542_v60 = vadd.f32 %v1541_v55, %v6151_v16 }
 0x37b   : > { %v1584_v23 = vpop.f32.mrf.mxu0 }
 0x37c   : > { %v1585_v22 = vadd.f32 %v1584_v23, %v6133_v25  ;;  %v6227_v10 = vmax.f32 %v1542_v60, 0.0  ;;  %v6269_v23 = vpop.permute.xlu1 %2522 }
 0x37d   : > { %8402 = vst [vmem:[#allocation7_spill] sm:$0xff] %v6269_v23 }
 0x37e   : > { %4453 = vrot.lane.b32.xlu1 %v4452_v44, %s5020_s18  ;;  %v6201_v39 = vmax.f32 %v1585_v22, 0.0 }
 0x37f   : > { %4443 = vrot.lane.b32.xlu2 %v4437_v24, %s5019_s17 }
 0x380   : > { %v1561_v53 = vpop.f32.mrf.mxu3 }
 0x381   : > { %v1562_v58 = vadd.f32 %v1561_v53, %v6133_v25 }
 0x383   : > { %v6196_v6 = vmax.f32 %v1562_v58, 0.0  ;;  %v1587_v28 = vpop.f32.mrf.mxu0 }
 0x384   : > { %v1607_v63 = vpop.f32.mrf.mxu1  ;;  %v1588_v21 = vadd.f32 %v1587_v28, %v6151_v16  ;;  %v6273_v58 = vpop.permute.xlu1 %2446 }
 0x385   : > { %v1608_v54 = vadd.f32 %v1607_v63, %v6133_v25  ;;  %v4467_v32 = vpack.i.bf16 %v6196_v6, %v6193_v46  ;;  %v4477_v9 = vpack.i.bf16 %v6201_v39, %v6196_v6  ;;  %8403 = vst [vmem:[#allocation6_spill] sm:$0xff] %v6273_v58 }
 0x386   : > { %v6212_v41 = vmax.f32 %v1588_v21, 0.0 }
 0x387   : > { %v6203_v17 = vmax.f32 %v1608_v54, 0.0  ;;  %4468 = vrot.lane.b32.xlu1 %v4467_v32, %s5017_s11 }
 0x389   : > { %v4462_v33 = vpack.i.bf16 %v6203_v17, %v6201_v39  ;;  %v1564_v56 = vpop.f32.mrf.mxu3 }
 0x38a   : > { %v1565_v27 = vadd.f32 %v1564_v56, %v6151_v16  ;;  %v1630_v52 = vpop.f32.mrf.mxu2 }
 0x38b   : > { %4463 = vrot.lane.b32.xlu0 %v4462_v33, %s5019_s17  ;;  %4458 = vrot.lane.b32.xlu2 %v4462_v33, %s5017_s11  ;;  %v1631_v29 = vadd.f32 %v1630_v52, %v6133_v25 }
 0x38c   : > { %v1610_v18 = vpop.f32.mrf.mxu1  ;;  %v6225_v13 = vmax.f32 %v1565_v27, 0.0 }
 0x38d   : > { %v1611_v36 = vadd.f32 %v1610_v18, %v6151_v16  ;;  %v6238_v43 = vmax.f32 %v1631_v29, 0.0 }
 0x38e   : > { %v4492_v38 = vpack.i.bf16 %v6225_v13, %v6227_v10  ;;  %v4507_v20 = vpack.i.bf16 %v6212_v41, %v6225_v13 }
 0x38f   : > { %v6214_v45 = vmax.f32 %v1611_v36, 0.0  ;;  %v4522_v34 = vpack.i.bf16 %v6238_v43, %v6203_v17 }
 0x391   : > { %v4482_v51 = vpack.i.bf16 %v6214_v45, %v6212_v41 }
 0x392   : > { %v1633_v35 = vpop.f32.mrf.mxu2 }
 0x393   : > { %4483 = vrot.lane.b32.xlu1 %v4482_v51, %s5017_s11  ;;  %4478 = vrot.lane.b32.xlu0 %v4477_v9, %s5020_s18  ;;  %v1634_v40 = vadd.f32 %v1633_v35, %v6151_v16 }
 0x394   : > { %v1653_v62 = vpop.f32.mrf.mxu3  ;;  %4473 = vrot.lane.b32.xlu2 %v4467_v32, %s5019_s17 }
 0x395   : > { %v1654_v12 = vadd.f32 %v1653_v62, %v6133_v25  ;;  %v4502_v25 = vpack.i.bf16 %v6193_v46, %v6227_v10  ;;  %v6253_v2 = vmax.f32 %v1634_v40, 0.0 }
 0x397   : > { %v6236_v8 = vmax.f32 %v1654_v12, 0.0  ;;  %v4537_v44 = vpack.i.bf16 %v6253_v2, %v6214_v45 }
 0x399   : > { %v4517_v5 = vpack.i.bf16 %v6236_v8, %v6238_v43 }
 0x39b   : > { %4488 = vrot.lane.b32.xlu1 %v4482_v51, %s5019_s17  ;;  %4493 = vrot.lane.b32.xlu0 %v4492_v38, %s5017_s11 }
 0x39c   : > { %4498 = vrot.lane.b32.xlu2 %v4492_v38, %s5019_s17  ;;  %v1656_v14 = vpop.f32.mrf.mxu3 }
 0x39d   : > { %v1657_v48 = vadd.f32 %v1656_v14, %v6151_v16 }
 0x39f   : > { %v6251_v24 = vmax.f32 %v1657_v48, 0.0 }
 0x3a1   : > { %v4532_v7 = vpack.i.bf16 %v6251_v24, %v6253_v2  ;;  %v4542_v16 = vpack.i.bf16 %v6236_v8, %v6251_v24 }
 0x3a3   : > { %4518 = vrot.lane.b32.xlu1 %v4517_v5, %s5019_s17  ;;  %4503 = vrot.lane.b32.xlu0 %v4502_v25, %s5020_s18 }
 0x3a4   : > { %4508 = vrot.lane.b32.xlu2 %v4507_v20, %s5020_s18 }
 0x3ab   : > { %4533 = vrot.lane.b32.xlu1 %v4532_v7, %s5019_s17  ;;  %4513 = vrot.lane.b32.xlu0 %v4517_v5, %s5017_s11  ;;  %s5029_s17 = smov 56  }
 0x3ac   : > { %4528 = vrot.lane.b32.xlu2 %v4532_v7, %s5017_s11  ;;  %s5028_s11 = smov 124  }
 0x3b3   : > { %4543 = vrot.lane.b32.xlu1 %v4542_v16, %s5020_s18  ;;  %4523 = vrot.lane.b32.xlu0 %v4522_v34, %s5020_s18 }
 0x3b4   : > { %4538 = vrot.lane.b32.xlu2 %v4537_v44, %s5020_s18  ;;  %s5030_s18 = smov 116  }
 0x3c0   : > { %v4414_v42 = vpop.permute.xlu2 %4413 }
 0x3c1   : > { %v4416_v56 = vunpack.i.h.bf16 %v4414_v42  ;;  %v4415_v16 = vunpack.i.l.bf16 %v4414_v42 }
 0x3c3   : > { %v1739_v44 = vsel %vm378_vm7, %v4415_v16, %v4416_v56 }
 0x3c4   : > { %v6271_v53 = vpop.permute.xlu0 %4398  ;;  %v6281_v28 = vpop.permute.xlu1 %4403 }
 0x3c5   : > { %v4401_v54 = vunpack.i.h.bf16 %v6271_v53  ;;  %v4400_v32 = vunpack.i.l.bf16 %v6271_v53  ;;  %v8308_v18 = vunpack.i.h.bf16 %v6281_v28  ;;  %v4405_v36 = vunpack.i.l.bf16 %v6281_v28 }
 0x3c7   : > { %v1741_v21 = vsel %vm378_vm7, %v4400_v32, %v4401_v54  ;;  %v1740_v55 = vsel %vm378_vm7, %v4416_v56, %v4400_v32  ;;  %v1841_v38 = vsel %vm464_vm5, %v4405_v36, %v8308_v18 }
 0x3c8   : > { %v1781_v9 = vmax.f32 %v1661_v30, %v1741_v21  ;;  %v1780_v12 = vmax.f32 %v6154_v61, %v1740_v55 }
 0x3c9   : > { %v6275_v22 = vpop.permute.xlu2 %4423 }
 0x3ca   : > { %v1881_v35 = vmax.f32 %v1781_v9, %v1841_v38  ;;  %v4426_v9 = vunpack.i.h.bf16 %v6275_v22 }
 0x3cc   : > { %v6277_v63 = vpop.permute.xlu0 %4408 }
 0x3cd   : > { %v8302_v27 = vunpack.i.h.bf16 %v6277_v63  ;;  %v4410_v51 = vunpack.i.l.bf16 %v6277_v63 }
 0x3cf   : > { %v1941_v29 = vsel %vm507_vm4, %v4410_v51, %v8302_v27 }
 0x3d0   : > { %v6305_v5 = vmax.f32 %v1881_v35, %v1941_v29 }
 0x3d1   : > { %v6283_v33 = vpop.permute.xlu2 %4433 }
 0x3d2   : > { %v4436_v62 = vunpack.i.h.bf16 %v6283_v33 }
 0x3d4   : > { %v1940_v37 = vsel %vm507_vm4, %v4436_v62, %v4410_v51  ;;  %v1779_v51 = vmax.f32 %v6156_v59, %v1739_v44 }
 0x3d8   : > { %v4419_v60 = vpop.permute.xlu0 %4418 }
 0x3d9   : > { %v4421_v52 = vunpack.i.h.bf16 %v4419_v60  ;;  %v4444_v30 = vpop.permute.xlu2 %4443  ;;  %v4420_v34 = vunpack.i.l.bf16 %v4419_v60 }
 0x3da   : > { %v4446_v16 = vunpack.i.h.bf16 %v4444_v30 }
 0x3db   : > { %v1840_v14 = vsel %vm464_vm5, %v4421_v52, %v4405_v36  ;;  %v1839_v36 = vsel %vm464_vm5, %v4420_v34, %v4421_v52 }
 0x3dc   : > { %v1880_v48 = vmax.f32 %v1780_v12, %v1840_v14  ;;  %v4425_v12 = vunpack.i.l.bf16 %v6275_v22  ;;  %v1879_v14 = vmax.f32 %v1779_v51, %v1839_v36 }
 0x3de   : > { %v6307_v25 = vmax.f32 %v1880_v48, %v1940_v37  ;;  %v1751_v52 = vsel %vm378_vm7, %v4425_v12, %v4426_v9 }
 0x3e0   : > { %v4439_v61 = vpop.permute.xlu1 %4438  ;;  %v4552_v20 = vpack.i.bf16 %v6305_v5, %v6307_v25  ;;  %v6319_v55 = vpop.permute.xlu0 %4428 }
 0x3e1   : > { %v4441_v32 = vunpack.i.h.bf16 %v4439_v61  ;;  %v8303_v56 = vunpack.i.h.bf16 %v6319_v55  ;;  %v4430_v60 = vunpack.i.l.bf16 %v6319_v55  ;;  %v4440_v34 = vunpack.i.l.bf16 %v4439_v61 }
 0x3e2   : > { %4553 = vrot.lane.b32.xlu1 %v4552_v20, %s5027_s23  ;;  %4548 = vrot.lane.b32.xlu2 %v4552_v20, %s5026_s21  ;;  %v8301_v20 = vunpack.i.l.bf16 %v6283_v33 }
 0x3e3   : > { %v1750_v42 = vsel %vm378_vm7, %v4441_v32, %v4425_v12  ;;  %v1851_v36 = vsel %vm464_vm5, %v4430_v60, %v8303_v56  ;;  %v1791_v12 = vmax.f32 %v6165_v3, %v1751_v52  ;;  %v4445_v3 = vunpack.i.l.bf16 %v4444_v30 }
 0x3e4   : > { %v1790_v44 = vmax.f32 %v6170_v0, %v1750_v42  ;;  %v1749_v0 = vsel %vm378_vm7, %v4440_v34, %v4441_v32 }
 0x3e5   : > { %v6313_v40 = vpop.permute.xlu2 %4458  ;;  %v1891_v42 = vmax.f32 %v1791_v12, %v1851_v36  ;;  %v1849_v32 = vsel %vm464_vm5, %v4445_v3, %v4446_v16 }
 0x3e8   : > { %v4449_v7 = vpop.permute.xlu1 %4448 }
 0x3e9   : > { %v4451_v59 = vunpack.i.h.bf16 %v4449_v7  ;;  %v4450_v48 = vunpack.i.l.bf16 %v4449_v7  ;;  %v1850_v7 = vsel %vm464_vm5, %v4446_v16, %v4430_v60 }
 0x3eb   : > { %v1951_v61 = vsel %vm507_vm4, %v4451_v59, %v8301_v20 }
 0x3ee   : > { %v6316_v21 = vpop.permute.xlu2 %4473 }
 0x3ef   : > { %v4476_v53 = vunpack.i.h.bf16 %v6316_v21 }
 0x3f0   : > { %v4454_v38 = vpop.permute.xlu1 %4453 }
 0x3f1   : > { %v4456_v29 = vunpack.i.h.bf16 %v4454_v38  ;;  %v4455_v52 = vunpack.i.l.bf16 %v4454_v38 }
 0x3f3   : > { %v1939_v35 = vsel %vm507_vm4, %v4456_v29, %v4436_v62  ;;  %v1950_v29 = vsel %vm507_vm4, %v4450_v48, %v4451_v59  ;;  %v1789_v59 = vmax.f32 %v6172_v26, %v1749_v0  ;;  %v1949_v34 = vsel %vm507_vm4, %v4455_v52, %v4450_v48 }
 0x3f4   : > { %v6331_v37 = vmax.f32 %v1879_v14, %v1939_v35  ;;  %v1890_v14 = vmax.f32 %v1790_v44, %v1850_v7  ;;  %v6354_v35 = vmax.f32 %v1891_v42, %v1951_v61  ;;  %v8306_v52 = vunpack.i.l.bf16 %v6313_v40 }
 0x3f5   : > { %v1889_v30 = vmax.f32 %v1789_v59, %v1849_v32 }
 0x3f6   : > { %v6338_v51 = vpop.permute.xlu2 %4498  ;;  %v4572_v62 = vpack.i.bf16 %v6307_v25, %v6331_v37  ;;  %v6352_v60 = vmax.f32 %v1890_v14, %v1950_v29 }
 0x3f7   : > { %v6368_v26 = vmax.f32 %v1889_v30, %v1949_v34 }
 0x3f8   : > { %4573 = vrot.lane.b32.xlu1 %v4572_v62, %s5028_s11  ;;  %4563 = vrot.lane.b32.xlu2 %v4572_v62, %s5024_s22  ;;  %v4587_v44 = vpack.i.bf16 %v6354_v35, %v6352_v60 }
 0x3f9   : > { %4558 = vrot.lane.b32.xlu0 %v4572_v62, %s5029_s17  ;;  %v4469_v20 = vpop.permute.xlu1 %4468  ;;  %v4592_v48 = vpack.i.bf16 %v6352_v60, %v6368_v26 }
 0x3fa   : > { %v4470_v29 = vunpack.i.l.bf16 %v4469_v20  ;;  %v4471_v61 = vunpack.i.h.bf16 %v4469_v20 }
 0x3fc   : > { %v1742_v34 = vsel %vm378_vm7, %v4401_v54, %v4470_v29  ;;  %v1743_v20 = vsel %vm378_vm7, %v4470_v29, %v4471_v61  ;;  %v4475_v54 = vunpack.i.l.bf16 %v6316_v21 }
 0x3fd   : > { %v6357_v27 = vpop.permute.xlu0 %4463  ;;  %v1782_v22 = vmax.f32 %v1662_v1, %v1742_v34 }
 0x3fe   : > { %v6359_v56 = vpop.permute.xlu2 %4508  ;;  %v4465_v30 = vunpack.i.l.bf16 %v6357_v27 }
 0x400   : > { %4578 = vrot.lane.b32.xlu1 %v4572_v62, %s5018_s16  ;;  %4568 = vrot.lane.b32.xlu2 %v4572_v62, %s5022_s20  ;;  %v1844_v18 = vsel %vm464_vm5, %v4476_v53, %v4465_v30 }
 0x401   : > { %4588 = vrot.lane.b32.xlu0 %v4587_v44, %s5027_s23 }
 0x405   : > { %v6370_v38 = vpop.permute.xlu1 %4483  ;;  %v6372_v36 = vpop.permute.xlu0 %4478 }
 0x406   : > { %v8304_v16 = vunpack.i.h.bf16 %v6370_v38  ;;  %v6375_v12 = vpop.permute.xlu2 %4528 }
 0x407   : > { %v8307_v7 = vunpack.i.l.bf16 %v6375_v12 }
 0x408   : > { %4583 = vrot.lane.b32.xlu1 %v4587_v44, %s5026_s21  ;;  %4593 = vrot.lane.b32.xlu2 %v4592_v48, %s5029_s17  ;;  %v1744_v44 = vsel %vm378_vm7, %v4471_v61, %v8306_v52  ;;  %v8314_v61 = vunpack.i.l.bf16 %v6338_v51  ;;  %v1783_v52 = vmax.f32 %v6193_v46, %v1743_v20  ;;  %v4617_v46 = vpack.i.bf16 %v6307_v25, %v6352_v60 }
 0x409   : > { %v6387_v62 = vsel %vm378_vm7, %v8304_v16, %v8307_v7  ;;  %4603 = vrot.lane.b32.xlu0 %v4592_v48, %s5022_s20  ;;  %v1784_v21 = vmax.f32 %v6196_v6, %v1744_v44  ;;  %v1843_v6 = vsel %vm464_vm5, %v4475_v54, %v4476_v53  ;;  %v8406_v44 = vunpack.i.h.bf16 %v6277_v63 }
 0x40a   : > { %v1883_v4 = vmax.f32 %v1783_v52, %v1843_v6 }
 0x40b   : > { %v1884_v20 = vmax.f32 %v1784_v21, %v1844_v18  ;;  %v4531_v21 = vunpack.i.h.bf16 %v6375_v12 }
 0x40d   : > { %v6390_v0 = vpop.permute.xlu1 %4488  ;;  %v6392_v14 = vpop.permute.xlu0 %4493 }
 0x40e   : > { %v8305_v42 = vunpack.i.l.bf16 %v6392_v14  ;;  %v6395_v3 = vpop.permute.xlu2 %4538 }
 0x40f   : > { %v8310_v59 = vunpack.i.h.bf16 %v6395_v3  ;;  %v8309_v32 = vunpack.i.l.bf16 %v6395_v3 }
 0x410   : > { %4598 = vrot.lane.b32.xlu1 %v4592_v48, %s5024_s22  ;;  %v1752_v16 = vsel %vm378_vm7, %v4426_v9, %v8305_v42  ;;  %4613 = vrot.lane.b32.xlu2 %v4592_v48, %s5018_s16  ;;  %v4481_v9 = vunpack.i.h.bf16 %v6372_v36  ;;  %v4480_v42 = vunpack.i.l.bf16 %v6372_v36  ;;  %v4490_v36 = vunpack.i.l.bf16 %v6390_v0 }
 0x411   : > { %v1956_v29 = vsel %vm507_vm4, %v8309_v32, %v8310_v59  ;;  %4608 = vrot.lane.b32.xlu0 %v4592_v48, %s5028_s11  ;;  %v1792_v7 = vmax.f32 %v6167_v11, %v1752_v16  ;;  %v8404_v59 = vunpack.i.h.bf16 %v6281_v28  ;;  %v8405_v11 = vunpack.i.h.bf16 %v6319_v55 }
 0x412   : > { %v1944_v28 = vsel %vm507_vm4, %v4480_v42, %v4481_v9  ;;  %v8408_v55 = vunpack.i.l.bf16 %v6283_v33 }
 0x413   : > { %v1842_v57 = vsel %vm464_vm5, %v8404_v59, %v4475_v54  ;;  %v1852_v16 = vsel %vm464_vm5, %v8405_v11, %v8314_v61  ;;  %v6464_v18 = vmax.f32 %v1884_v20, %v1944_v28 }
 0x414   : > { %v1882_v59 = vmax.f32 %v1782_v22, %v1842_v57  ;;  %v1892_v47 = vmax.f32 %v1792_v7, %v1852_v16  ;;  %v4491_v57 = vunpack.i.h.bf16 %v6390_v0  ;;  %v4466_v16 = vunpack.i.h.bf16 %v6357_v27 }
 0x415   : > { %v6432_v32 = vpop.permute.xlu1 %4518  ;;  %v6434_v48 = vpop.permute.xlu0 %4503  ;;  %8409 = vst [vmem:[#allocation4_spill] sm:$0xff] %v6464_v18 }
 0x416   : > { %v4506_v1 = vunpack.i.h.bf16 %v6434_v48  ;;  %v8407_v54 = vunpack.i.l.bf16 %v6434_v48 }
 0x418   : > { %v1942_v34 = vsel %vm507_vm4, %v8406_v44, %v4506_v1  ;;  %v1943_v53 = vsel %vm507_vm4, %v4506_v1, %v4480_v42  ;;  %v1952_v11 = vsel %vm507_vm4, %v8408_v55, %v8407_v54  ;;  %4618 = vrot.lane.b32.xlu2 %v4617_v46, %s5030_s18  ;;  %v1845_v54 = vsel %vm464_vm5, %v4465_v30, %v4466_v16 }
 0x419   : > { %v6461_v61 = vmax.f32 %v1882_v59, %v1942_v34  ;;  %v6466_v63 = vmax.f32 %v1883_v4, %v1943_v53  ;;  %v6468_v22 = vmax.f32 %v1892_v47, %v1952_v11  ;;  %v4461_v47 = vunpack.i.h.bf16 %v6313_v40 }
 0x41a   : > { %v1796_v4 = vmax.f32 %v6214_v45, %v6387_v62  ;;  %v8411_v59 = vunpack.i.l.bf16 %v6375_v12  ;;  %v8412_v62 = vunpack.i.l.bf16 %v6313_v40 }
 0x41b   : > { %8410 = vst [vmem:[#allocation2_spill] sm:$0xff] %v6466_v63  ;;  %v4642_v7 = vpack.i.bf16 %v6466_v63, %v6461_v61  ;;  %v4637_v42 = vpack.i.bf16 %v6464_v18, %v6466_v63  ;;  %v4622_v34 = vpack.i.bf16 %v6461_v61, %v6305_v5 }
 0x41c   : > { %v1757_v45 = vsel %vm378_vm7, %v8411_v59, %v4531_v21  ;;  %v1745_v20 = vsel %vm378_vm7, %v8412_v62, %v4461_v47  ;;  %v4496_v62 = vunpack.i.h.bf16 %v6392_v14 }
 0x41d   : > { %v6474_v33 = vpop.permute.xlu1 %4533  ;;  %v6476_v52 = vpop.permute.xlu0 %4513  ;;  %4643 = vrot.lane.b32.xlu1 %v4642_v7, %s5029_s17  ;;  %4638 = vrot.lane.b32.xlu0 %v4637_v42, %s5030_s18  ;;  %v1797_v55 = vmax.f32 %v6253_v2, %v1757_v45  ;;  %v8414_v2 = vunpack.i.h.bf16 %v6395_v3 }
 0x41e   : > { %v4535_v1 = vunpack.i.l.bf16 %v6474_v33  ;;  %v4536_v46 = vunpack.i.h.bf16 %v6474_v33 }
 0x420   : > { %v1856_v6 = vsel %vm464_vm5, %v4491_v57, %v4535_v1  ;;  %4623 = vrot.lane.b32.xlu2 %v4622_v34, %s5030_s18  ;;  %v1857_v53 = vsel %vm464_vm5, %v4535_v1, %v4536_v46  ;;  %v1785_v34 = vmax.f32 %v6201_v39, %v1745_v20 }
 0x421   : > { %v1896_v28 = vmax.f32 %v1796_v4, %v1856_v6  ;;  %v1897_v1 = vmax.f32 %v1797_v55, %v1857_v53  ;;  %v4485_v53 = vunpack.i.l.bf16 %v6370_v38  ;;  %v8417_v55 = vunpack.i.l.bf16 %v6392_v14 }
 0x423   : > { %v6504_v44 = vmax.f32 %v1896_v28, %v1956_v29  ;;  %v1885_v28 = vmax.f32 %v1785_v34, %v1845_v54  ;;  %v1754_v54 = vsel %vm378_vm7, %v4496_v62, %v4485_v53  ;;  %v1753_v34 = vsel %vm378_vm7, %v8417_v55, %v4496_v62 }
 0x425   : > { %8413 = vst [vmem:[#allocation3_spill] sm:$0xff] %v6504_v44  ;;  %v6513_v11 = vpop.permute.xlu1 %4543  ;;  %v6515_v4 = vpop.permute.xlu0 %4523  ;;  %4663 = vrot.lane.b32.xlu1 %v4642_v7, %s5028_s11  ;;  %4648 = vrot.lane.b32.xlu0 %v4642_v7, %s5024_s22 }
 0x426   : > { %v8315_v6 = vunpack.i.l.bf16 %v6513_v11  ;;  %v4525_v29 = vunpack.i.l.bf16 %v6515_v4 }
 0x428   : > { %v1957_v30 = vsel %vm507_vm4, %v8414_v2, %v8315_v6  ;;  %v1945_v39 = vsel %vm507_vm4, %v4481_v9, %v4525_v29  ;;  %4628 = vrot.lane.b32.xlu2 %v4637_v42, %s5026_s21  ;;  %v1794_v9 = vmax.f32 %v6225_v13, %v1754_v54  ;;  %v4510_v2 = vunpack.i.l.bf16 %v6359_v56 }
 0x429   : > { %v6527_v59 = vmax.f32 %v1897_v1, %v1957_v30  ;;  %v6535_v45 = vmax.f32 %v1885_v28, %v1945_v39  ;;  %v4501_v1 = vunpack.i.h.bf16 %v6338_v51  ;;  %v4511_v28 = vunpack.i.h.bf16 %v6359_v56 }
 0x42a   : > { %v1793_v39 = vmax.f32 %v6227_v10, %v1753_v34  ;;  %v8418_v13 = vunpack.i.l.bf16 %v6338_v51 }
 0x42b   : > { %8415 = vst [vmem:[#allocation10_spill] sm:$0xff] %v6527_v59  ;;  %v4657_v20 = vpack.i.bf16 %v6535_v45, %v6464_v18  ;;  %v1854_v30 = vsel %vm464_vm5, %v4501_v1, %v4490_v36  ;;  %v1954_v54 = vsel %vm507_vm4, %v4510_v2, %v4511_v28 }
 0x42c   : > { %8416 = vst [vmem:[#allocation11_spill] sm:$0xff] %v6535_v45  ;;  %v1894_v6 = vmax.f32 %v1794_v9, %v1854_v30  ;;  %v1853_v14 = vsel %vm464_vm5, %v8418_v13, %v4501_v1  ;;  %v4526_v13 = vunpack.i.h.bf16 %v6515_v4  ;;  %v4546_v4 = vunpack.i.h.bf16 %v6513_v11 }
 0x42d   : > { %4673 = vrot.lane.b32.xlu1 %v4642_v7, %s5018_s16  ;;  %4658 = vrot.lane.b32.xlu0 %v4657_v20, %s5029_s17  ;;  %v1893_v56 = vmax.f32 %v1793_v39, %v1853_v14  ;;  %v4520_v39 = vunpack.i.l.bf16 %v6432_v32 }
 0x42e   : > { %v6565_v55 = vmax.f32 %v1894_v6, %v1954_v54  ;;  %v1946_v54 = vsel %vm507_vm4, %v4525_v29, %v4526_v13 }
 0x430   : > { %4633 = vrot.lane.b32.xlu2 %v4637_v42, %s5027_s23  ;;  %v8419_v42 = vunpack.i.l.bf16 %v6434_v48  ;;  %8420 = vst [vmem:[#allocation12_spill] sm:$0xff] %v6565_v55  ;;  %v4707_v9 = vpack.i.bf16 %v6461_v61, %v6565_v55  ;;  %v8422_v48 = vunpack.i.h.bf16 %v6370_v38  ;;  %v8423_v38 = vunpack.i.l.bf16 %v6395_v3 }
 0x432   : > { %v1953_v62 = vsel %vm507_vm4, %v8419_v42, %v4510_v2  ;;  %v1755_v34 = vsel %vm378_vm7, %v4485_v53, %v8422_v48  ;;  %v6590_v2 = vpack.i.bf16 %v6468_v22, %v6354_v35  ;;  %v1955_v53 = vsel %vm507_vm4, %v4511_v28, %v8423_v38 }
 0x433   : > { %v6567_v10 = vmax.f32 %v1893_v56, %v1953_v62  ;;  %v1795_v6 = vmax.f32 %v6212_v41, %v1755_v34  ;;  %v4516_v62 = vunpack.i.h.bf16 %v6476_v52 }
 0x435   : > { %4683 = vrot.lane.b32.xlu1 %v4657_v20, %s5028_s11  ;;  %4668 = vrot.lane.b32.xlu0 %v4657_v20, %s5024_s22  ;;  %8421 = vst [vmem:[#allocation13_spill] sm:$0xff] %v6567_v10  ;;  %v6575_v51 = vpack.i.bf16 %v6305_v5, %v6567_v10  ;;  %v4727_v41 = vpack.i.bf16 %v6565_v55, %v6567_v10 }
 0x436   : > { %v4702_v14 = vpack.i.bf16 %v6567_v10, %v6468_v22 }
 0x438   : > { %4653 = vrot.lane.b32.xlu2 %v4642_v7, %s5022_s20  ;;  %v1855_v7 = vsel %vm464_vm5, %v4490_v36, %v4491_v57  ;;  %v4515_v36 = vunpack.i.l.bf16 %v6476_v52  ;;  %v1748_v52 = vsel %vm378_vm7, %v4516_v62, %v8397_v19 }
 0x439   : > { %v1895_v1 = vmax.f32 %v1795_v6, %v1855_v7  ;;  %v1788_v29 = vmax.f32 %v6236_v8, %v1748_v52  ;;  %v1947_v8 = vsel %vm507_vm4, %v4526_v13, %v4546_v4 }
 0x43a   : > { %v1746_v28 = vsel %vm378_vm7, %v4461_v47, %v4515_v36  ;;  %v1846_v47 = vsel %vm464_vm5, %v4466_v16, %v4520_v39  ;;  %v1747_v56 = vsel %vm378_vm7, %v4515_v36, %v4516_v62  ;;  %v4521_v16 = vunpack.i.h.bf16 %v6432_v32 }
 0x43b   : > { %v6597_v0 = vmax.f32 %v1895_v1, %v1955_v53  ;;  %v1786_v42 = vmax.f32 %v6203_v17, %v1746_v28  ;;  %v1787_v34 = vmax.f32 %v6238_v43, %v1747_v56  ;;  %v1948_v32 = vsel %vm507_vm4, %v4546_v4, %v8394_v49 }
 0x43c   : > { %v6599_v57 = vpop.permute.xlu2 %4548  ;;  %v1848_v6 = vsel %vm464_vm5, %v4521_v16, %v8395_v31  ;;  %v1847_v1 = vsel %vm464_vm5, %v4520_v39, %v4521_v16 }
 0x43d   : > { %4708 = vrot.lane.b32.xlu1 %v4707_v9, %s5026_s21  ;;  %4678 = vrot.lane.b32.xlu0 %v4657_v20, %s5022_s20  ;;  %8424 = vst [vmem:[#allocation14_spill] sm:$0xff] %v6597_v0  ;;  %v6634_v40 = vpack.i.bf16 %v6597_v0, %v6565_v55  ;;  %v1886_v17 = vmax.f32 %v1786_v42, %v1846_v47  ;;  %v8322_v56 = vunpack.i.h.bf16 %v6599_v57 }
 0x43e   : > { %v1888_v38 = vmax.f32 %v1788_v29, %v1848_v6  ;;  %v1887_v43 = vmax.f32 %v1787_v34, %v1847_v1 }
 0x43f   : > { %v6651_v27 = vmax.f32 %v1886_v17, %v1946_v54 }
 0x440   : > { %4733 = vrot.lane.b32.xlu2 %v6575_v51, %s5029_s17 }
 0x441   : > { %8425 = vst [vmem:[#allocation15_spill] sm:$0xff] %v6651_v27  ;;  %v4802_v7 = vpack.i.bf16 %v6651_v27, %v6535_v45 }
 0x445   : > { %4718 = vrot.lane.b32.xlu1 %v4707_v9, %s5027_s23  ;;  %4688 = vrot.lane.b32.xlu0 %v4657_v20, %s5018_s16  ;;  %v4692_v20 = vpack.i.bf16 %v6535_v45, %v6597_v0 }
 0x448   : > { %4738 = vrot.lane.b32.xlu2 %v6590_v2, %s5024_s22 }
 0x44d   : > { %4728 = vrot.lane.b32.xlu1 %v4727_v41, %s5030_s18  ;;  %4693 = vrot.lane.b32.xlu0 %v4692_v20, %s5030_s18  ;;  %v6671_v41 = vmax.f32 %v1888_v38, %v1948_v32  ;;  %v6673_v20 = vmax.f32 %v1887_v43, %v1947_v8  ;;  %v1758_v8 = vsel %vm378_vm7, %v4531_v21, %v8397_v19 }
 0x44e   : > { %v1798_v12 = vmax.f32 %v6251_v24, %v1758_v8  ;;  %v1858_v21 = vsel %vm464_vm5, %v4536_v46, %v8395_v31  ;;  %v8428_v24 = vunpack.i.l.bf16 %v6513_v11 }
 0x44f   : > { %8426 = vst [vmem:[#allocation16_spill] sm:$0xff] %v6671_v41  ;;  %v4812_v39 = vpack.i.bf16 %v6671_v41, %v6673_v20  ;;  %v6698_v62 = vpack.i.bf16 %v6673_v20, %v6651_v27 }
 0x450   : > { %4768 = vrot.lane.b32.xlu2 %v6575_v51, %s5028_s11  ;;  %8427 = vst [vmem:[#allocation17_spill] sm:$0xff] %v6673_v20  ;;  %v1958_v33 = vsel %vm507_vm4, %v8428_v24, %v8394_v49  ;;  %v1898_v31 = vmax.f32 %v1798_v12, %v1858_v21 }
 0x452   : > { %v6609_v3 = vpop.permute.xlu2 %4563 }
 0x453   : > { %v8318_v49 = vunpack.i.h.bf16 %v6609_v3  ;;  %v4565_v11 = vunpack.i.l.bf16 %v6609_v3 }
 0x454   : > { %v6647_v9 = vpop.permute.xlu1 %4553 }
 0x455   : > { %4743 = vrot.lane.b32.xlu1 %v6575_v51, %s5024_s22  ;;  %4698 = vrot.lane.b32.xlu0 %v6590_v2, %s5030_s18  ;;  %v8317_v38 = vunpack.i.h.bf16 %v6647_v9 }
 0x458   : > { %4773 = vrot.lane.b32.xlu2 %v6590_v2, %s5018_s16 }
 0x45a   : > { %v6621_v30 = vpop.permute.xlu2 %4568 }
 0x45d   : > { %4748 = vrot.lane.b32.xlu1 %v6590_v2, %s5022_s20  ;;  %4703 = vrot.lane.b32.xlu0 %v4702_v14, %s5026_s21 }
 0x460   : > { %4788 = vrot.lane.b32.xlu2 %v6634_v40, %s5022_s20 }
 0x462   : > { %v6649_v48 = vpop.permute.xlu2 %4593 }
 0x463   : > { %v8316_v43 = vunpack.i.h.bf16 %v6649_v48 }
 0x465   : > { %4763 = vrot.lane.b32.xlu1 %v6634_v40, %s5029_s17  ;;  %4713 = vrot.lane.b32.xlu0 %v4702_v14, %s5027_s23 }
 0x468   : > { %4803 = vrot.lane.b32.xlu2 %v4802_v7, %s5026_s21 }
 0x46a   : > { %v6669_v53 = vpop.permute.xlu1 %4573  ;;  %v6675_v36 = vpop.permute.xlu2 %4613 }
 0x46b   : > { %v6677_v28 = vpop.permute.xlu0 %4558 }
 0x46d   : > { %4783 = vrot.lane.b32.xlu1 %v6575_v51, %s5018_s16  ;;  %4723 = vrot.lane.b32.xlu0 %v6590_v2, %s5029_s17 }
 0x470   : > { %4813 = vrot.lane.b32.xlu2 %v4812_v39, %s5026_s21 }
 0x472   : > { %v6686_v13 = vpop.permute.xlu1 %4578  ;;  %v6688_v14 = vpop.permute.xlu2 %4618 }
 0x473   : > { %v6690_v42 = vpop.permute.xlu0 %4588  ;;  %v4621_v16 = vunpack.i.h.bf16 %v6688_v14 }
 0x474   : > { %v8320_v34 = vunpack.i.h.bf16 %v6690_v42  ;;  %v4590_v6 = vunpack.i.l.bf16 %v6690_v42 }
 0x475   : > { %4793 = vrot.lane.b32.xlu1 %v6634_v40, %s5028_s11  ;;  %4753 = vrot.lane.b32.xlu0 %v6575_v51, %s5022_s20  ;;  %v4550_v51 = vunpack.i.l.bf16 %v6599_v57 }
 0x476   : > { %v2476_v19 = vsel %vm2466_vm11, %v4590_v6, %v8320_v34  ;;  %v4842_v34 = vpack.i.bf16 %v6504_v44, %v6597_v0 }
 0x478   : > { %4823 = vrot.lane.b32.xlu2 %v6698_v62, %s5030_s18 }
 0x47a   : > { %v6702_v47 = vpop.permute.xlu1 %4583  ;;  %v6706_v52 = vpop.permute.xlu2 %4623 }
 0x47b   : > { %v8324_v54 = vunpack.i.h.bf16 %v6702_v47  ;;  %v4585_v17 = vunpack.i.l.bf16 %v6702_v47  ;;  %v8331_v4 = vunpack.i.l.bf16 %v6706_v52  ;;  %v6720_v1 = vpop.permute.xlu0 %4603 }
 0x47c   : > { %v8319_v21 = vunpack.i.h.bf16 %v6720_v1 }
 0x47d   : > { %v2552_v29 = vsel %vm2542_vm9, %v4585_v17, %v8324_v54  ;;  %4808 = vrot.lane.b32.xlu1 %v4802_v7, %s5027_s23  ;;  %4758 = vrot.lane.b32.xlu0 %v6590_v2, %s5028_s11  ;;  %v6725_v32 = vsel %vm2618_vm10, %v4621_v16, %v8331_v4  ;;  %v4555_v7 = vunpack.i.l.bf16 %v6647_v9  ;;  %v2543_v2 = vsel %vm2542_vm9, %v4550_v51, %v8322_v56 }
 0x47e   : > { %2665 = vmatpush.msrb.mxu0 %v2552_v29  ;;  %v4595_v17 = vunpack.i.l.bf16 %v6649_v48  ;;  %v4561_v29 = vunpack.i.h.bf16 %v6677_v28 }
 0x47f   : > { %v2467_v6 = vsel %vm2466_vm11, %v4555_v7, %v8317_v38  ;;  %v4575_v38 = vunpack.i.l.bf16 %v6669_v53 }
 0x480   : > { %2666 = vmatpush.msrb.mxu0 %v2543_v2  ;;  %4828 = vrot.lane.b32.xlu2 %v6698_v62, %s5029_s17  ;;  %v4560_v2 = vunpack.i.l.bf16 %v6677_v28  ;;  %v2398_v7 = vsel %vm2387_vm12, %v4595_v17, %v8316_v43  ;;  %v4605_v17 = vunpack.i.l.bf16 %v6720_v1 }
 0x482   : > { %v6748_v51 = vpop.permute.xlu1 %4598  ;;  %v6750_v16 = vpop.permute.xlu2 %4628  ;;  %2667 = vmatpush.msrb.mxu0 %v2476_v19  ;;  %v6769_v19 = vmax.f32 %v1898_v31, %v1958_v33  ;;  %v8321_v33 = vunpack.i.h.bf16 %v6621_v30  ;;  %v4570_v31 = vunpack.i.l.bf16 %v6621_v30 }
 0x483   : > { %v4601_v46 = vunpack.i.h.bf16 %v6748_v51  ;;  %v4600_v8 = vunpack.i.l.bf16 %v6748_v51  ;;  %v6773_v12 = vpop.permute.xlu0 %4608 }
 0x484   : > { %2668 = vmatpush.msrb.mxu0 %v2467_v6  ;;  %8429 = vst [vmem:[#allocation18_spill] sm:$0xff] %v6769_v19  ;;  %v4610_v43 = vunpack.i.l.bf16 %v6773_v12 }
 0x485   : > { %4818 = vrot.lane.b32.xlu1 %v4812_v39, %s5027_s23  ;;  %4778 = vrot.lane.b32.xlu0 %v6634_v40, %s5024_s22  ;;  %v2388_v39 = vsel %vm2387_vm12, %v4560_v2, %v4561_v29  ;;  %v2315_v6 = vsel %vm679_vm2, %v4600_v8, %v4601_v46  ;;  %v4857_v2 = vpack.i.bf16 %v6769_v19, %v6527_v59 }
 0x486   : > { %2669 = vmatpush.msrb.mxu0 %v2398_v7  ;;  %v2305_v7 = vsel %vm679_vm2, %v4565_v11, %v8318_v49  ;;  %v2235_v8 = vsel %vm593_vm1, %v4605_v17, %v8319_v21  ;;  %v2225_v49 = vsel %vm593_vm1, %v4570_v31, %v8321_v33  ;;  %v4615_v17 = vunpack.i.l.bf16 %v6675_v36 }
 0x487   : > { %v8325_v31 = vunpack.i.h.bf16 %v6686_v13  ;;  %v4580_v33 = vunpack.i.l.bf16 %v6686_v13 }
 0x488   : > { %4833 = vrot.lane.b32.xlu2 %v6698_v62, %s5024_s22  ;;  %2670 = vmatpush.msrb.mxu0 %v2388_v39  ;;  %v8323_v39 = vunpack.i.h.bf16 %v6773_v12 }
 0x489   : > { %v2062_v54 = vsel %vm421_vm6, %v4580_v33, %v8325_v31 }
 0x48a   : > { %v6785_v24 = vpop.permute.xlu2 %4633  ;;  %2671 = vmatpush.msrb.mxu0 %v2315_v6  ;;  %v8328_v6 = vunpack.i.h.bf16 %v6669_v53 }
 0x48c   : > { %2672 = vmatpush.msrb.mxu0 %v2305_v7  ;;  %v2145_v56 = vsel %vm2144_vm13, %v4575_v38, %v8328_v6 }
 0x48d   : > { %4858 = vrot.lane.b32.xlu1 %v4857_v2, %s5027_s23  ;;  %4798 = vrot.lane.b32.xlu0 %v6634_v40, %s5018_s16  ;;  %v8327_v40 = vunpack.i.h.bf16 %v6675_v36 }
 0x48e   : > { %2673 = vmatpush.msrb.mxu0 %v2235_v8  ;;  %v2155_v8 = vsel %vm2144_vm13, %v4610_v43, %v8323_v39 }
 0x48f   : > { %v6804_v11 = vpop.permute.xlu1 %4643  ;;  %v6806_v7 = vpop.permute.xlu0 %4638  ;;  %v2072_v43 = vsel %vm421_vm6, %v4615_v17, %v8327_v40 }
 0x490   : > { %4838 = vrot.lane.b32.xlu2 %v6698_v62, %s5022_s20  ;;  %2674 = vmatpush.msrb.mxu0 %v2225_v49  ;;  %v6826_v49 = vpack.i.bf16 %v6671_v41, %v6769_v19  ;;  %v8329_v38 = vunpack.i.l.bf16 %v6804_v11  ;;  %v4641_v63 = vunpack.i.h.bf16 %v6806_v7  ;;  %v4640_v55 = vunpack.i.l.bf16 %v6806_v7 }
 0x492   : > { %v6818_v21 = vpop.permute.xlu2 %4653  ;;  %2675 = vmatpush.msrb.mxu0 %v2155_v8  ;;  %v2622_v7 = vsel %vm2618_vm10, %v4640_v55, %v4641_v63 }
 0x494   : > { %2676 = vmatpush.msrb.mxu0 %v2145_v56 }
 0x495   : > { %4888 = vrot.lane.b32.xlu1 %v6826_v49, %s5029_s17  ;;  %4843 = vrot.lane.b32.xlu0 %v4842_v34, %s5026_s21 }
 0x496   : > { %2677 = vmatpush.msrb.mxu0 %v2072_v43 }
 0x497   : > { %v6837_v8 = vpop.permute.xlu1 %4663  ;;  %v6839_v39 = vpop.permute.xlu0 %4648 }
 0x498   : > { %4848 = vrot.lane.b32.xlu2 %v4842_v34, %s5027_s23  ;;  %2678 = vmatpush.msrb.mxu0 %v2062_v54  ;;  %v8342_v19 = vunpack.i.l.bf16 %v6837_v8 }
 0x49a   : > { %v6845_v56 = vpop.permute.xlu2 %4733  ;;  %2679 = vmatpush.msrb.mxu0 %v6368_v26 }
 0x49b   : > { %v4736_v17 = vunpack.i.h.bf16 %v6845_v56 }
 0x49c   : > { %2680 = vmatpush.msrb.mxu0 %v6331_v37  ;;  %v8330_v37 = vunpack.i.h.bf16 %v6804_v11 }
 0x49d   : > { %4903 = vrot.lane.b32.xlu1 %v6826_v49, %s5024_s22  ;;  %4868 = vrot.lane.b32.xlu0 %v6698_v62, %s5028_s11  ;;  %v6858_v54 = vsel %vm2387_vm12, %v4561_v29, %v4736_v17  ;;  %v6863_v26 = vsel %vm2387_vm12, %v4736_v17, %v8329_v38  ;;  %v4907_v29 = vpack.i.bf16 %v6527_v59, %v6504_v44  ;;  %v8339_v38 = vunpack.i.h.bf16 %v6837_v8 }
 0x49f   : > { %v6865_v34 = vpop.permute.xlu1 %4673  ;;  %v6867_v33 = vpop.permute.xlu0 %4658 }
 0x4a0   : > { %v8326_v43 = vunpack.i.l.bf16 %v6867_v33  ;;  %4853 = vrot.lane.b32.xlu2 %v4857_v2, %s5026_s21  ;;  %v6889_v2 = vld [vmem:[%s8287_s5] sm:$0xff]  ;;  %v8358_v45 = vunpack.i.h.bf16 %v6865_v34  ;;  %s332_s21 = scalar_lea.vmem %s8291_s9, %s3895_s14 }
 0x4a1   : > { %2681 = vmatmul.f32.vlgmr.msrb.gmra.mxu0 %v6889_v2 }
 0x4a2   : > { %v6872_v31 = vpop.permute.xlu2 %4738  ;;  %v6879_v28 = vsel %vm2387_vm12, %v8330_v37, %v8326_v43  ;;  %v8337_v37 = vunpack.i.h.bf16 %v6839_v39 }
 0x4a3   : > { %8430 = vst [vmem:[#allocation19_spill] sm:$0xff] %v6879_v28  ;;  %v8333_v17 = vunpack.i.l.bf16 %v6872_v31 }
 0x4a5   : > { %4908 = vrot.lane.b32.xlu1 %v4907_v29, %s5018_s16  ;;  %4873 = vrot.lane.b32.xlu0 %v4907_v29, %s5029_s17  ;;  %v6896_v43 = vsel %vm679_vm2, %v4601_v46, %v8333_v17 }
 0x4a7   : > { %v6899_v40 = vpop.permute.xlu1 %4683  ;;  %v6901_v6 = vpop.permute.xlu0 %4668 }
 0x4a8   : > { %8431 = vst [vmem:[#allocation20_spill] sm:$0xff] %v6899_v40  ;;  %v8338_v4 = vunpack.i.l.bf16 %v6899_v40  ;;  %v8336_v41 = vunpack.i.l.bf16 %v6901_v6  ;;  %4863 = vrot.lane.b32.xlu2 %v4907_v29, %s5030_s18 }
 0x4aa   : > { %v6908_v51 = vpop.permute.xlu2 %4768  ;;  %v6915_v46 = vsel %vm679_vm2, %v8337_v37, %v8336_v41  ;;  %v6922_v17 = vsel %vm2144_vm13, %v8339_v38, %v8338_v4  ;;  %v8350_v38 = vunpack.i.h.bf16 %v6818_v21 }
 0x4ab   : > { %8432 = vst [vmem:[#allocation21_spill] sm:$0xff] %v6915_v46  ;;  %v8343_v20 = vunpack.i.h.bf16 %v6908_v51 }
 0x4ac   : > { %8433 = vst [vmem:[#allocation22_spill] sm:$0xff] %v6922_v17 }
 0x4ad   : > { %4918 = vrot.lane.b32.xlu1 %v6826_v49, %s5028_s11  ;;  %4878 = vrot.lane.b32.xlu0 %v4907_v29, %s5024_s22  ;;  %v6934_v41 = vsel %vm2144_vm13, %v8343_v20, %v8342_v19 }
 0x4af   : > { %v6936_v37 = vpop.permute.xlu1 %4708  ;;  %v6938_v4 = vpop.permute.xlu0 %4678 }
 0x4b0   : > { %v8349_v27 = vunpack.i.l.bf16 %v6938_v4  ;;  %2365 = vrot.lane.b32.xlu2 %v8400_v50, %s5029_s17 }
 0x4b2   : > { %v6944_v59 = vpop.permute.xlu2 %4773  ;;  %v6951_v19 = vsel %vm593_vm1, %v8350_v38, %v8349_v27 }
 0x4b3   : > { %8434 = vst [vmem:[#allocation23_spill] sm:$0xff] %v6951_v19 }
 0x4b5   : > { %2122 = vrot.lane.b32.xlu1 %v8400_v50, %s5028_s11  ;;  %4883 = vrot.lane.b32.xlu0 %v4907_v29, %s5022_s20 }
 0x4b7   : > { %v6956_v20 = vpop.permute.xlu1 %4718  ;;  %v6958_v44 = vpop.permute.xlu0 %4688 }
 0x4b8   : > { %8435 = vst [vmem:[#allocation24_spill] sm:$0xff] %v6958_v44  ;;  %v8357_v0 = vunpack.i.l.bf16 %v6958_v44  ;;  %4913 = vrot.lane.b32.xlu2 %v6826_v49, %s5022_s20 }
 0x4ba   : > { %v6964_v15 = vpop.permute.xlu2 %4788  ;;  %v6971_v27 = vsel %vm421_vm6, %v8358_v45, %v8357_v0 }
 0x4bb   : > { %8436 = vst [vmem:[#allocation25_spill] sm:$0xff] %v6971_v27 }
 0x4bd   : > { %4893 = vrot.lane.b32.xlu0 %v4907_v29, %s5028_s11  ;;  %v4631_v29 = vunpack.i.h.bf16 %v6750_v16 }
 0x4bf   : > { %v4729_v38 = vpop.permute.xlu1 %4728  ;;  %v6974_v18 = vpop.permute.xlu0 %4693 }
 0x4c0   : > { %v4731_v10 = vunpack.i.h.bf16 %v4729_v38  ;;  %v4730_v58 = vunpack.i.l.bf16 %v4729_v38  ;;  %4923 = vrot.lane.b32.xlu2 %v6826_v49, %s5030_s18  ;;  %v8362_v23 = vunpack.i.l.bf16 %v6974_v18 }
 0x4c2   : > { %v2631_v17 = vsel %vm2618_vm10, %v4730_v58, %v4731_v10  ;;  %v6982_v0 = vpop.permute.xlu2 %4803  ;;  %v2632_v38 = vsel %vm2618_vm10, %v4731_v10, %v8362_v23  ;;  %v4620_v10 = vunpack.i.l.bf16 %v6688_v14  ;;  %v4626_v23 = vunpack.i.h.bf16 %v6706_v52 }
 0x4c3   : > { %2819 = vmatpush.msra.mxu0 %v2631_v17  ;;  %v8361_v27 = vunpack.i.l.bf16 %v6982_v0  ;;  %v7001_v17 = vld [vmem:[%s8287_s5 + $0x8] sm:$0xff] }
 0x4c5   : > { %4898 = vrot.lane.b32.xlu0 %v6698_v62, %s5018_s16  ;;  %2820 = vmatpush.msra.mxu0 %v2622_v7  ;;  %v6996_v44 = vsel %vm2542_vm9, %v4631_v29, %v8361_v27  ;;  %v8437_v7 = vunpack.i.h.bf16 %v6974_v18 }
 0x4c6   : > { %3878 = vmatmul.msk.f32.vlgmr.msra.gmra.mxu0 %vm2661_vm14, %v7001_v17 }
 0x4c7   : > { %2859 = vmatpush.msrb.mxu0 %v2632_v38  ;;  %v7003_v45 = vpop.permute.xlu1 %4743  ;;  %v4699_v62 = vpop.permute.xlu0 %4698  ;;  %v2623_v19 = vsel %vm2618_vm10, %v4641_v63, %v8437_v7  ;;  %v4806_v63 = vunpack.i.h.bf16 %v6982_v0  ;;  %v4710_v7 = vunpack.i.l.bf16 %v6936_v37 }
 0x4c8   : > { %v4701_v27 = vunpack.i.h.bf16 %v4699_v62  ;;  %v4700_v38 = vunpack.i.l.bf16 %v4699_v62  ;;  %2598 = vrot.lane.b32.xlu2 %v8400_v50, %s5030_s18  ;;  %v8438_v50 = vunpack.i.l.bf16 %v6706_v52  ;;  %v2621_v52 = vsel %vm2618_vm10, %v4626_v23, %v4640_v55 }
 0x4c9   : > { %2860 = vmatpush.msrb.mxu0 %v2623_v19 }
 0x4ca   : > { %v2628_v40 = vsel %vm2618_vm10, %v4620_v10, %v4700_v38  ;;  %v2629_v46 = vsel %vm2618_vm10, %v4700_v38, %v4701_v27  ;;  %v7016_v28 = vpop.permute.xlu2 %4813  ;;  %v2620_v19 = vsel %vm2618_vm10, %v8438_v50, %v4626_v23 }
 0x4cb   : > { %2699 = vmatpush.msrb.mxu1 %v2628_v40  ;;  %2739 = vmatpush.msrb.mxu3 %v2629_v46  ;;  %v8366_v14 = vunpack.i.l.bf16 %v7016_v28  ;;  %v2630_v40 = vsel %vm2618_vm10, %v4701_v27, %v4730_v58  ;;  %v4711_v46 = vunpack.i.h.bf16 %v6936_v37  ;;  %v4630_v58 = vunpack.i.l.bf16 %v6750_v16 }
 0x4cc   : > { %v8439_v27 = vunpack.i.h.bf16 %v6702_v47  ;;  %v8440_v16 = vunpack.i.h.bf16 %v6599_v57  ;;  %v8369_v57 = vunpack.i.h.bf16 %v6785_v24  ;;  %v8462_v37 = vunpack.i.l.bf16 %v6982_v0 }
 0x4cd   : > { %4928 = vrot.lane.b32.xlu0 %v6826_v49, %s5018_s16  ;;  %2700 = vmatpush.msrb.mxu1 %v6725_v32  ;;  %v7031_v62 = vsel %vm2542_vm9, %v4806_v63, %v8366_v14  ;;  %v4671_v14 = vunpack.i.h.bf16 %v6901_v6 }
 0x4ce   : > { %2740 = vmatpush.msrb.mxu3 %v2620_v19  ;;  %3875 = vmatmul.msk.f32.vlgmr.msrb.gmra.mxu1 %vm2661_vm14, %v7001_v17  ;;  %v2544_v47 = vsel %vm2542_vm9, %v8440_v16, %v4711_v46 }
 0x4cf   : > { %v7036_v49 = vpop.permute.xlu1 %4748  ;;  %v4704_v32 = vpop.permute.xlu0 %4703  ;;  %3879 = vmatmul.msk.f32.vlgmr.msrb.gmra.mxu0 %vm2661_vm14, %v7001_v17  ;;  %3876 = vmatmul.msk.f32.vlgmr.msrb.gmra.mxu3 %vm2661_vm14, %v7001_v17 }
 0x4d0   : > { %2779 = vmatpush.msra.mxu3 %v2630_v40  ;;  %v4706_v10 = vunpack.i.h.bf16 %v4704_v32  ;;  %v4705_v38 = vunpack.i.l.bf16 %v4704_v32  ;;  %v2001_v40 = vld [vmem:[%s8288_s6] sm:$0xff]  ;;  %v2545_v32 = vsel %vm2542_vm9, %v4711_v46, %v4630_v58  ;;  %v4635_v46 = vunpack.i.l.bf16 %v6785_v24 }
 0x4d2   : > { %2780 = vmatpush.msra.mxu3 %v2621_v52  ;;  %v2553_v50 = vsel %vm2542_vm9, %v8439_v27, %v4705_v38  ;;  %v2554_v23 = vsel %vm2542_vm9, %v4705_v38, %v4706_v10  ;;  %v2555_v55 = vsel %vm2542_vm9, %v4706_v10, %v4710_v7  ;;  %v7053_v19 = vpop.permute.xlu2 %4823  ;;  %v2546_v52 = vsel %vm2542_vm9, %v4630_v58, %v4631_v29 }
 0x4d3   : > { %2705 = vmatpush.msrb.mxu2 %v2553_v50  ;;  %2745 = vmatpush.msra.mxu1 %v2554_v23  ;;  %v4721_v27 = vunpack.i.h.bf16 %v6956_v20  ;;  %v4720_v50 = vunpack.i.l.bf16 %v6956_v20  ;;  %v8441_v29 = vunpack.i.h.bf16 %v6690_v42 }
 0x4d4   : > { %2785 = vmatpush.msrb.mxu3 %v2555_v55 }
 0x4d5   : > { %2658 = vperm.xlu0 %4120, %v2001_v40   ;;  %2706 = vmatpush.msrb.mxu2 %v2544_v47 }
 0x4d6   : > { %2746 = vmatpush.msra.mxu1 %v2545_v32  ;;  %2786 = vmatpush.msrb.mxu3 %v2546_v52  ;;  %v8367_v32 = vunpack.i.h.bf16 %v6867_v33 }
 0x4d7   : > { %v7063_v10 = vpop.permute.xlu1 %4763  ;;  %v4714_v38 = vpop.permute.xlu0 %4713  ;;  %3877 = vmatmul.msk.f32.vlgmr.msra.gmra.mxu3 %vm2661_vm14, %v7001_v17 }
 0x4d8   : > { %v4716_v23 = vunpack.i.h.bf16 %v4714_v38  ;;  %v4715_v55 = vunpack.i.l.bf16 %v4714_v38  ;;  %v8442_v38 = vunpack.i.h.bf16 %v6647_v9  ;;  %v8368_v9 = vunpack.i.l.bf16 %v6845_v56 }
 0x4da   : > { %v2477_v58 = vsel %vm2466_vm11, %v8441_v29, %v4715_v55  ;;  %v2478_v40 = vsel %vm2466_vm11, %v4715_v55, %v4716_v23  ;;  %v2479_v16 = vsel %vm2466_vm11, %v4716_v23, %v4720_v50  ;;  %v7078_v47 = vpop.permute.xlu2 %4828  ;;  %v2468_v42 = vsel %vm2466_vm11, %v8442_v38, %v4721_v27 }
 0x4db   : > { %2707 = vmatpush.msrb.mxu2 %v2477_v58  ;;  %2747 = vmatpush.msra.mxu1 %v2478_v40  ;;  %v8365_v52 = vunpack.i.l.bf16 %v7078_v47  ;;  %v2469_v29 = vsel %vm2466_vm11, %v4721_v27, %v4635_v46  ;;  %v2470_v23 = vsel %vm2466_vm11, %v4635_v46, %v8369_v57  ;;  %v4741_v38 = vunpack.i.h.bf16 %v6872_v31 }
 0x4dc   : > { %2787 = vmatpush.msrb.mxu3 %v2479_v16 }
 0x4dd   : > { %2708 = vmatpush.msrb.mxu2 %v2468_v42  ;;  %2748 = vmatpush.msra.mxu1 %v2469_v29  ;;  %v7094_v55 = vsel %vm2387_vm12, %v8367_v32, %v8365_v52  ;;  %v8443_v42 = vunpack.i.h.bf16 %v6649_v48  ;;  %v4745_v32 = vunpack.i.l.bf16 %v7003_v45  ;;  %v4746_v48 = vunpack.i.h.bf16 %v7003_v45 }
 0x4de   : > { %2788 = vmatpush.msrb.mxu3 %v2470_v23 }
 0x4df   : > { %v4724_v58 = vpop.permute.xlu0 %4723  ;;  %v7097_v40 = vpop.permute.xlu1 %4783 }
 0x4e0   : > { %v4726_v27 = vunpack.i.h.bf16 %v4724_v58  ;;  %v4725_v16 = vunpack.i.l.bf16 %v4724_v58 }
 0x4e2   : > { %v2399_v46 = vsel %vm2387_vm12, %v8443_v42, %v4725_v16  ;;  %v2400_v29 = vsel %vm2387_vm12, %v4725_v16, %v4726_v27  ;;  %v2401_v52 = vsel %vm2387_vm12, %v4726_v27, %v8368_v9  ;;  %v7107_v23 = vpop.permute.xlu2 %4833  ;;  %v4650_v42 = vunpack.i.l.bf16 %v6839_v39 }
 0x4e3   : > { %2709 = vmatpush.msrb.mxu2 %v2399_v46  ;;  %2749 = vmatpush.msra.mxu1 %v2400_v29  ;;  %v8370_v58 = vunpack.i.l.bf16 %v7107_v23  ;;  %v8444_v27 = vunpack.i.h.bf16 %v6804_v11  ;;  %v8445_v16 = vunpack.i.l.bf16 %v6804_v11  ;;  %v4750_v29 = vunpack.i.l.bf16 %v7036_v49 }
 0x4e4   : > { %2789 = vmatpush.msrb.mxu3 %v2401_v52  ;;  %v4751_v52 = vunpack.i.h.bf16 %v7036_v49  ;;  %v2318_v11 = vsel %vm679_vm2, %v4741_v38, %v4745_v32  ;;  %v8447_v49 = vunpack.i.h.bf16 %v6609_v3 }
 0x4e5   : > { %2710 = vmatpush.msrb.mxu2 %v6858_v54  ;;  %2750 = vmatpush.msra.mxu1 %v6863_v26  ;;  %v2391_v9 = vsel %vm2387_vm12, %v8445_v16, %v8444_v27  ;;  %v7126_v46 = vsel %vm679_vm2, %v4671_v14, %v8370_v58  ;;  %v8446_v54 = vunpack.i.l.bf16 %v6872_v31  ;;  %v8449_v58 = vunpack.i.h.bf16 %v6720_v1 }
 0x4e6   : > { %2790 = vmatpush.msrb.mxu3 %v2391_v9  ;;  %v2306_v31 = vsel %vm679_vm2, %v8447_v49, %v4746_v48  ;;  %v2307_v9 = vsel %vm679_vm2, %v4746_v48, %v4650_v42  ;;  %v2237_v3 = vsel %vm593_vm1, %v4750_v29, %v4751_v52 }
 0x4e7   : > { %v2317_v26 = vsel %vm679_vm2, %v8446_v54, %v4741_v38  ;;  %v7133_v57 = vpop.permute.xlu0 %4753  ;;  %2711 = vmatpush.msrb.mxu2 %v6896_v43  ;;  %v4655_v54 = vunpack.i.l.bf16 %v6818_v21  ;;  %v8448_v43 = vunpack.i.h.bf16 %v6839_v39  ;;  %v7149_v38 = vpop.permute.xlu1 %4793 }
 0x4e8   : > { %2751 = vmatpush.msra.mxu1 %v2317_v26  ;;  %v4756_v27 = vunpack.i.h.bf16 %v7133_v57  ;;  %v4755_v16 = vunpack.i.l.bf16 %v7133_v57  ;;  %2791 = vmatpush.msrb.mxu3 %v2318_v11  ;;  %v2236_v11 = vsel %vm593_vm1, %v8449_v58, %v4750_v29  ;;  %v8451_v29 = vunpack.i.h.bf16 %v6818_v21 }
 0x4e9   : > { %2712 = vmatpush.msrb.mxu2 %v2306_v31  ;;  %v2308_v26 = vsel %vm679_vm2, %v4650_v42, %v8448_v43  ;;  %v4681_v31 = vunpack.i.h.bf16 %v6938_v4  ;;  %v8450_v42 = vunpack.i.h.bf16 %v6621_v30  ;;  %v4770_v30 = vunpack.i.l.bf16 %v6908_v51 }
 0x4ea   : > { %2752 = vmatpush.msra.mxu1 %v2307_v9  ;;  %2792 = vmatpush.msrb.mxu3 %v2308_v26  ;;  %v2238_v48 = vsel %vm593_vm1, %v4751_v52, %v4755_v16  ;;  %v7158_v49 = vpop.permute.xlu2 %4838  ;;  %v2227_v58 = vsel %vm593_vm1, %v4756_v27, %v4655_v54  ;;  %v2228_v52 = vsel %vm593_vm1, %v4655_v54, %v8451_v29  ;;  %v8452_v21 = vunpack.i.h.bf16 %v6773_v12 }
 0x4eb   : > { %2713 = vmatpush.msrb.mxu2 %v2236_v11  ;;  %v8371_v39 = vunpack.i.l.bf16 %v7158_v49  ;;  %v2226_v1 = vsel %vm593_vm1, %v8450_v42, %v4756_v27  ;;  %v4776_v27 = vunpack.i.h.bf16 %v6944_v59  ;;  %v4786_v29 = vunpack.i.h.bf16 %v7097_v40 }
 0x4ec   : > { %2753 = vmatpush.msra.mxu1 %v2237_v3  ;;  %2793 = vmatpush.msrb.mxu3 %v2238_v48  ;;  %v4775_v3 = vunpack.i.l.bf16 %v6944_v59  ;;  %v8453_v59 = vunpack.i.h.bf16 %v6908_v51  ;;  %v8454_v12 = vunpack.i.h.bf16 %v6669_v53  ;;  %v8471_v57 = vunpack.i.l.bf16 %v6938_v4 }
 0x4ed   : > { %2714 = vmatpush.msrb.mxu2 %v2226_v1  ;;  %v7174_v9 = vsel %vm593_vm1, %v4681_v31, %v8371_v39 }
 0x4ee   : > { %2754 = vmatpush.msra.mxu1 %v2227_v58  ;;  %2794 = vmatpush.msrb.mxu3 %v2228_v52  ;;  %v4785_v58 = vunpack.i.l.bf16 %v7097_v40  ;;  %v2074_v53 = vsel %vm421_vm6, %v4775_v3, %v4776_v27 }
 0x4ef   : > { %v4759_v43 = vpop.permute.xlu0 %4758  ;;  %v7190_v52 = vpop.permute.xlu1 %4808 }
 0x4f0   : > { %v4761_v26 = vunpack.i.h.bf16 %v4759_v43  ;;  %v4760_v11 = vunpack.i.l.bf16 %v4759_v43  ;;  %v2146_v43 = vsel %vm2144_vm13, %v8454_v12, %v8453_v59 }
 0x4f2   : > { %v2156_v54 = vsel %vm2144_vm13, %v8452_v21, %v4760_v11  ;;  %v2157_v48 = vsel %vm2144_vm13, %v4760_v11, %v4761_v26  ;;  %v2158_v42 = vsel %vm2144_vm13, %v4761_v26, %v4770_v30  ;;  %v7186_v1 = vpop.permute.xlu2 %4848  ;;  %v4675_v11 = vunpack.i.l.bf16 %v6865_v34 }
 0x4f3   : > { %2715 = vmatpush.msrb.mxu2 %v2156_v54  ;;  %2755 = vmatpush.msra.mxu1 %v2157_v48  ;;  %v8455_v26 = vunpack.i.h.bf16 %v6837_v8  ;;  %v8456_v21 = vunpack.i.l.bf16 %v6837_v8  ;;  %v8457_v48 = vunpack.i.h.bf16 %v6675_v36  ;;  %v8458_v8 = vunpack.i.h.bf16 %v6686_v13 }
 0x4f4   : > { %2795 = vmatpush.msrb.mxu3 %v2158_v42  ;;  %v2064_v12 = vsel %vm421_vm6, %v4786_v29, %v4675_v11  ;;  %v8459_v36 = vunpack.i.h.bf16 %v6865_v34 }
 0x4f5   : > { %2716 = vmatpush.msrb.mxu2 %v2146_v43  ;;  %2756 = vmatpush.msra.mxu1 %v6934_v41  ;;  %v2148_v54 = vsel %vm2144_vm13, %v8456_v21, %v8455_v26  ;;  %v2073_v42 = vsel %vm421_vm6, %v8457_v48, %v4775_v3  ;;  %v2075_v41 = vsel %vm421_vm6, %v4776_v27, %v4785_v58  ;;  %v8461_v26 = vunpack.i.h.bf16 %v6974_v18 }
 0x4f6   : > { %2796 = vmatpush.msrb.mxu3 %v2148_v54  ;;  %v2063_v59 = vsel %vm421_vm6, %v8458_v8, %v4786_v29  ;;  %v2065_v3 = vsel %vm421_vm6, %v4675_v11, %v8459_v36  ;;  %v4851_v8 = vunpack.i.h.bf16 %v7186_v1 }
 0x4f7   : > { %v7208_v39 = vpop.permute.xlu0 %4778  ;;  %2717 = vmatpush.msrb.mxu2 %v2073_v42  ;;  %2757 = vmatpush.msra.mxu1 %v2074_v53  ;;  %v7227_v13 = vpop.permute.xlu1 %4818 }
 0x4f8   : > { %2797 = vmatpush.msrb.mxu3 %v2075_v41 }
 0x4f9   : > { %2718 = vmatpush.msrb.mxu2 %v2063_v59  ;;  %2758 = vmatpush.msra.mxu1 %v2064_v12 }
 0x4fa   : > { %2798 = vmatpush.msrb.mxu3 %v2065_v3  ;;  %v7220_v43 = vpop.permute.xlu2 %4853 }
 0x4fb   : > { %2719 = vmatpush.msrb.mxu2 %v6352_v60  ;;  %2759 = vmatpush.msra.mxu1 %v6354_v35  ;;  %v4826_v35 = vunpack.i.h.bf16 %v7053_v19  ;;  %v4855_v48 = vunpack.i.l.bf16 %v7220_v43 }
 0x4fc   : > { %2799 = vmatpush.msrb.mxu3 %v6468_v22 }
 0x4fd   : > { %2720 = vmatpush.msrb.mxu2 %v6307_v25  ;;  %2760 = vmatpush.msra.mxu1 %v6305_v5  ;;  %v4825_v25 = vunpack.i.l.bf16 %v7053_v19 }
 0x4fe   : > { %2800 = vmatpush.msrb.mxu3 %v6461_v61  ;;  %2721 = vmatmul.f32.vlgmr.msrb.gmra.mxu2 %v6889_v2  ;;  %v8460_v61 = vunpack.i.l.bf16 %v6974_v18  ;;  %v4850_v18 = vunpack.i.l.bf16 %v7186_v1  ;;  %v4810_v1 = vunpack.i.l.bf16 %v7190_v52 }
 0x4ff   : > { %2761 = vmatmul.f32.vlgmr.msra.gmra.mxu1 %v6889_v2  ;;  %2801 = vmatmul.f32.vlgmr.msrb.gmra.mxu3 %v6889_v2  ;;  %v7233_v34 = vpop.permute.xlu0 %4798  ;;  %v2624_v21 = vsel %vm2618_vm10, %v8461_v26, %v4825_v25  ;;  %v2625_v54 = vsel %vm2618_vm10, %v4825_v25, %v4826_v35  ;;  %v7254_v42 = vpop.permute.xlu1 %4858  ;;  %v4780_v26 = vunpack.i.l.bf16 %v7208_v39 }
 0x500   : > { %v4860_v25 = vunpack.i.l.bf16 %v7254_v42 }
 0x502   : > { %v7235_v60 = vpop.permute.xlu2 %4863 }
 0x503   : > { %v4866_v5 = vunpack.i.h.bf16 %v7235_v60  ;;  %v4865_v22 = vunpack.i.l.bf16 %v7235_v60 }
 0x505   : > { %v2633_v27 = vsel %vm2618_vm10, %v8460_v61, %v4865_v22  ;;  %v2634_v29 = vsel %vm2618_vm10, %v4865_v22, %v4866_v5  ;;  %v4811_v22 = vunpack.i.h.bf16 %v7190_v52  ;;  %v4820_v61 = vunpack.i.l.bf16 %v7227_v13 }
 0x506   : > { %2899 = vmatpush.msrb.mxu1 %v2633_v27  ;;  %2939 = vmatpush.msra.mxu3 %v2634_v29  ;;  %v4766_v27 = vunpack.i.h.bf16 %v7063_v10  ;;  %v4765_v29 = vunpack.i.l.bf16 %v7063_v10  ;;  %v2480_v52 = vsel %vm2466_vm11, %v4720_v50, %v4850_v18  ;;  %v4781_v50 = vunpack.i.h.bf16 %v7208_v39  ;;  %v8479_v39 = vld [vmem:[#allocation6_spill] sm:$0xff] }
 0x507   : > { %v4844_v11 = vpop.permute.xlu0 %4843  ;;  %v2473_v20 = vsel %vm2466_vm11, %v4811_v22, %v4820_v61 }
 0x508   : > { %v4846_v53 = vunpack.i.h.bf16 %v4844_v11  ;;  %v4845_v41 = vunpack.i.l.bf16 %v4844_v11  ;;  %2900 = vmatpush.msrb.mxu1 %v2624_v21  ;;  %2940 = vmatpush.msra.mxu3 %v2625_v54  ;;  %v2481_v11 = vsel %vm2466_vm11, %v4850_v18, %v4851_v8  ;;  %v8464_v21 = vunpack.i.l.bf16 %v6845_v56  ;;  %v8467_v56 = vld [vmem:[#allocation19_spill] sm:$0xff] }
 0x509   : > { %3881 = vmatmul.msk.f32.vlgmr.msra.gmra.mxu3 %vm2661_vm14, %v7001_v17  ;;  %3880 = vmatmul.msk.f32.vlgmr.msrb.gmra.mxu1 %vm2661_vm14, %v7001_v17 }
 0x50a   : > { %v2556_v59 = vsel %vm2542_vm9, %v4710_v7, %v4845_v41  ;;  %v2557_v12 = vsel %vm2542_vm9, %v4845_v41, %v4846_v53  ;;  %v2558_v36 = vsel %vm2542_vm9, %v4846_v53, %v4855_v48  ;;  %v7269_v3 = vpop.permute.xlu2 %2365  ;;  %v2548_v7 = vsel %vm2542_vm9, %v8462_v37, %v4806_v63 }
 0x50b   : > { %2825 = vmatpush.msra.mxu2 %v2556_v59  ;;  %2865 = vmatpush.msra.mxu0 %v2557_v12  ;;  %v8463_v63 = vunpack.i.h.bf16 %v6785_v24  ;;  %v2402_v54 = vsel %vm2387_vm12, %v8464_v21, %v4765_v29  ;;  %v2403_v24 = vsel %vm2387_vm12, %v4765_v29, %v4766_v27  ;;  %v8465_v41 = vunpack.i.h.bf16 %v6867_v33 }
 0x50c   : > { %2905 = vmatpush.msra.mxu1 %v2558_v36  ;;  %v4791_v59 = vunpack.i.h.bf16 %v6964_v15  ;;  %v4790_v12 = vunpack.i.l.bf16 %v6964_v15  ;;  %v7315_v36 = vpop.permute.xlu1 %4888 }
 0x50d   : > { %2826 = vmatpush.msra.mxu2 %v6996_v44  ;;  %2866 = vmatpush.msra.mxu0 %v2548_v7  ;;  %v2482_v44 = vsel %vm2466_vm11, %v4851_v8, %v4860_v25  ;;  %v2471_v10 = vsel %vm2466_vm11, %v8463_v63, %v4810_v1  ;;  %v8466_v8 = vunpack.i.l.bf16 %v6867_v33  ;;  %v8468_v7 = vunpack.i.l.bf16 %v6901_v6 }
 0x50e   : > { %2906 = vmatpush.msra.mxu1 %v7031_v62  ;;  %v2472_v62 = vsel %vm2466_vm11, %v4810_v1, %v4811_v22  ;;  %v2319_v22 = vsel %vm679_vm2, %v4745_v32, %v4780_v26  ;;  %v2320_v1 = vsel %vm679_vm2, %v4780_v26, %v4781_v50  ;;  %v2240_v45 = vsel %vm593_vm1, %v4790_v12, %v4791_v59 }
 0x50f   : > { %v7288_v0 = vpop.permute.xlu0 %4868  ;;  %2827 = vmatpush.msra.mxu2 %v2480_v52  ;;  %2867 = vmatpush.msra.mxu0 %v2481_v11  ;;  %v2393_v18 = vsel %vm2387_vm12, %v8466_v8, %v8465_v41  ;;  %v2310_v29 = vsel %vm679_vm2, %v8468_v7, %v4671_v14  ;;  %v8469_v52 = vld [vmem:[#allocation21_spill] sm:$0xff]  ;;  %v4796_v32 = vunpack.i.h.bf16 %v7149_v38  ;;  %v4795_v11 = vunpack.i.l.bf16 %v7149_v38 }
 0x510   : > { %2907 = vmatpush.msra.mxu1 %v2482_v44  ;;  %v2239_v44 = vsel %vm593_vm1, %v4755_v16, %v4790_v12  ;;  %v2230_v16 = vsel %vm593_vm1, %v8471_v57, %v4681_v31  ;;  %v4856_v26 = vunpack.i.h.bf16 %v7220_v43  ;;  %v4816_v41 = vunpack.i.h.bf16 %v7016_v28 }
 0x511   : > { %2828 = vmatpush.msra.mxu2 %v2471_v10  ;;  %2868 = vmatpush.msra.mxu0 %v2472_v62  ;;  %v8470_v62 = vld [vmem:[#allocation20_spill] sm:$0xff]  ;;  %v2159_v4 = vsel %vm2144_vm13, %v4770_v30, %v4795_v11  ;;  %v2160_v31 = vsel %vm2144_vm13, %v4795_v11, %v4796_v32  ;;  %v8478_v11 = vld [vmem:[#allocation25_spill] sm:$0xff]  ;;  %v8484_v43 = vunpack.i.l.bf16 %v7016_v28 }
 0x512   : > { %2908 = vmatpush.msra.mxu1 %v2473_v20  ;;  %v7306_v53 = vpop.permute.xlu2 %4913  ;;  %v4686_v20 = vunpack.i.h.bf16 %v8470_v62 }
 0x513   : > { %2829 = vmatpush.msra.mxu2 %v2402_v54  ;;  %2869 = vmatpush.msra.mxu0 %v2403_v24  ;;  %v4801_v54 = vunpack.i.h.bf16 %v7233_v34  ;;  %v4800_v24 = vunpack.i.l.bf16 %v7233_v34  ;;  %v8487_v34 = vld [vmem:[#allocation9_spill] sm:$0xff] }
 0x514   : > { %v7369_v60 = vpop.permute.xlu1 %4903 }
 0x515   : > { %2830 = vmatpush.msra.mxu2 %v8467_v56  ;;  %2870 = vmatpush.msra.mxu0 %v2393_v18  ;;  %v8474_v18 = vunpack.i.l.bf16 %v8470_v62  ;;  %v4861_v56 = vunpack.i.h.bf16 %v7254_v42  ;;  %v2077_v7 = vsel %vm421_vm6, %v4800_v24, %v4801_v54 }
 0x517   : > { %v7324_v33 = vpop.permute.xlu0 %4873  ;;  %2831 = vmatpush.msra.mxu2 %v2319_v22  ;;  %2871 = vmatpush.msra.mxu0 %v2320_v1  ;;  %v2150_v12 = vsel %vm2144_vm13, %v8474_v18, %v4686_v20  ;;  %v8475_v22 = vld [vmem:[#allocation22_spill] sm:$0xff]  ;;  %v8476_v1 = vld [vmem:[#allocation7_spill] sm:$0xff]  ;;  %v4891_v18 = vunpack.i.h.bf16 %v7315_v36  ;;  %v2483_v28 = vsel %vm2466_vm11, %v4860_v25, %v4861_v56 }
 0x518   : > { %v4875_v37 = vunpack.i.l.bf16 %v7324_v33  ;;  %v2560_v19 = vsel %vm2542_vm9, %v4856_v26, %v8476_v1  ;;  %v2551_v40 = vsel %vm2542_vm9, %v4816_v41, %v8476_v1 }
 0x519   : > { %2832 = vmatpush.msra.mxu2 %v8469_v52  ;;  %2872 = vmatpush.msra.mxu0 %v2310_v29  ;;  %v4821_v52 = vunpack.i.h.bf16 %v7227_v13 }
 0x51a   : > { %v2404_v6 = vsel %vm2387_vm12, %v4766_v27, %v4875_v37  ;;  %v7344_v14 = vpop.permute.xlu2 %4923  ;;  %v8472_v27 = vld [vmem:[#allocation23_spill] sm:$0xff] }
 0x51b   : > { %2833 = vmatpush.msra.mxu2 %v2239_v44  ;;  %2873 = vmatpush.msra.mxu0 %v2240_v45  ;;  %v4926_v63 = vunpack.i.h.bf16 %v7344_v14  ;;  %v4925_v10 = vunpack.i.l.bf16 %v7344_v14  ;;  %v4876_v44 = vunpack.i.h.bf16 %v7324_v33  ;;  %v2474_v42 = vsel %vm2466_vm11, %v4820_v61, %v4821_v52 }
 0x51c   : > { %2909 = vmatpush.msra.mxu1 %v2404_v6  ;;  %v8485_v33 = vunpack.i.l.bf16 %v7078_v47 }
 0x51d   : > { %2834 = vmatpush.msra.mxu2 %v8472_v27  ;;  %2874 = vmatpush.msra.mxu0 %v2230_v16  ;;  %v2635_v21 = vsel %vm2618_vm10, %v4866_v5, %v4925_v10  ;;  %v2626_v51 = vsel %vm2618_vm10, %v4826_v35, %v4926_v63  ;;  %v2076_v35 = vsel %vm421_vm6, %v4785_v58, %v4800_v24  ;;  %v8480_v16 = vld [vmem:[#allocation13_spill] sm:$0xff]  ;;  %v8481_v27 = vld [vmem:[#allocation12_spill] sm:$0xff] }
 0x51e   : > { %2910 = vmatpush.msra.mxu1 %v7094_v55  ;;  %2979 = vmatpush.msrb.mxu3 %v2635_v21  ;;  %v8473_v55 = vld [vmem:[#allocation24_spill] sm:$0xff]  ;;  %v2475_v21 = vsel %vm2466_vm11, %v4821_v52, %v8479_v39  ;;  %v2405_v13 = vsel %vm2387_vm12, %v4875_v37, %v4876_v44 }
 0x51f   : > { %v7371_v5 = vpop.permute.xlu0 %4878  ;;  %2835 = vmatpush.msra.mxu2 %v2159_v4  ;;  %2875 = vmatpush.msra.mxu0 %v2160_v31  ;;  %v4691_v30 = vunpack.i.h.bf16 %v8473_v55  ;;  %v8477_v58 = vunpack.i.l.bf16 %v8473_v55  ;;  %v4890_v4 = vunpack.i.l.bf16 %v7315_v36  ;;  %v8482_v31 = vld [vmem:[#allocation2_spill] sm:$0xff] }
 0x520   : > { %v4880_v8 = vunpack.i.l.bf16 %v7371_v5  ;;  %2980 = vmatpush.msrb.mxu3 %v2626_v51  ;;  %v8483_v51 = vld [vmem:[#allocation4_spill] sm:$0xff] }
 0x521   : > { %2836 = vmatpush.msra.mxu2 %v8475_v22  ;;  %2876 = vmatpush.msra.mxu0 %v2150_v12  ;;  %v2067_v45 = vsel %vm421_vm6, %v8477_v58, %v4691_v30  ;;  %v2559_v12 = vsel %vm2542_vm9, %v4855_v48, %v4856_v26  ;;  %v2550_v48 = vsel %vm2542_vm9, %v8484_v43, %v4816_v41  ;;  %v4916_v58 = vunpack.i.h.bf16 %v7306_v53  ;;  %v8491_v43 = vld [vmem:[#allocation11_spill] sm:$0xff] }
 0x522   : > { %v2321_v29 = vsel %vm679_vm2, %v4781_v50, %v4880_v8  ;;  %2985 = vmatpush.msra.mxu3 %v2560_v19  ;;  %v2484_v50 = vsel %vm2466_vm11, %v4861_v56, %v8479_v39  ;;  %v7413_v6 = vpop.permute.xlu2 %2598  ;;  %v4870_v56 = vunpack.i.l.bf16 %v7288_v0 }
 0x523   : > { %2837 = vmatpush.msra.mxu2 %v2076_v35  ;;  %2877 = vmatpush.msra.mxu0 %v2077_v7  ;;  %v2636_v22 = vsel %vm2618_vm10, %v4925_v10, %v7413_v6  ;;  %v2406_v35 = vsel %vm2387_vm12, %v4876_v44, %v4890_v4  ;;  %v4831_v7 = vunpack.i.h.bf16 %v7078_v47  ;;  %v2627_v15 = vsel %vm2618_vm10, %v4926_v63, %v7413_v6 }
 0x524   : > { %2911 = vmatpush.msra.mxu1 %v2321_v29  ;;  %2986 = vmatpush.msra.mxu3 %v2551_v40  ;;  %v4881_v29 = vunpack.i.h.bf16 %v7371_v5  ;;  %v4905_v10 = vunpack.i.l.bf16 %v7369_v60  ;;  %v4836_v63 = vunpack.i.h.bf16 %v7107_v23  ;;  %v4871_v5 = vunpack.i.h.bf16 %v7288_v0 }
 0x525   : > { %2838 = vmatpush.msra.mxu2 %v8478_v11  ;;  %2878 = vmatpush.msra.mxu0 %v2067_v45  ;;  %v2396_v14 = vsel %vm2387_vm12, %v4831_v7, %v4891_v18  ;;  %v2395_v37 = vsel %vm2387_vm12, %v8485_v33, %v4831_v7 }
 0x526   : > { %2912 = vmatpush.msra.mxu1 %v7126_v46  ;;  %2987 = vmatpush.msra.mxu3 %v2484_v50  ;;  %v7423_v46 = vpop.permute.xlu1 %4908  ;;  %v2323_v25 = vsel %vm679_vm2, %v4881_v29, %v4905_v10  ;;  %v2407_v50 = vsel %vm2387_vm12, %v4890_v4, %v7269_v3  ;;  %v2322_v47 = vsel %vm679_vm2, %v4880_v8, %v4881_v29  ;;  %v8486_v8 = vunpack.i.l.bf16 %v7107_v23 }
 0x527   : > { %v7415_v57 = vpop.permute.xlu0 %4883  ;;  %2839 = vmatpush.msra.mxu2 %v8480_v16  ;;  %2879 = vmatpush.msra.mxu0 %v8481_v27  ;;  %v4910_v52 = vunpack.i.l.bf16 %v7423_v46  ;;  %v2397_v27 = vsel %vm2387_vm12, %v4891_v18, %v7269_v3  ;;  %v8488_v18 = vunpack.i.l.bf16 %v7158_v49  ;;  %v4911_v55 = vunpack.i.h.bf16 %v7423_v46 }
 0x528   : > { %v4885_v24 = vunpack.i.l.bf16 %v7415_v57  ;;  %2988 = vmatpush.msra.mxu3 %v2475_v21  ;;  %v4886_v41 = vunpack.i.h.bf16 %v7415_v57  ;;  %v2312_v4 = vsel %vm679_vm2, %v8486_v8, %v4836_v63 }
 0x529   : > { %2840 = vmatpush.msra.mxu2 %v8482_v31  ;;  %2880 = vmatpush.msra.mxu0 %v8483_v51 }
 0x52a   : > { %2841 = vmatmul.f32.vlgmr.msra.gmra.mxu2 %v6889_v2  ;;  %2881 = vmatmul.f32.vlgmr.msra.gmra.mxu0 %v6889_v2  ;;  %v2241_v19 = vsel %vm593_vm1, %v4791_v59, %v4885_v24  ;;  %v4906_v59 = vunpack.i.h.bf16 %v7369_v60  ;;  %v2242_v3 = vsel %vm593_vm1, %v4885_v24, %v4886_v41  ;;  %v8489_v24 = vld [vmem:[#allocation8_spill] sm:$0xff] }
 0x52b   : > { %2945 = vmatpush.msrb.mxu2 %v2559_v12  ;;  %3019 = vmatpush.msrb.mxu0 %v2636_v22  ;;  %v8490_v22 = vld [vmem:[#allocation14_spill] sm:$0xff] }
 0x52c   : > { %2913 = vmatpush.msra.mxu1 %v2241_v19  ;;  %2989 = vmatpush.msra.mxu3 %v2406_v35  ;;  %v2313_v40 = vsel %vm679_vm2, %v4836_v63, %v4906_v59  ;;  %v2314_v51 = vsel %vm679_vm2, %v4906_v59, %v8487_v34  ;;  %v2234_v19 = vsel %vm593_vm1, %v4916_v58, %v8489_v24  ;;  %v8493_v63 = vld [vmem:[#allocation3_spill] sm:$0xff] }
 0x52d   : > { %2946 = vmatpush.msrb.mxu2 %v2550_v48  ;;  %3020 = vmatpush.msrb.mxu0 %v2627_v15  ;;  %v2152_v48 = vsel %vm2144_vm13, %v4870_v56, %v4871_v5  ;;  %v2079_v59 = vsel %vm421_vm6, %v4910_v52, %v4911_v55 }
 0x52e   : > { %2914 = vmatpush.msra.mxu1 %v7174_v9  ;;  %2990 = vmatpush.msra.mxu3 %v2396_v14  ;;  %v7488_v45 = vpop.permute.xlu1 %4918  ;;  %v8492_v14 = vld [vmem:[#allocation5_spill] sm:$0xff] }
 0x52f   : > { %3025 = vmatpush.msra.mxu0 %v8476_v1  ;;  %2947 = vmatpush.msrb.mxu2 %v2483_v28  ;;  %v7461_v26 = vpop.permute.xlu0 %4893  ;;  %v4921_v44 = vunpack.i.h.bf16 %v7488_v45 }
 0x530   : > { %v4895_v9 = vunpack.i.l.bf16 %v7461_v26  ;;  %3882 = vmatmul.msk.f32.vlgmr.msrb.gmra.mxu3 %vm2661_vm14, %v7001_v17  ;;  %v4896_v11 = vunpack.i.h.bf16 %v7461_v26  ;;  %v8494_v26 = vld [vmem:[#allocation10_spill] sm:$0xff] }
 0x531   : > { %3026 = vmatpush.msra.mxu0 %v8476_v1  ;;  %2948 = vmatpush.msrb.mxu2 %v2474_v42  ;;  %v4915_v1 = vunpack.i.l.bf16 %v7306_v53  ;;  %v4841_v53 = vunpack.i.h.bf16 %v7158_v49  ;;  %v2153_v36 = vsel %vm2144_vm13, %v4871_v5, %v4921_v44  ;;  %v5007_v42 = vld [vmem:[%s8287_s5] sm:$0xff] }
 0x532   : > { %2991 = vmatpush.msra.mxu3 %v2323_v25  ;;  %v2161_v61 = vsel %vm2144_vm13, %v4796_v32, %v4895_v9  ;;  %v2151_v32 = vsel %vm2144_vm13, %v4686_v20, %v4870_v56  ;;  %v2078_v20 = vsel %vm421_vm6, %v4801_v54, %v4910_v52  ;;  %v2324_v54 = vsel %vm679_vm2, %v4905_v10, %v8487_v34  ;;  %v8497_v25 = vld [vmem:[#allocation18_spill] sm:$0xff]  ;;  %v8498_v56 = vld [vmem:[#allocation16_spill] sm:$0xff] }
 0x533   : > { %3027 = vmatpush.msra.mxu0 %v8479_v39  ;;  %2949 = vmatpush.msrb.mxu2 %v2405_v13  ;;  %v2243_v38 = vsel %vm593_vm1, %v4886_v41, %v4915_v1  ;;  %v2233_v16 = vsel %vm593_vm1, %v4841_v53, %v4916_v58  ;;  %v2232_v57 = vsel %vm593_vm1, %v8488_v18, %v4841_v53  ;;  %v2682_v13 = vpop.f32.mrf.mxu0 }
 0x534   : > { %2992 = vmatpush.msra.mxu3 %v2313_v40  ;;  %2915 = vmatpush.msra.mxu1 %v2161_v61  ;;  %v2244_v12 = vsel %vm593_vm1, %v4915_v1, %v8489_v24  ;;  %v2162_v60 = vsel %vm2144_vm13, %v4895_v9, %v4896_v11  ;;  %v8496_v9 = vld [vmem:[#allocation17_spill] sm:$0xff] }
 0x535   : > { %3028 = vmatpush.msra.mxu0 %v8479_v39  ;;  %2950 = vmatpush.msrb.mxu2 %v2395_v37  ;;  %v4920_v39 = vunpack.i.l.bf16 %v7488_v45 }
 0x536   : > { %2993 = vmatpush.msra.mxu3 %v2243_v38  ;;  %2916 = vmatpush.msra.mxu1 %v2151_v32 }
 0x537   : > { %3029 = vmatpush.msra.mxu0 %v2407_v50  ;;  %2951 = vmatpush.msrb.mxu2 %v2322_v47  ;;  %v4899_v62 = vpop.permute.xlu0 %4898  ;;  %v2163_v31 = vsel %vm2144_vm13, %v4896_v11, %v4920_v39 }
 0x538   : > { %2994 = vmatpush.msra.mxu3 %v2233_v16  ;;  %v4900_v21 = vunpack.i.l.bf16 %v4899_v62  ;;  %2917 = vmatpush.msra.mxu1 %v2078_v20  ;;  %v4901_v35 = vunpack.i.h.bf16 %v4899_v62 }
 0x539   : > { %3030 = vmatpush.msra.mxu0 %v2397_v27  ;;  %2952 = vmatpush.msrb.mxu2 %v2312_v4 }
 0x53a   : > { %2995 = vmatpush.msra.mxu3 %v2163_v31  ;;  %v2068_v23 = vsel %vm421_vm6, %v4691_v30, %v4900_v21  ;;  %3883 = vmatmul.msk.f32.vlgmr.msrb.gmra.mxu0 %vm2661_vm14, %v7001_v17  ;;  %v2123_v30 = vpop.permute.xlu1 %2122 }
 0x53b   : > { %3031 = vmatpush.msra.mxu0 %v2324_v54  ;;  %2953 = vmatpush.msrb.mxu2 %v2242_v3  ;;  %v2164_v15 = vsel %vm2144_vm13, %v4920_v39, %v2123_v30  ;;  %v2154_v0 = vsel %vm2144_vm13, %v4921_v44, %v2123_v30 }
 0x53c   : > { %2996 = vmatpush.msra.mxu3 %v2153_v36  ;;  %2918 = vmatpush.msra.mxu1 %v2068_v23 }
 0x53d   : > { %3032 = vmatpush.msra.mxu0 %v2314_v51  ;;  %2954 = vmatpush.msrb.mxu2 %v2232_v57 }
 0x53e   : > { %2919 = vmatpush.msra.mxu1 %v8490_v22 }
 0x53f   : > { %3033 = vmatpush.msra.mxu0 %v2244_v12  ;;  %2955 = vmatpush.msrb.mxu2 %v2162_v60  ;;  %v4929_v49 = vpop.permute.xlu0 %4928  ;;  %v3250_v60 = vld [vmem:[%s8289_s7 + $0x78] sm:$0xff] }
 0x540   : > { %v4931_v7 = vunpack.i.h.bf16 %v4929_v49  ;;  %v4930_v29 = vunpack.i.l.bf16 %v4929_v49  ;;  %2920 = vmatpush.msra.mxu1 %v8491_v43  ;;  %v3266_v49 = vld [vmem:[%s8289_s7 + $0xf8] sm:$0xff] }
 0x541   : > { %3034 = vmatpush.msra.mxu0 %v2234_v19  ;;  %2921 = vmatmul.f32.vlgmr.msra.gmra.mxu1 %v6889_v2  ;;  %v2069_v2 = vsel %vm421_vm6, %v4900_v21, %v4901_v35  ;;  %v3282_v19 = vld [vmem:[%s8289_s7 + $0x178] sm:$0xff] }
 0x542   : > { %2956 = vmatpush.msrb.mxu2 %v2152_v48  ;;  %3059 = vmatpush.msrb.mxu1 %v7413_v6  ;;  %v2080_v10 = vsel %vm421_vm6, %v4911_v55, %v4930_v29  ;;  %v2070_v28 = vsel %vm421_vm6, %v4901_v35, %v4931_v7  ;;  %v2081_v46 = vsel %vm421_vm6, %v4930_v29, %v8492_v14 }
 0x543   : > { %3035 = vmatpush.msra.mxu0 %v2164_v15  ;;  %2997 = vmatpush.msra.mxu3 %v2080_v10  ;;  %v2071_v41 = vsel %vm421_vm6, %v4931_v7, %v8492_v14  ;;  %v2822_v38 = vpop.f32.mrf.mxu0  ;;  %v3249_v10 = vld [vmem:[%s8289_s7 + $0x70] sm:$0xff] }
 0x544   : > { %2957 = vmatpush.msrb.mxu2 %v2079_v59  ;;  %3060 = vmatpush.msrb.mxu1 %v7413_v6  ;;  %v8495_v6 = vld [vmem:[#allocation15_spill] sm:$0xff] }
 0x545   : > { %3036 = vmatpush.msra.mxu0 %v2154_v0  ;;  %2998 = vmatpush.msra.mxu3 %v2070_v28  ;;  %v3265_v0 = vld [vmem:[%s8289_s7 + $0xf0] sm:$0xff] }
 0x546   : > { %2958 = vmatpush.msrb.mxu2 %v2069_v2  ;;  %3395 = vmatpush.msra.mxu1 %v3250_v60  ;;  %v3281_v2 = vld [vmem:[%s8289_s7 + $0x170] sm:$0xff]  ;;  %v3256_v60 = vld [vmem:[%s8289_s7 + $0xa8] sm:$0xff] }
 0x547   : > { %3037 = vmatpush.msra.mxu0 %v2081_v46  ;;  %2999 = vmatpush.msra.mxu3 %v8494_v26  ;;  %v7581_v52 = vpop.permute.xlu0 %2658  ;;  %v3248_v46 = vld [vmem:[%s8289_s7 + $0x68] sm:$0xff] }
 0x548   : > { %2959 = vmatpush.msrb.mxu2 %v8493_v63  ;;  %v2683_v53 = vadd.f32 %v2682_v13, %v7581_v52  ;;  %3396 = vmatpush.msra.mxu1 %v3249_v10  ;;  %v3264_v63 = vld [vmem:[%s8289_s7 + $0xe8] sm:$0xff]  ;;  %v3246_v13 = vld [vmem:[%s8289_s7 + $0x58] sm:$0xff]  ;;  %v3253_v10 = vld [vmem:[%s8289_s7 + $0x90] sm:$0xff] }
 0x549   : > { %3038 = vmatpush.msra.mxu0 %v2071_v41  ;;  %3000 = vmatpush.msra.mxu3 %v8496_v9  ;;  %v3280_v26 = vld [vmem:[%s8289_s7 + $0x168] sm:$0xff]  ;;  %v3247_v41 = vld [vmem:[%s8289_s7 + $0x60] sm:$0xff] }
 0x54a   : > { %2960 = vmatpush.msrb.mxu2 %v8495_v6  ;;  %3001 = vmatmul.f32.vlgmr.msra.gmra.mxu3 %v5007_v42  ;;  %v3263_v6 = vld [vmem:[%s8289_s7 + $0xe0] sm:$0xff] }
 0x54b   : > { %2961 = vmatmul.f32.vlgmr.msrb.gmra.mxu2 %v5007_v42  ;;  %3039 = vmatpush.msra.mxu0 %v8497_v25  ;;  %v2702_v58 = vpop.f32.mrf.mxu1 }
 0x54c   : > { %3884 = vmatmul.msk.f32.vlgmr.msrb.gmra.mxu1 %vm2661_vm14, %v7001_v17  ;;  %v7588_v32 = vadd.f32 %v2702_v58, %v2683_v53  ;;  %v2862_v21 = vpop.f32.mrf.mxu0  ;;  %3415 = vmatpush.msra.mxu2 %v3266_v49  ;;  %v3245_v53 = vld [vmem:[%s8289_s7 + $0x50] sm:$0xff]  ;;  %v3272_v49 = vld [vmem:[%s8289_s7 + $0x128] sm:$0xff] }
 0x54d   : > { %3040 = vmatpush.msra.mxu0 %v8498_v56  ;;  %3435 = vmatpush.msrb.mxu3 %v3282_v19  ;;  %v3279_v56 = vld [vmem:[%s8289_s7 + $0x160] sm:$0xff] }
 0x54e   : > { %3041 = vmatmul.f32.vlgmr.msra.gmra.mxu0 %v5007_v42  ;;  %v3065_v62 = vmax.f32 %v7588_v32, 0.0  ;;  %3416 = vmatpush.msra.mxu2 %v3265_v0  ;;  %v3239_v19 = vld [vmem:[%s8289_s7 + $0x20] sm:$0xff]  ;;  %v3269_v0 = vld [vmem:[%s8289_s7 + $0x110] sm:$0xff] }
 0x54f   : > { %3436 = vmatpush.msrb.mxu3 %v3281_v2  ;;  %3397 = vmatpush.msra.mxu1 %v3248_v46  ;;  %v3236_v2 = vld [vmem:[%s8289_s7 + $0x8] sm:$0xff] }
 0x550   : > { %3417 = vmatpush.msra.mxu2 %v3264_v63  ;;  %v3252_v46 = vld [vmem:[%s8289_s7 + $0x88] sm:$0xff] }
 0x551   : > { %3437 = vmatpush.msrb.mxu3 %v3280_v26  ;;  %3398 = vmatpush.msra.mxu1 %v3247_v41  ;;  %v3268_v63 = vld [vmem:[%s8289_s7 + $0x108] sm:$0xff]  ;;  %v3235_v26 = vld [vmem:[%s8289_s7] sm:$0xff] }
 0x552   : > { %v2742_v40 = vpop.f32.mrf.mxu3  ;;  %3418 = vmatpush.msra.mxu2 %v3263_v6  ;;  %v3251_v41 = vld [vmem:[%s8289_s7 + $0x80] sm:$0xff]  ;;  %v3298_v6 = vld [vmem:[%s8289_s7 + $0x1f8] sm:$0xff] }
 0x553   : > { %3438 = vmatpush.msrb.mxu3 %v3279_v56  ;;  %3399 = vmatpush.msra.mxu1 %v3246_v13  ;;  %v3267_v56 = vld [vmem:[%s8289_s7 + $0x100] sm:$0xff]  ;;  %v3313_v13 = vld [vmem:[%s8289_s7 + $0x270] sm:$0xff] }
 0x554   : > { %3455 = vmatpush.msrb.mxu0 %v3298_v6 }
 0x555   : > { %3400 = vmatpush.msra.mxu1 %v3245_v53  ;;  %v3312_v53 = vld [vmem:[%s8289_s7 + $0x268] sm:$0xff] }
 0x55a   : > { %v2782_v1 = vpop.f32.mrf.mxu3 }
 0x57c   : > { %v2762_v61 = vpop.f32.mrf.mxu1 }
 0x57d   : > { %v2763_v45 = vadd.f32 %v2762_v61, %v7581_v52  ;;  %v3262_v61 = vld [vmem:[%s8289_s7 + $0xd8] sm:$0xff] }
 0x57e   : > { %3419 = vmatpush.msra.mxu2 %v3262_v61  ;;  %v3329_v61 = vld [vmem:[%s8289_s7 + $0x2f0] sm:$0xff] }
 0x57f   : > { %v7585_v33 = vadd.f32 %v2782_v1, %v2763_v45 }
 0x581   : > { %v2722_v11 = vpop.f32.mrf.mxu2  ;;  %v3067_v47 = vmax.f32 %v7585_v33, 0.0 }
 0x582   : > { %v2723_v37 = vadd.f32 %v2722_v11, %v7581_v52  ;;  %v2802_v17 = vpop.f32.mrf.mxu3  ;;  %v3261_v11 = vld [vmem:[%s8289_s7 + $0xd0] sm:$0xff] }
 0x583   : > { %v2803_v50 = vadd.f32 %v2802_v17, %v7581_v52  ;;  %3420 = vmatpush.msra.mxu2 %v3261_v11  ;;  %v3328_v11 = vld [vmem:[%s8289_s7 + $0x2e8] sm:$0xff] }
 0x584   : > { %v7591_v44 = vadd.f32 %v2742_v40, %v2723_v37  ;;  %v3277_v37 = vld [vmem:[%s8289_s7 + $0x150] sm:$0xff] }
 0x585   : > { %v7593_v39 = vadd.f32 %v2822_v38, %v2803_v50  ;;  %v3244_v38 = vld [vmem:[%s8289_s7 + $0x48] sm:$0xff] }
 0x586   : > { %v3066_v16 = vmax.f32 %v7591_v44, 0.0  ;;  %v2902_v8 = vpop.f32.mrf.mxu1  ;;  %v3260_v50 = vld [vmem:[%s8289_s7 + $0xc8] sm:$0xff]  ;;  %3401 = vmatpush.msra.mxu1 %v3244_v38  ;;  %v3327_v44 = vld [vmem:[%s8289_s7 + $0x2e0] sm:$0xff] }
 0x587   : > { %v3068_v20 = vmax.f32 %v7593_v39, 0.0  ;;  %3421 = vmatpush.msra.mxu2 %v3260_v50 }
 0x588   : > { %v4937_v27 = vpack.i.bf16 %v3067_v47, %v3066_v16 }
 0x589   : > { %v4947_v5 = vpack.i.bf16 %v3068_v20, %v3065_v62 }
 0x58a   : > { %4938 = vrot.lane.b32.xlu2 %v4937_v27, %s5022_s20  ;;  %4933 = vrot.lane.b32.xlu1 %v4937_v27, %s5018_s16 }
 0x58b   : > { %4948 = vrot.lane.b32.xlu0 %v4947_v5, %s5018_s16 }
 0x58c   : > { %v2942_v54 = vpop.f32.mrf.mxu3 }
 0x592   : > { %4943 = vrot.lane.b32.xlu1 %v4937_v27, %s5024_s22  ;;  %4953 = vrot.lane.b32.xlu2 %v4947_v5, %s5022_s20  ;;  %v3276_v27 = vld [vmem:[%s8289_s7 + $0x148] sm:$0xff] }
 0x593   : > { %4958 = vrot.lane.b32.xlu0 %v4947_v5, %s5024_s22 }
 0x5a7   : > { %v2882_v4 = vpop.f32.mrf.mxu0 }
 0x5a8   : > { %v2883_v31 = vadd.f32 %v2882_v4, %v7581_v52  ;;  %v3259_v4 = vld [vmem:[%s8289_s7 + $0xc0] sm:$0xff] }
 0x5a9   : > { %3422 = vmatpush.msra.mxu2 %v3259_v4 }
 0x5aa   : > { %v7614_v36 = vadd.f32 %v2902_v8, %v2883_v31  ;;  %v3275_v31 = vld [vmem:[%s8289_s7 + $0x140] sm:$0xff] }
 0x5ac   : > { %v3070_v18 = vmax.f32 %v7614_v36, 0.0 }
 0x5ad   : > { %v2842_v55 = vpop.f32.mrf.mxu2 }
 0x5ae   : > { %v2843_v35 = vadd.f32 %v2842_v55, %v7581_v52  ;;  %v3257_v55 = vld [vmem:[%s8289_s7 + $0xb0] sm:$0xff] }
 0x5b0   : > { %v7638_v29 = vadd.f32 %v2862_v21, %v2843_v35  ;;  %v3243_v21 = vld [vmem:[%s8289_s7 + $0x40] sm:$0xff] }
 0x5b1   : > { %3402 = vmatpush.msra.mxu1 %v3243_v21  ;;  %v3255_v35 = vld [vmem:[%s8289_s7 + $0xa0] sm:$0xff] }
 0x5b2   : > { %v3069_v9 = vmax.f32 %v7638_v29, 0.0 }
 0x5b3   : > { %v2982_v12 = vpop.f32.mrf.mxu3 }
 0x5b7   : > { %v3022_v30 = vpop.f32.mrf.mxu0 }
 0x5be   : > { %v2922_v3 = vpop.f32.mrf.mxu1 }
 0x5bf   : > { %v2923_v23 = vadd.f32 %v2922_v3, %v7581_v52  ;;  %v3258_v3 = vld [vmem:[%s8289_s7 + $0xb8] sm:$0xff] }
 0x5c0   : > { %3423 = vmatpush.msra.mxu2 %v3258_v3 }
 0x5c1   : > { %v7617_v51 = vadd.f32 %v2942_v54, %v2923_v23  ;;  %v3242_v54 = vld [vmem:[%s8289_s7 + $0x38] sm:$0xff] }
 0x5c2   : > { %v3274_v23 = vld [vmem:[%s8289_s7 + $0x138] sm:$0xff]  ;;  %3403 = vmatpush.msra.mxu1 %v3242_v54  ;;  %3424 = vmatpush.msra.mxu2 %v3257_v55 }
 0x5c3   : > { %v3071_v57 = vmax.f32 %v7617_v51, 0.0 }
 0x5c4   : > { %3425 = vmatpush.msra.mxu2 %v3256_v60 }
 0x5c5   : > { %v4962_v22 = vpack.i.bf16 %v3071_v57, %v3070_v18 }
 0x5c6   : > { %3426 = vmatpush.msra.mxu2 %v3255_v35 }
 0x5c7   : > { %4963 = vrot.lane.b32.xlu1 %v4962_v22, %s5018_s16  ;;  %4973 = vrot.lane.b32.xlu2 %v4962_v22, %s5024_s22 }
 0x5c8   : > { %4968 = vrot.lane.b32.xlu0 %v4962_v22, %s5022_s20  ;;  %v3240_v22 = vld [vmem:[%s8289_s7 + $0x28] sm:$0xff] }
 0x5c9   : > { %v3062_v40 = vpop.f32.mrf.mxu1 }
 0x5cb   : > { %v3042_v15 = vpop.f32.mrf.mxu0 }
 0x5cc   : > { %v3043_v42 = vadd.f32 %v3042_v15, %v7581_v52  ;;  %v3270_v15 = vld [vmem:[%s8289_s7 + $0x118] sm:$0xff] }
 0x5cd   : > { %v3002_v48 = vpop.f32.mrf.mxu3 }
 0x5ce   : > { %v2962_v7 = vpop.f32.mrf.mxu2  ;;  %v3003_v59 = vadd.f32 %v3002_v48, %v7581_v52  ;;  %v7689_v45 = vadd.f32 %v3062_v40, %v3043_v42  ;;  %v3254_v48 = vld [vmem:[%s8289_s7 + $0x98] sm:$0xff] }
 0x5cf   : > { %v2963_v43 = vadd.f32 %v2962_v7, %v7581_v52  ;;  %v3278_v52 = vld [vmem:[%s8289_s7 + $0x158] sm:$0xff]  ;;  %v3271_v7 = vld [vmem:[%s8289_s7 + $0x120] sm:$0xff]  ;;  %3427 = vmatpush.msra.mxu2 %v3254_v48 }
 0x5d0   : > { %v7674_v58 = vadd.f32 %v3022_v30, %v3003_v59  ;;  %3439 = vmatpush.msrb.mxu3 %v3278_v52  ;;  %v3074_v5 = vmax.f32 %v7689_v45, 0.0  ;;  %v3273_v30 = vld [vmem:[%s8289_s7 + $0x130] sm:$0xff]  ;;  %v3314_v42 = vld [vmem:[%s8289_s7 + $0x278] sm:$0xff]  ;;  %v3296_v52 = vld [vmem:[%s8289_s7 + $0x1e8] sm:$0xff] }
 0x5d1   : > { %v7651_v28 = vadd.f32 %v2982_v12, %v2963_v43  ;;  %v3241_v12 = vld [vmem:[%s8289_s7 + $0x30] sm:$0xff]  ;;  %v3238_v43 = vld [vmem:[%s8289_s7 + $0x18] sm:$0xff]  ;;  %3428 = vmatpush.msra.mxu2 %v3253_v10 }
 0x5d2   : > { %v3073_v17 = vmax.f32 %v7674_v58, 0.0  ;;  %3440 = vmatpush.msrb.mxu3 %v3277_v37  ;;  %3404 = vmatpush.msra.mxu1 %v3241_v12  ;;  %v3237_v59 = vld [vmem:[%s8289_s7 + $0x10] sm:$0xff]  ;;  %v3330_v40 = vld [vmem:[%s8289_s7 + $0x2f8] sm:$0xff] }
 0x5d3   : > { %v3072_v25 = vmax.f32 %v7651_v28, 0.0  ;;  %3429 = vmatpush.msra.mxu2 %v3252_v46  ;;  %v3294_v48 = vld [vmem:[%s8289_s7 + $0x1d8] sm:$0xff] }
 0x5d4   : > { %v4992_v8 = vpack.i.bf16 %v3073_v17, %v3074_v5  ;;  %3441 = vmatpush.msrb.mxu3 %v3276_v27  ;;  %3405 = vmatpush.msra.mxu1 %v3240_v22 }
 0x5d5   : > { %v4982_v1 = vpack.i.bf16 %v3072_v25, %v3069_v9  ;;  %3430 = vmatpush.msra.mxu2 %v3251_v41 }
 0x5d6   : > { %3442 = vmatpush.msrb.mxu3 %v3275_v31  ;;  %3406 = vmatpush.msra.mxu1 %v3239_v19 }
 0x5d7   : > { %4983 = vrot.lane.b32.xlu1 %v4982_v1, %s5022_s20  ;;  %4978 = vrot.lane.b32.xlu2 %v4982_v1, %s5018_s16 }
 0x5d8   : > { %4988 = vrot.lane.b32.xlu0 %v4982_v1, %s5024_s22  ;;  %3443 = vmatpush.msrb.mxu3 %v3274_v23  ;;  %v3297_v1 = vld [vmem:[%s8289_s7 + $0x1f0] sm:$0xff] }
 0x5d9   : > { %3407 = vmatpush.msra.mxu1 %v3238_v43  ;;  %3495 = vmatpush.msrb.mxu2 %v3330_v40  ;;  %v3311_v43 = vld [vmem:[%s8289_s7 + $0x260] sm:$0xff] }
 0x5da   : > { %3444 = vmatpush.msrb.mxu3 %v3273_v30  ;;  %3456 = vmatpush.msrb.mxu0 %v3297_v1 }
 0x5db   : > { %3408 = vmatpush.msra.mxu1 %v3237_v59  ;;  %3496 = vmatpush.msrb.mxu2 %v3329_v61  ;;  %v3326_v59 = vld [vmem:[%s8289_s7 + $0x2d8] sm:$0xff] }
 0x5dc   : > { %3445 = vmatpush.msrb.mxu3 %v3272_v49  ;;  %3457 = vmatpush.msrb.mxu0 %v3296_v52  ;;  %v3325_v52 = vld [vmem:[%s8289_s7 + $0x2d0] sm:$0xff] }
 0x5dd   : > { %3409 = vmatpush.msra.mxu1 %v3236_v2  ;;  %3497 = vmatpush.msrb.mxu2 %v3328_v11  ;;  %v3308_v11 = vld [vmem:[%s8289_s7 + $0x248] sm:$0xff] }
 0x5de   : > { %3446 = vmatpush.msrb.mxu3 %v3271_v7  ;;  %v3295_v7 = vld [vmem:[%s8289_s7 + $0x1e0] sm:$0xff] }
 0x5df   : > { %4993 = vrot.lane.b32.xlu1 %v4992_v8, %s5018_s16  ;;  %4998 = vrot.lane.b32.xlu2 %v4992_v8, %s5022_s20 }
 0x5e0   : > { %5003 = vrot.lane.b32.xlu0 %v4992_v8, %s5024_s22  ;;  %3447 = vmatpush.msrb.mxu3 %v3270_v15  ;;  %v3310_v15 = vld [vmem:[%s8289_s7 + $0x258] sm:$0xff] }
 0x5e1   : > { %3410 = vmatpush.msra.mxu1 %v3235_v26  ;;  %3458 = vmatpush.msrb.mxu0 %v3295_v7  ;;  %v3309_v26 = vld [vmem:[%s8289_s7 + $0x250] sm:$0xff]  ;;  %v3303_v7 = vld [vmem:[%s8289_s7 + $0x220] sm:$0xff] }
 0x5e2   : > { %3448 = vmatpush.msrb.mxu3 %v3269_v0  ;;  %3498 = vmatpush.msrb.mxu2 %v3327_v44  ;;  %v3345_v44 = vld [vmem:[%s8289_s7 + $0x370] sm:$0xff] }
 0x5e3   : > { %3475 = vmatpush.msrb.mxu1 %v3314_v42  ;;  %3459 = vmatpush.msrb.mxu0 %v3294_v48  ;;  %v3285_v48 = vld [vmem:[%s8289_s7 + $0x190] sm:$0xff] }
 0x5e4   : > { %3449 = vmatpush.msrb.mxu3 %v3268_v63  ;;  %v4939_v37 = vpop.permute.xlu2 %4938  ;;  %v3293_v63 = vld [vmem:[%s8289_s7 + $0x1d0] sm:$0xff]  ;;  %3499 = vmatpush.msrb.mxu2 %v3326_v59  ;;  %v3343_v59 = vld [vmem:[%s8289_s7 + $0x360] sm:$0xff] }
 0x5e5   : > { %3476 = vmatpush.msrb.mxu1 %v3313_v13  ;;  %v4941_v12 = vunpack.i.h.bf16 %v4939_v37  ;;  %v4940_v55 = vunpack.i.l.bf16 %v4939_v37  ;;  %3460 = vmatpush.msrb.mxu0 %v3293_v63  ;;  %v3324_v37 = vld [vmem:[%s8289_s7 + $0x2c8] sm:$0xff] }
 0x5e6   : > { %3450 = vmatpush.msrb.mxu3 %v3267_v56  ;;  %3500 = vmatpush.msrb.mxu2 %v3325_v52  ;;  %v3316_v63 = vld [vmem:[%s8289_s7 + $0x288] sm:$0xff]  ;;  %v3361_v52 = vld [vmem:[%s8289_s7 + $0x3f0] sm:$0xff] }
 0x5e7   : > { %3477 = vmatpush.msrb.mxu1 %v3312_v53  ;;  %v3292_v53 = vld [vmem:[%s8289_s7 + $0x1c8] sm:$0xff] }
 0x5e8   : > { %3461 = vmatpush.msrb.mxu0 %v3292_v53  ;;  %3501 = vmatpush.msrb.mxu2 %v3324_v37  ;;  %v3377_v53 = vld [vmem:[%s8289_s7 + $0x470] sm:$0xff]  ;;  %v3339_v37 = vld [vmem:[%s8289_s7 + $0x340] sm:$0xff] }
 0x5e9   : > { %3478 = vmatpush.msrb.mxu1 %v3311_v43  ;;  %v3319_v43 = vld [vmem:[%s8289_s7 + $0x2a0] sm:$0xff] }
 0x5eb   : > { %3479 = vmatpush.msrb.mxu1 %v3310_v15  ;;  %v3301_v15 = vld [vmem:[%s8289_s7 + $0x210] sm:$0xff] }
 0x5ec   : > { %v7831_v8 = vpop.permute.xlu2 %4953 }
 0x5ed   : > { %v4956_v30 = vunpack.i.h.bf16 %v7831_v8  ;;  %v4955_v22 = vunpack.i.l.bf16 %v7831_v8  ;;  %3480 = vmatpush.msrb.mxu1 %v3309_v26  ;;  %v3342_v26 = vld [vmem:[%s8289_s7 + $0x358] sm:$0xff] }
 0x5ef   : > { %v3157_v33 = vsel %vm593_vm1, %v4941_v12, %v4956_v30  ;;  %v3155_v10 = vsel %vm593_vm1, %v4955_v22, %v4940_v55  ;;  %3481 = vmatpush.msrb.mxu1 %v3308_v11  ;;  %v3288_v22 = vld [vmem:[%s8289_s7 + $0x1a8] sm:$0xff]  ;;  %v3393_v11 = vld [vmem:[%s8289_s7 + $0x4f0] sm:$0xff] }
 0x5fc   : > { %v4934_v38 = vpop.permute.xlu1 %4933 }
 0x5fd   : > { %v4936_v50 = vunpack.i.h.bf16 %v4934_v38  ;;  %v4935_v27 = vunpack.i.l.bf16 %v4934_v38  ;;  %v7829_v21 = vpop.permute.xlu0 %4948  ;;  %v3291_v38 = vld [vmem:[%s8289_s7 + $0x1c0] sm:$0xff] }
 0x5fe   : > { %v4951_v4 = vunpack.i.h.bf16 %v7829_v21  ;;  %v4950_v31 = vunpack.i.l.bf16 %v7829_v21  ;;  %3462 = vmatpush.msrb.mxu0 %v3291_v38  ;;  %v3360_v38 = vld [vmem:[%s8289_s7 + $0x3e8] sm:$0xff] }
 0x5ff   : > { %v3106_v54 = vsel %vm421_vm6, %v4935_v27, %v4936_v50 }
 0x600   : > { %v3107_v3 = vsel %vm421_vm6, %v4936_v50, %v4951_v4  ;;  %v3105_v23 = vsel %vm421_vm6, %v4950_v31, %v4935_v27  ;;  %v3126_v60 = vmax.f32 %v3066_v16, %v3106_v54  ;;  %v3156_v16 = vsel %vm593_vm1, %v4940_v55, %v4941_v12  ;;  %v3307_v50 = vld [vmem:[%s8289_s7 + $0x240] sm:$0xff]  ;;  %v3290_v31 = vld [vmem:[%s8289_s7 + $0x1b8] sm:$0xff]  ;;  %v3305_v12 = vld [vmem:[%s8289_s7 + $0x230] sm:$0xff] }
 0x601   : > { %v3127_v49 = vmax.f32 %v3067_v47, %v3107_v3  ;;  %v3125_v19 = vmax.f32 %v3065_v62, %v3105_v23  ;;  %v3323_v27 = vld [vmem:[%s8289_s7 + $0x2c0] sm:$0xff]  ;;  %v3306_v54 = vld [vmem:[%s8289_s7 + $0x238] sm:$0xff]  ;;  %3482 = vmatpush.msrb.mxu1 %v3307_v50  ;;  %v3289_v23 = vld [vmem:[%s8289_s7 + $0x1b0] sm:$0xff]  ;;  %3463 = vmatpush.msrb.mxu0 %v3290_v31 }
 0x602   : > { %v3176_v0 = vmax.f32 %v3126_v60, %v3156_v16  ;;  %v3322_v3 = vld [vmem:[%s8289_s7 + $0x2b8] sm:$0xff]  ;;  %3502 = vmatpush.msrb.mxu2 %v3323_v27  ;;  %v3321_v55 = vld [vmem:[%s8289_s7 + $0x2b0] sm:$0xff]  ;;  %v3304_v60 = vld [vmem:[%s8289_s7 + $0x228] sm:$0xff] }
 0x603   : > { %v3175_v6 = vmax.f32 %v3125_v19, %v3155_v10  ;;  %v3177_v42 = vmax.f32 %v3127_v49, %v3157_v33  ;;  %3483 = vmatpush.msrb.mxu1 %v3306_v54  ;;  %3464 = vmatpush.msrb.mxu0 %v3289_v23  ;;  %v3320_v49 = vld [vmem:[%s8289_s7 + $0x2a8] sm:$0xff]  ;;  %v3346_v19 = vld [vmem:[%s8289_s7 + $0x378] sm:$0xff]  ;;  %v3317_v10 = vld [vmem:[%s8289_s7 + $0x290] sm:$0xff] }
 0x604   : > { %v4944_v35 = vpop.permute.xlu1 %4943  ;;  %3503 = vmatpush.msrb.mxu2 %v3322_v3  ;;  %3515 = vmatpush.msra.mxu3 %v3346_v19  ;;  %v3286_v16 = vld [vmem:[%s8289_s7 + $0x198] sm:$0xff]  ;;  %v3376_v50 = vld [vmem:[%s8289_s7 + $0x468] sm:$0xff]  ;;  %v3359_v54 = vld [vmem:[%s8289_s7 + $0x3e0] sm:$0xff] }
 0x605   : > { %v4946_v32 = vunpack.i.h.bf16 %v4944_v35  ;;  %v4945_v47 = vunpack.i.l.bf16 %v4944_v35  ;;  %v7861_v62 = vpop.permute.xlu0 %4958  ;;  %3484 = vmatpush.msrb.mxu1 %v3305_v12  ;;  %3465 = vmatpush.msrb.mxu0 %v3288_v22  ;;  %v3287_v35 = vld [vmem:[%s8289_s7 + $0x1a0] sm:$0xff]  ;;  %v3302_v33 = vld [vmem:[%s8289_s7 + $0x218] sm:$0xff]  ;;  %v3392_v27 = vld [vmem:[%s8289_s7 + $0x4e8] sm:$0xff] }
 0x606   : > { %v4961_v2 = vunpack.i.h.bf16 %v7861_v62  ;;  %v4960_v46 = vunpack.i.l.bf16 %v7861_v62  ;;  %3504 = vmatpush.msrb.mxu2 %v3321_v55  ;;  %3516 = vmatpush.msra.mxu3 %v3345_v44  ;;  %v3338_v31 = vld [vmem:[%s8289_s7 + $0x338] sm:$0xff]  ;;  %v3375_v3 = vld [vmem:[%s8289_s7 + $0x460] sm:$0xff]  ;;  %v3337_v12 = vld [vmem:[%s8289_s7 + $0x330] sm:$0xff] }
 0x607   : > { %v3206_v41 = vsel %vm679_vm2, %v4945_v47, %v4946_v32  ;;  %3485 = vmatpush.msrb.mxu1 %v3304_v60  ;;  %3466 = vmatpush.msrb.mxu0 %v3287_v35  ;;  %v3391_v23 = vld [vmem:[%s8289_s7 + $0x4e0] sm:$0xff]  ;;  %v3358_v55 = vld [vmem:[%s8289_s7 + $0x3d8] sm:$0xff]  ;;  %v3357_v19 = vld [vmem:[%s8289_s7 + $0x3d0] sm:$0xff] }
 0x608   : > { %v3226_v56 = vmax.f32 %v3176_v0, %v3206_v41  ;;  %v3207_v40 = vsel %vm679_vm2, %v4946_v32, %v4961_v2  ;;  %v3205_v1 = vsel %vm679_vm2, %v4960_v46, %v4945_v47  ;;  %3505 = vmatpush.msrb.mxu2 %v3320_v49  ;;  %v3344_v32 = vld [vmem:[%s8289_s7 + $0x368] sm:$0xff]  ;;  %v3318_v47 = vld [vmem:[%s8289_s7 + $0x298] sm:$0xff]  ;;  %v3283_v41 = vld [vmem:[%s8289_s7 + $0x180] sm:$0xff] }
 0x609   : > { %v3225_v13 = vmax.f32 %v3175_v6, %v3205_v1  ;;  %v3227_v61 = vmax.f32 %v3177_v42, %v3207_v40  ;;  %3486 = vmatpush.msrb.mxu1 %v3303_v7  ;;  %3467 = vmatpush.msrb.mxu0 %v3286_v16  ;;  %v3284_v0 = vld [vmem:[%s8289_s7 + $0x188] sm:$0xff]  ;;  %v3299_v6 = vld [vmem:[%s8289_s7 + $0x200] sm:$0xff]  ;;  %v3362_v40 = vld [vmem:[%s8289_s7 + $0x3f8] sm:$0xff] }
 0x60a   : > { %3431 = vmatmul.f32.vlgmr.msra.gmra.mxu2 %v3226_v56  ;;  %3517 = vmatpush.msra.mxu3 %v3344_v32  ;;  %v3300_v46 = vld [vmem:[%s8289_s7 + $0x208] sm:$0xff]  ;;  %v3315_v42 = vld [vmem:[%s8289_s7 + $0x280] sm:$0xff]  ;;  %v3341_v56 = vld [vmem:[%s8289_s7 + $0x350] sm:$0xff] }
 0x60b   : > { %3411 = vmatmul.f32.vlgmr.msra.gmra.mxu1 %v3225_v13  ;;  %3451 = vmatmul.f32.vlgmr.msrb.gmra.mxu3 %v3227_v61  ;;  %v3378_v1 = vld [vmem:[%s8289_s7 + $0x478] sm:$0xff]  ;;  %v3340_v61 = vld [vmem:[%s8289_s7 + $0x348] sm:$0xff]  ;;  %v3373_v35 = vld [vmem:[%s8289_s7 + $0x450] sm:$0xff] }
 0x60c   : > { %3506 = vmatpush.msrb.mxu2 %v3319_v43  ;;  %3487 = vmatpush.msrb.mxu1 %v3302_v33  ;;  %v3394_v13 = vld [vmem:[%s8289_s7 + $0x4f8] sm:$0xff]  ;;  %v3336_v49 = vld [vmem:[%s8289_s7 + $0x328] sm:$0xff]  ;;  %v3389_v7 = vld [vmem:[%s8289_s7 + $0x4d0] sm:$0xff] }
 0x60d   : > { %3468 = vmatpush.msrb.mxu0 %v3285_v48  ;;  %3518 = vmatpush.msra.mxu3 %v3343_v59  ;;  %v3374_v22 = vld [vmem:[%s8289_s7 + $0x458] sm:$0xff]  ;;  %v3335_v43 = vld [vmem:[%s8289_s7 + $0x320] sm:$0xff]  ;;  %v3356_v44 = vld [vmem:[%s8289_s7 + $0x3c8] sm:$0xff] }
 0x60e   : > { %3507 = vmatpush.msrb.mxu2 %v3318_v47  ;;  %3488 = vmatpush.msrb.mxu1 %v3301_v15  ;;  %v3390_v60 = vld [vmem:[%s8289_s7 + $0x4d8] sm:$0xff]  ;;  %v3372_v16 = vld [vmem:[%s8289_s7 + $0x448] sm:$0xff]  ;;  %v3355_v47 = vld [vmem:[%s8289_s7 + $0x3c0] sm:$0xff] }
 0x60f   : > { %3469 = vmatpush.msrb.mxu0 %v3284_v0  ;;  %3519 = vmatpush.msra.mxu3 %v3342_v26  ;;  %v3388_v33 = vld [vmem:[%s8289_s7 + $0x4c8] sm:$0xff]  ;;  %v3334_v32 = vld [vmem:[%s8289_s7 + $0x318] sm:$0xff]  ;;  %v3371_v48 = vld [vmem:[%s8289_s7 + $0x440] sm:$0xff] }
 0x610   : > { %3508 = vmatpush.msrb.mxu2 %v3317_v10  ;;  %3489 = vmatpush.msrb.mxu1 %v3300_v46  ;;  %v3387_v15 = vld [vmem:[%s8289_s7 + $0x4c0] sm:$0xff]  ;;  %v3333_v59 = vld [vmem:[%s8289_s7 + $0x310] sm:$0xff]  ;;  %v3354_v10 = vld [vmem:[%s8289_s7 + $0x3b8] sm:$0xff] }
 0x611   : > { %3470 = vmatpush.msrb.mxu0 %v3283_v41  ;;  %3520 = vmatpush.msra.mxu3 %v3341_v56  ;;  %v3370_v0 = vld [vmem:[%s8289_s7 + $0x438] sm:$0xff]  ;;  %v3353_v26 = vld [vmem:[%s8289_s7 + $0x3b0] sm:$0xff]  ;;  %v3352_v56 = vld [vmem:[%s8289_s7 + $0x3a8] sm:$0xff] }
 0x612   : > { %3509 = vmatpush.msrb.mxu2 %v3316_v63  ;;  %3490 = vmatpush.msrb.mxu1 %v3299_v6  ;;  %v3386_v46 = vld [vmem:[%s8289_s7 + $0x4b8] sm:$0xff]  ;;  %v3332_v63 = vld [vmem:[%s8289_s7 + $0x308] sm:$0xff]  ;;  %v3369_v41 = vld [vmem:[%s8289_s7 + $0x430] sm:$0xff] }
 0x613   : > { %3535 = vmatpush.msra.mxu0 %v3362_v40  ;;  %3521 = vmatpush.msra.mxu3 %v3340_v61  ;;  %v3385_v6 = vld [vmem:[%s8289_s7 + $0x4b0] sm:$0xff]  ;;  %v3368_v40 = vld [vmem:[%s8289_s7 + $0x428] sm:$0xff]  ;;  %v3351_v61 = vld [vmem:[%s8289_s7 + $0x3a0] sm:$0xff] }
 0x614   : > { %3510 = vmatpush.msrb.mxu2 %v3315_v42  ;;  %3555 = vmatpush.msra.mxu1 %v3378_v1  ;;  %v3331_v42 = vld [vmem:[%s8289_s7 + $0x300] sm:$0xff]  ;;  %v3384_v1 = vld [vmem:[%s8289_s7 + $0x4a8] sm:$0xff] }
 0x615   : > { %3536 = vmatpush.msra.mxu0 %v3361_v52  ;;  %3522 = vmatpush.msra.mxu3 %v3339_v37  ;;  %v3367_v52 = vld [vmem:[%s8289_s7 + $0x420] sm:$0xff]  ;;  %v3350_v37 = vld [vmem:[%s8289_s7 + $0x398] sm:$0xff] }
 0x616   : > { %3575 = vmatpush.msra.mxu2 %v3394_v13  ;;  %3556 = vmatpush.msra.mxu1 %v3377_v53  ;;  %v3383_v53 = vld [vmem:[%s8289_s7 + $0x4a0] sm:$0xff] }
 0x617   : > { %3537 = vmatpush.msra.mxu0 %v3360_v38  ;;  %3523 = vmatpush.msra.mxu3 %v3338_v31  ;;  %v3366_v38 = vld [vmem:[%s8289_s7 + $0x418] sm:$0xff] }
 0x618   : > { %3576 = vmatpush.msra.mxu2 %v3393_v11  ;;  %3557 = vmatpush.msra.mxu1 %v3376_v50  ;;  %v3382_v50 = vld [vmem:[%s8289_s7 + $0x498] sm:$0xff] }
 0x619   : > { %3538 = vmatpush.msra.mxu0 %v3359_v54  ;;  %3524 = vmatpush.msra.mxu3 %v3337_v12 }
 0x61a   : > { %3577 = vmatpush.msra.mxu2 %v3392_v27  ;;  %3558 = vmatpush.msra.mxu1 %v3375_v3  ;;  %v3349_v3 = vld [vmem:[%s8289_s7 + $0x390] sm:$0xff] }
 0x61b   : > { %3539 = vmatpush.msra.mxu0 %v3358_v55  ;;  %3525 = vmatpush.msra.mxu3 %v3336_v49  ;;  %v3365_v55 = vld [vmem:[%s8289_s7 + $0x410] sm:$0xff] }
 0x61c   : > { %3578 = vmatpush.msra.mxu2 %v3391_v23  ;;  %3559 = vmatpush.msra.mxu1 %v3374_v22  ;;  %v3381_v22 = vld [vmem:[%s8289_s7 + $0x490] sm:$0xff] }
 0x61d   : > { %3540 = vmatpush.msra.mxu0 %v3357_v19  ;;  %3526 = vmatpush.msra.mxu3 %v3335_v43  ;;  %v3364_v43 = vld [vmem:[%s8289_s7 + $0x408] sm:$0xff] }
 0x61e   : > { %3579 = vmatpush.msra.mxu2 %v3390_v60  ;;  %3560 = vmatpush.msra.mxu1 %v3373_v35  ;;  %v3348_v35 = vld [vmem:[%s8289_s7 + $0x388] sm:$0xff] }
 0x61f   : > { %3541 = vmatpush.msra.mxu0 %v3356_v44  ;;  %3527 = vmatpush.msra.mxu3 %v3334_v32  ;;  %v3380_v44 = vld [vmem:[%s8289_s7 + $0x488] sm:$0xff] }
 0x620   : > { %3580 = vmatpush.msra.mxu2 %v3389_v7  ;;  %3561 = vmatpush.msra.mxu1 %v3372_v16 }
 0x621   : > { %3542 = vmatpush.msra.mxu0 %v3355_v47  ;;  %3528 = vmatpush.msra.mxu3 %v3333_v59  ;;  %v8126_v13 = vpop.permute.xlu2 %4973  ;;  %v3379_v47 = vld [vmem:[%s8289_s7 + $0x480] sm:$0xff] }
 0x622   : > { %3581 = vmatpush.msra.mxu2 %v3388_v33  ;;  %3562 = vmatpush.msra.mxu1 %v3371_v48  ;;  %v4976_v60 = vunpack.i.h.bf16 %v8126_v13  ;;  %v4975_v49 = vunpack.i.l.bf16 %v8126_v13  ;;  %v3347_v33 = vld [vmem:[%s8289_s7 + $0x380] sm:$0xff] }
 0x623   : > { %3543 = vmatpush.msra.mxu0 %v3354_v10  ;;  %3529 = vmatpush.msra.mxu3 %v3332_v63 }
 0x624   : > { %3582 = vmatpush.msra.mxu2 %v3387_v15  ;;  %3563 = vmatpush.msra.mxu1 %v3370_v0  ;;  %v3210_v48 = vsel %vm679_vm2, %v4975_v49, %v4976_v60 }
 0x625   : > { %3544 = vmatpush.msra.mxu0 %v3353_v26  ;;  %3530 = vmatpush.msra.mxu3 %v3331_v42 }
 0x626   : > { %3583 = vmatpush.msra.mxu2 %v3386_v46  ;;  %3564 = vmatpush.msra.mxu1 %v3369_v41 }
 0x627   : > { %3545 = vmatpush.msra.mxu0 %v3352_v56 }
 0x628   : > { %3584 = vmatpush.msra.mxu2 %v3385_v6  ;;  %3565 = vmatpush.msra.mxu1 %v3368_v40 }
 0x629   : > { %3546 = vmatpush.msra.mxu0 %v3351_v61 }
 0x62a   : > { %3585 = vmatpush.msra.mxu2 %v3384_v1  ;;  %3566 = vmatpush.msra.mxu1 %v3367_v52 }
 0x62b   : > { %3547 = vmatpush.msra.mxu0 %v3350_v37 }
 0x62c   : > { %3586 = vmatpush.msra.mxu2 %v3383_v53  ;;  %3567 = vmatpush.msra.mxu1 %v3366_v38 }
 0x62d   : > { %3548 = vmatpush.msra.mxu0 %v3349_v3 }
 0x62e   : > { %3587 = vmatpush.msra.mxu2 %v3382_v50  ;;  %3568 = vmatpush.msra.mxu1 %v3365_v55 }
 0x62f   : > { %3549 = vmatpush.msra.mxu0 %v3348_v35 }
 0x630   : > { %3588 = vmatpush.msra.mxu2 %v3381_v22  ;;  %3569 = vmatpush.msra.mxu1 %v3364_v43 }
 0x631   : > { %v4979_v32 = vpop.permute.xlu2 %4978  ;;  %3550 = vmatpush.msra.mxu0 %v3347_v33  ;;  %v3609_v33 = vld [vmem:[%s8290_s8 + $0x70] sm:$0xff] }
 0x632   : > { %3589 = vmatpush.msra.mxu2 %v3380_v44  ;;  %v4980_v59 = vunpack.i.l.bf16 %v4979_v32  ;;  %v4981_v10 = vunpack.i.h.bf16 %v4979_v32  ;;  %v3597_v32 = vld [vmem:[%s8290_s8 + $0x10] sm:$0xff] }
 0x634   : > { %3590 = vmatpush.msra.mxu2 %v3379_v47  ;;  %v3108_v0 = vsel %vm421_vm6, %v4951_v4, %v4980_v59  ;;  %v3604_v47 = vld [vmem:[%s8290_s8 + $0x48] sm:$0xff] }
 0x635   : > { %v3128_v41 = vmax.f32 %v3068_v20, %v3108_v0 }
 0x639   : > { %v4964_v11 = vpop.permute.xlu1 %4963  ;;  %v4999_v29 = vpop.permute.xlu2 %4998 }
 0x63a   : > { %v4966_v27 = vunpack.i.h.bf16 %v4964_v11  ;;  %v4965_v31 = vunpack.i.l.bf16 %v4964_v11  ;;  %v4969_v54 = vpop.permute.xlu0 %4968  ;;  %v5001_v38 = vunpack.i.h.bf16 %v4999_v29  ;;  %v5000_v50 = vunpack.i.l.bf16 %v4999_v29  ;;  %v3602_v29 = vld [vmem:[%s8290_s8 + $0x38] sm:$0xff] }
 0x63b   : > { %v4971_v23 = vunpack.i.h.bf16 %v4969_v54  ;;  %v4970_v12 = vunpack.i.l.bf16 %v4969_v54 }
 0x63c   : > { %v3110_v19 = vsel %vm421_vm6, %v4965_v31, %v4966_v27  ;;  %v3109_v46 = vsel %vm421_vm6, %v4980_v59, %v4965_v31  ;;  %v3111_v63 = vsel %vm421_vm6, %v4966_v27, %v4981_v10  ;;  %v3599_v59 = vld [vmem:[%s8290_s8 + $0x20] sm:$0xff] }
 0x63d   : > { %v3130_v7 = vmax.f32 %v3070_v18, %v3110_v19  ;;  %v3160_v16 = vsel %vm593_vm1, %v4970_v12, %v4971_v23  ;;  %v3363_v18 = vld [vmem:[%s8289_s7 + $0x400] sm:$0xff]  ;;  %v3129_v40 = vmax.f32 %v3069_v9, %v3109_v46  ;;  %v3131_v1 = vmax.f32 %v3071_v57, %v3111_v63 }
 0x63e   : > { %3570 = vmatpush.msra.mxu1 %v3363_v18  ;;  %v3164_v19 = vsel %vm593_vm1, %v5000_v50, %v8489_v24  ;;  %v3603_v24 = vld [vmem:[%s8290_s8 + $0x40] sm:$0xff]  ;;  %v3601_v18 = vld [vmem:[%s8290_s8 + $0x30] sm:$0xff] }
 0x63f   : > { %v3180_v36 = vmax.f32 %v3130_v7, %v3160_v16  ;;  %3628 = vmatpush.msrb.mxu3 %v3603_v24  ;;  %v3608_v16 = vld [vmem:[%s8290_s8 + $0x68] sm:$0xff] }
 0x641   : > { %v3230_v15 = vmax.f32 %v3180_v36, %v3210_v48  ;;  %v3600_v36 = vld [vmem:[%s8290_s8 + $0x28] sm:$0xff] }
 0x642   : > { %v3596_v48 = vld [vmem:[%s8290_s8 + $0x8] sm:$0xff] }
 0x643   : > { %3511 = vmatmul.f32.vlgmr.msrb.gmra.mxu2 %v3230_v15  ;;  %v3607_v15 = vld [vmem:[%s8290_s8 + $0x60] sm:$0xff] }
 0x644   : > { %3748 = vmatpush.msrb.mxu2 %v3609_v33 }
 0x646   : > { %3749 = vmatpush.msrb.mxu2 %v3601_v18 }
 0x649   : > { %v4984_v26 = vpop.permute.xlu1 %4983 }
 0x64a   : > { %v4986_v6 = vunpack.i.h.bf16 %v4984_v26  ;;  %v4985_v42 = vunpack.i.l.bf16 %v4984_v26  ;;  %v4989_v56 = vpop.permute.xlu0 %4988 }
 0x64b   : > { %v4991_v21 = vunpack.i.h.bf16 %v4989_v56  ;;  %v4990_v13 = vunpack.i.l.bf16 %v4989_v56 }
 0x64c   : > { %v3158_v4 = vsel %vm593_vm1, %v4956_v30, %v4985_v42  ;;  %v3159_v61 = vsel %vm593_vm1, %v4985_v42, %v4970_v12  ;;  %v3161_v39 = vsel %vm593_vm1, %v4971_v23, %v4986_v6  ;;  %v3162_v35 = vsel %vm593_vm1, %v4986_v6, %v5001_v38 }
 0x64d   : > { %v3178_v20 = vmax.f32 %v3128_v41, %v3158_v4  ;;  %v3179_v52 = vmax.f32 %v3129_v40, %v3159_v61  ;;  %v3181_v53 = vmax.f32 %v3131_v1, %v3161_v39  ;;  %v3211_v11 = vsel %vm679_vm2, %v4976_v60, %v4991_v21 }
 0x64e   : > { %v3208_v51 = vsel %vm679_vm2, %v4961_v2, %v4990_v13  ;;  %v3209_v57 = vsel %vm679_vm2, %v4990_v13, %v4975_v49  ;;  %v3163_v49 = vsel %vm593_vm1, %v5001_v38, %v5000_v50 }
 0x64f   : > { %v3228_v9 = vmax.f32 %v3178_v20, %v3208_v51  ;;  %v3229_v8 = vmax.f32 %v3179_v52, %v3209_v57  ;;  %v3231_v37 = vmax.f32 %v3181_v53, %v3211_v11  ;;  %v3606_v11 = vld [vmem:[%s8290_s8 + $0x58] sm:$0xff] }
 0x650   : > { %v3598_v51 = vld [vmem:[%s8290_s8 + $0x18] sm:$0xff] }
 0x651   : > { %v4994_v30 = vpop.permute.xlu1 %4993  ;;  %3471 = vmatmul.f32.vlgmr.msrb.gmra.mxu0 %v3228_v9  ;;  %3491 = vmatmul.f32.vlgmr.msrb.gmra.mxu1 %v3229_v8  ;;  %v3610_v57 = vld [vmem:[%s8290_s8 + $0x78] sm:$0xff] }
 0x652   : > { %v4996_v27 = vunpack.i.h.bf16 %v4994_v30  ;;  %v4995_v31 = vunpack.i.l.bf16 %v4994_v30  ;;  %v5004_v54 = vpop.permute.xlu0 %5003  ;;  %3531 = vmatmul.f32.vlgmr.msra.gmra.mxu3 %v3231_v37  ;;  %3728 = vmatpush.msrb.mxu1 %v3608_v16 }
 0x653   : > { %v5006_v3 = vunpack.i.h.bf16 %v5004_v54  ;;  %v5005_v12 = vunpack.i.l.bf16 %v5004_v54 }
 0x654   : > { %v3112_v62 = vsel %vm421_vm6, %v4981_v10, %v4996_v27  ;;  %v3113_v2 = vsel %vm421_vm6, %v4996_v27, %v4995_v31  ;;  %v3114_v23 = vsel %vm421_vm6, %v4995_v31, %v8492_v14  ;;  %3729 = vmatpush.msrb.mxu1 %v3600_v36 }
 0x655   : > { %v3132_v55 = vmax.f32 %v3072_v25, %v3112_v62  ;;  %v3133_v22 = vmax.f32 %v3073_v17, %v3113_v2  ;;  %v3134_v60 = vmax.f32 %v3074_v5, %v3114_v23  ;;  %v3212_v44 = vsel %vm679_vm2, %v4991_v21, %v5006_v3  ;;  %v3595_v5 = vld [vmem:[%s8290_s8] sm:$0xff] }
 0x656   : > { %v3213_v28 = vsel %vm679_vm2, %v5006_v3, %v5005_v12  ;;  %v3214_v25 = vsel %vm679_vm2, %v5005_v12, %v8487_v34  ;;  %3629 = vmatpush.msrb.mxu3 %v3595_v5  ;;  %v3605_v34 = vld [vmem:[%s8290_s8 + $0x50] sm:$0xff] }
 0x657   : > { %v3182_v7 = vmax.f32 %v3132_v55, %v3162_v35  ;;  %v3183_v43 = vmax.f32 %v3133_v22, %v3163_v49  ;;  %v3184_v14 = vmax.f32 %v3134_v60, %v3164_v19  ;;  %3668 = vmatpush.msrb.mxu0 %v3605_v34 }
 0x658   : > { %3648 = vmatpush.msra.mxu3 %v3604_v47 }
 0x659   : > { %v3232_v58 = vmax.f32 %v3182_v7, %v3212_v44  ;;  %v3233_v45 = vmax.f32 %v3183_v43, %v3213_v28  ;;  %v3234_v17 = vmax.f32 %v3184_v14, %v3214_v25  ;;  %3669 = vmatpush.msrb.mxu0 %v3597_v32 }
 0x65a   : > { %3649 = vmatpush.msra.mxu3 %v3596_v48 }
 0x65b   : > { %3551 = vmatmul.f32.vlgmr.msra.gmra.mxu0 %v3232_v58  ;;  %3571 = vmatmul.f32.vlgmr.msra.gmra.mxu1 %v3233_v45 }
 0x65c   : > { %3591 = vmatmul.f32.vlgmr.msra.gmra.mxu2 %v3234_v17  ;;  %3708 = vmatpush.msra.mxu0 %v3607_v15 }
 0x65e   : > { %3709 = vmatpush.msra.mxu0 %v3599_v59 }
 0x688   : > { %v3412_v0 = vpop.f32.mrf.mxu1 }
 0x68d   : > { %v3432_v10 = vpop.f32.mrf.mxu2 }
 0x68e   : > { %v3433_v46 = vadd.f32 %v3432_v10, %v3412_v0  ;;  %v3452_v63 = vpop.f32.mrf.mxu3 }
 0x690   : > { %v3453_v26 = vadd.f32 %v3452_v63, %v3433_v46 }
 0x6c6   : > { %v3512_v40 = vpop.f32.mrf.mxu2 }
 0x6ce   : > { %v3472_v41 = vpop.f32.mrf.mxu0  ;;  %v3492_v42 = vpop.f32.mrf.mxu1 }
 0x6cf   : > { %v3473_v6 = vadd.f32 %v3472_v41, %v3453_v26 }
 0x6d1   : > { %v3493_v56 = vadd.f32 %v3492_v42, %v3473_v6 }
 0x6d3   : > { %v3513_v1 = vadd.f32 %v3512_v40, %v3493_v56 }
 0x6d5   : > { %v3532_v21 = vpop.f32.mrf.mxu3 }
 0x6d6   : > { %v3533_v13 = vadd.f32 %v3532_v21, %v3513_v1 }
 0x6d8   : > { %v3552_v4 = vpop.f32.mrf.mxu0  ;;  %v3572_v39 = vpop.f32.mrf.mxu1 }
 0x6d9   : > { %v3553_v61 = vadd.f32 %v3552_v4, %v3533_v13 }
 0x6db   : > { %v3573_v20 = vadd.f32 %v3572_v39, %v3553_v61 }
 0x6df   : > { %v3592_v52 = vpop.f32.mrf.mxu2 }
 0x6e0   : > { %v3593_v53 = vadd.f32 %v3592_v52, %v3573_v20 }
 0x6e2   : > { %3885 = vmatmul.msk.f32.vlgmr.msrb.gmra.mxu3 %vm2661_vm14, %v3593_v53  ;;  %3887 = vmatmul.msk.f32.vlgmr.msrb.gmra.mxu0 %vm2661_vm14, %v3593_v53 }
 0x6e3   : > { %3890 = vmatmul.msk.f32.vlgmr.msrb.gmra.mxu1 %vm2661_vm14, %v3593_v53  ;;  %3891 = vmatmul.msk.f32.vlgmr.msrb.gmra.mxu2 %vm2661_vm14, %v3593_v53 }
 0x6e4   : > { %3688 = vmatpush.msrb.mxu3 %v3606_v11 }
 0x6e6   : > { %3689 = vmatpush.msrb.mxu3 %v3598_v51 }
 0x6ea   : > { %3886 = vmatmul.msk.f32.vlgmr.msra.gmra.mxu3 %vm2661_vm14, %v3593_v53  ;;  %3889 = vmatmul.msk.f32.vlgmr.msra.gmra.mxu0 %vm2661_vm14, %v3593_v53 }
 0x6eb   : > { %3768 = vmatpush.msra.mxu3 %v3610_v57 }
 0x6ed   : > { %3769 = vmatpush.msra.mxu3 %v3602_v29 }
 0x6f2   : > { %3888 = vmatmul.msk.f32.vlgmr.msrb.gmra.mxu3 %vm2661_vm14, %v3593_v53 }
 0x6fa   : > { %3892 = vmatmul.msk.f32.vlgmr.msra.gmra.mxu3 %vm2661_vm14, %v3593_v53 }
 0x75f   : > { %v3671_v9 = vpop.f32.mrf.mxu0 }
 0x760   : > { %3776 = vst [vmem:[%s332_s21 + $0x10] sm:$0xff] %v3671_v9  ;;  %v3731_v8 = vpop.f32.mrf.mxu1 }
 0x761   : > { %3779 = vst [vmem:[%s332_s21 + $0x28] sm:$0xff] %v3731_v8 }
 0x765   : > { %v3631_v37 = vpop.f32.mrf.mxu3 }
 0x766   : > { %3774 = vst [vmem:[%s332_s21] sm:$0xff] %v3631_v37  ;;  %v3751_v30 = vpop.f32.mrf.mxu2 }
 0x767   : > { %3780 = vst [vmem:[%s332_s21 + $0x30] sm:$0xff] %v3751_v30  ;;  %v3711_v38 = vpop.f32.mrf.mxu0 }
 0x768   : > { %3778 = vst [vmem:[%s332_s21 + $0x20] sm:$0xff] %v3711_v38 }
 0x76d   : > { %v3651_v50 = vpop.f32.mrf.mxu3 }
 0x76e   : > { %3775 = vst [vmem:[%s332_s21 + $0x8] sm:$0xff] %v3651_v50 }
 0x775   : > { %v3691_v27 = vpop.f32.mrf.mxu3 }
 0x776   : > { %3777 = vst [vmem:[%s332_s21 + $0x18] sm:$0xff] %v3691_v27 }
 0x77d   : > { %v3771_v31 = vpop.f32.mrf.mxu3 }
 0x77e   : > { %3781 = vst [vmem:[%s332_s21 + $0x38] sm:$0xff] %v3771_v31 }
 0x77f PF: > { %s19_s30 = sadd.s32 1, %s5014_s30  }
 0x780   : > { %p16_p4 = scmp.ge.s32.totalorder %s19_s30, 4  }
 0x782   :  { %18 = sbr.rel (!%p16_p4) target bundleno = 1 (0x1), region = 86 }

</bundles_post_ra>
